<compile_context>
chip_gen: v7x
topology: tpu7x:2x2x1
jax: 0.10.0
libtpu: 0.0.40
codegen_flags: <defaults>
</compile_context>

<pallas_src>
import functools

import jax
import jax.numpy as jnp
from jax.experimental import pallas as pl
from jax.experimental.pallas import tpu as pltpu


# ----------------------------------------------------------------------------
# Fused Block17 kernel: one grid step == one image (H*W rows resident in VMEM)
# ----------------------------------------------------------------------------
def _block17_kernel(x_ref,
                    w_b0, b_b0,        # branch0:   1x1 conv 1088 -> 192 (BN folded)
                    w_b1a, b_b1a,      # branch1.0: 1x1 conv 1088 -> 128 (BN folded)
                    w_b1b, b_b1b,      # branch1.1: 1x7 conv  128 -> 160 (kw-major rows)
                    w_b1c, b_b1c,      # branch1.2: 7x1 conv  160 -> 192 (kh-major rows)
                    w_c0, w_c1, b_c,   # final 1x1 conv 384 -> 1088 (scale folded, split)
                    o_ref,
                    padw_ref, padh_ref,  # zero-padded VMEM scratch for the 7-tap convs
                    *, H, W):
    HW = H * W
    PADL = 8  # left pad of the 1x7 buffer; keeps the image store sublane-aligned

    x = x_ref[...]                                    # (HW, 1088) bf16, also residual

    def mm_bias_relu(lhs, w_ref, bias_ref):
        acc = jnp.dot(lhs, w_ref[...], preferred_element_type=jnp.float32)
        return jnp.maximum(acc + bias_ref[...], 0.0)

    # branch0 and branch1[0] share the same LHS (x is read from HBM once).
    b0 = mm_bias_relu(x, w_b0, b_b0).astype(jnp.bfloat16)     # (HW, 192)
    b1 = mm_bias_relu(x, w_b1a, b_b1a).astype(jnp.bfloat16)   # (HW, 128)

    # branch1[1]: 1x7 conv, padding (0, 3).  Zero-padded (H, W+16, 128) VMEM
    # buffer; 7 shifted-window taps accumulated on the MXU into one f32 acc.
    padw_ref[...] = jnp.zeros_like(padw_ref)
    padw_ref[:, PADL:PADL + W, :] = b1.reshape(H, W, 128)
    acc = jnp.zeros((HW, 160), jnp.float32)
    for t in range(7):                                 # kw tap (static unroll)
        c0 = PADL - 3 + t                              # original column w + t - 3
        tap = padw_ref[:, c0:c0 + W, :].reshape(HW, 128)
        acc += jnp.dot(tap, w_b1b[t * 128:(t + 1) * 128, :],
                       preferred_element_type=jnp.float32)
    b1 = jnp.maximum(acc + b_b1b[...], 0.0).astype(jnp.bfloat16)   # (HW, 160)

    # branch1[2]: 7x1 conv, padding (3, 0).  Zero-padded (H+6, W, 160) buffer;
    # the shifted windows are leading-dim slices (trivially aligned).
    padh_ref[...] = jnp.zeros_like(padh_ref)
    padh_ref[3:3 + H, :, :] = b1.reshape(H, W, 160)
    acc = jnp.zeros((HW, 192), jnp.float32)
    for t in range(7):                                 # kh tap (static unroll)
        tap = padh_ref[t:t + H, :, :].reshape(HW, 160)
        acc += jnp.dot(tap, w_b1c[t * 160:(t + 1) * 160, :],
                       preferred_element_type=jnp.float32)
    b1 = jnp.maximum(acc + b_b1c[...], 0.0).astype(jnp.bfloat16)   # (HW, 192)

    # final 1x1 conv (residual scale already folded into w_c*/b_c) + residual
    # add (bf16 x upcast to f32) + ReLU; split-weight dual dot avoids a concat.
    out = jnp.dot(b0, w_c0[...], preferred_element_type=jnp.float32)
    out += jnp.dot(b1, w_c1[...], preferred_element_type=jnp.float32)
    o_ref[...] = jnp.maximum(out + b_c[...] + x.astype(jnp.float32), 0.0)


# ----------------------------------------------------------------------------
# Host-side wrapper
# ----------------------------------------------------------------------------
def block17_forward(x_nchw, p):
    N, C, H, W = x_nchw.shape
    assert C == 1088, "Block17 expects 1088 input channels"
    # TODO(synk): pad W to a multiple of 8 on the host (with in-kernel column
    # masks) to support the real 17x17 Inception grid.
    assert W % 8 == 0, "kernel requires W % 8 == 0"
    HW = H * W

    # Single bf16 copy of the activations (fused transpose + cast); it is both
    # the matmul LHS and the residual inside the kernel.
    x2d = jnp.transpose(x_nchw, (0, 2, 3, 1)).reshape(N * HW, C).astype(jnp.bfloat16)

    kernel = functools.partial(_block17_kernel, H=H, W=W)
    const = lambda n: (0, 0)
    row = lambda n: (n, 0)

    out2d = pl.pallas_call(
        kernel,
        out_shape=jax.ShapeDtypeStruct((N * HW, C), jnp.float32),
        grid_spec=pltpu.PrefetchScalarGridSpec(
            num_scalar_prefetch=0,
            grid=(N,),
            in_specs=[
                pl.BlockSpec((HW, C), row),                 # x (LHS + residual)
                pl.BlockSpec((1088, 192), const), pl.BlockSpec((1, 192), const),
                pl.BlockSpec((1088, 128), const), pl.BlockSpec((1, 128), const),
                pl.BlockSpec((896, 160), const), pl.BlockSpec((1, 160), const),
                pl.BlockSpec((1120, 192), const), pl.BlockSpec((1, 192), const),
                pl.BlockSpec((192, 1088), const), pl.BlockSpec((192, 1088), const),
                pl.BlockSpec((1, 1088), const),
            ],
            out_specs=pl.BlockSpec((HW, C), row),
            scratch_shapes=[
                pltpu.VMEM((H, W + 16, 128), jnp.bfloat16),  # 1x7 padded buffer
                pltpu.VMEM((H + 6, W, 160), jnp.bfloat16),   # 7x1 padded buffer
            ],
        ),
        compiler_params=pltpu.CompilerParams(
            dimension_semantics=("parallel",)),
    )(x2d, p["w_b0"], p["b_b0"], p["w_b1a"], p["b_b1a"],
      p["w_b1b"], p["b_b1b"], p["w_b1c"], p["b_b1c"],
      p["w_c0"], p["w_c1"], p["b_c"])

    return jnp.transpose(out2d.reshape(N, H, W, C), (0, 3, 1, 2))   # NCHW f32


# ----------------------------------------------------------------------------
# Parameter folding (BN + residual scale), weight reshaping, bf16 pre-cast
# ----------------------------------------------------------------------------
def _fold_bn(gamma, beta, mean, var, eps=1e-3):
    s = gamma / jnp.sqrt(var + eps)
    return s, beta - mean * s


def _w1x1_to_mat(w):           # (Cout, Cin, 1, 1) -> (Cin, Cout)
    return jnp.transpose(w[:, :, 0, 0], (1, 0))


def _w1x7_to_mat(w):           # (Cout, Cin, 1, 7) -> (7*Cin, Cout), kw-major
    cout, cin = w.shape[0], w.shape[1]
    return jnp.transpose(w[:, :, 0, :], (2, 1, 0)).reshape(7 * cin, cout)


def _w7x1_to_mat(w):           # (Cout, Cin, 7, 1) -> (7*Cin, Cout), kh-major
    cout, cin = w.shape[0], w.shape[1]
    return jnp.transpose(w[:, :, :, 0], (2, 1, 0)).reshape(7 * cin, cout)


def prepare_params(raw, scale=1.0):
    """Fold BN into the conv weights, fold `scale` into the final conv, and
    store the MXU operands in bf16 once (no per-forward casts)."""
    def basic(w_mat, bn):
        s, b = _fold_bn(*bn)
        return ((w_mat * s[None, :]).astype(jnp.bfloat16),
                b.reshape(1, -1).astype(jnp.float32))

    p = {}
    p["w_b0"], p["b_b0"] = basic(_w1x1_to_mat(raw["b0_w"]), raw["b0_bn"])
    p["w_b1a"], p["b_b1a"] = basic(_w1x1_to_mat(raw["b1a_w"]), raw["b1a_bn"])
    p["w_b1b"], p["b_b1b"] = basic(_w1x7_to_mat(raw["b1b_w"]), raw["b1b_bn"])
    p["w_b1c"], p["b_b1c"] = basic(_w7x1_to_mat(raw["b1c_w"]), raw["b1c_bn"])
    c2 = _w1x1_to_mat(raw["c2_w"]) * scale              # fold residual scale
    p["w_c0"] = c2[:192, :].astype(jnp.bfloat16)        # rows for branch0
    p["w_c1"] = c2[192:, :].astype(jnp.bfloat16)        # rows for branch1
    p["b_c"] = (raw["c2_b"] * scale).reshape(1, -1).astype(jnp.float32)
    return p


# ----------------------------------------------------------------------------
# Deterministic raw parameters (matching the PyTorch module layout)
# ----------------------------------------------------------------------------
def make_params(key):
    keys = iter(jax.random.split(key, 24))

    def conv_w(shape):
        return 0.05 * jax.random.normal(next(keys), shape, dtype=jnp.float32)

    def bn(c):
        gamma = 1.0 + 0.1 * jax.random.normal(next(keys), (c,), dtype=jnp.float32)
        beta = 0.1 * jax.random.normal(next(keys), (c,), dtype=jnp.float32)
        mean = 0.1 * jax.random.normal(next(keys), (c,), dtype=jnp.float32)
        var = jnp.abs(jax.random.normal(next(keys), (c,), dtype=jnp.float32)) + 0.5
        return (gamma, beta, mean, var)

    return {
        "b0_w": conv_w((192, 1088, 1, 1)), "b0_bn": bn(192),
        "b1a_w": conv_w((128, 1088, 1, 1)), "b1a_bn": bn(128),
        "b1b_w": conv_w((160, 128, 1, 7)), "b1b_bn": bn(160),
        "b1c_w": conv_w((192, 160, 7, 1)), "b1c_bn": bn(192),
        "c2_w": conv_w((1088, 384, 1, 1)),
        "c2_b": 0.05 * jax.random.normal(next(keys), (1088,), dtype=jnp.float32),
    }


# ----------------------------------------------------------------------------
# Pure-JAX f32 reference of the original PyTorch module (for validation only)
# ----------------------------------------------------------------------------
def block17_reference(x, raw, scale):
    dn = ("NCHW", "OIHW", "NCHW")
    hp = jax.lax.Precision.HIGHEST

    def bconv(inp, w, bn, pad):
        y = jax.lax.conv_general_dilated(inp, w, (1, 1), pad,
                                         dimension_numbers=dn, precision=hp)
        gamma, beta, mean, var = bn
        inv = gamma / jnp.sqrt(var + 1e-3)
        y = y * inv[None, :, None, None] + (beta - mean * inv)[None, :, None, None]
        return jnp.maximum(y, 0.0)

    x0 = bconv(x, raw["b0_w"], raw["b0_bn"], ((0, 0), (0, 0)))
    x1 = bconv(x, raw["b1a_w"], raw["b1a_bn"], ((0, 0), (0, 0)))
    x1 = bconv(x1, raw["b1b_w"], raw["b1b_bn"], ((0, 0), (3, 3)))
    x1 = bconv(x1, raw["b1c_w"], raw["b1c_bn"], ((3, 3), (0, 0)))
    cat = jnp.concatenate([x0, x1], axis=1)
    out = jax.lax.conv_general_dilated(cat, raw["c2_w"], (1, 1), ((0, 0), (0, 0)),
                                       dimension_numbers=dn, precision=hp)
    out = out + raw["c2_b"][None, :, None, None]
    return jnp.maximum(out * scale + x, 0.0)


# ----------------------------------------------------------------------------
if __name__ == "__main__":
    key = jax.random.PRNGKey(0)
    kx, kp = jax.random.split(key)

    # Block17 requires 1088 input channels; keep batch/spatial small.
    x = jax.random.normal(kx, (2, 1088, 8, 8), dtype=jnp.float32)   # NCHW
    scale = 0.17
    raw = make_params(kp)
    params = prepare_params(raw, scale)   # BN + scale folded, bf16 weights, once

    fwd = jax.jit(block17_forward)
    out = fwd(x, params)
    jax.block_until_ready(out)

    assert out.shape == (2, 1088, 8, 8)
    assert out.dtype == jnp.float32
    assert bool(jnp.all(out >= 0.0))           # ReLU output
    assert bool(jnp.all(jnp.isfinite(out)))

    # Validate against the f32 PyTorch-equivalent reference (bf16 MXU path,
    # so compare with a tolerance rather than exactness).
    ref = block17_reference(x, raw, scale)
    max_err = float(jnp.max(jnp.abs(out - ref)))
    mean_err = float(jnp.mean(jnp.abs(out - ref)))
    assert max_err < 0.2, f"max abs error vs reference: {max_err}"
    assert mean_err < 0.02, f"mean abs error vs reference: {mean_err}"

    print("KERNEL_OK")
</pallas_src>

<mosaic_0001>
module attributes {stable_mosaic.version = 11 : i64} {
  func.func @_block17_kernel(%arg0: i32, %arg1: memref<64x1088xbf16, #tpu.memory_space<vmem>>, %arg2: memref<1088x192xbf16, #tpu.memory_space<vmem>>, %arg3: memref<1x192xf32, #tpu.memory_space<vmem>>, %arg4: memref<1088x128xbf16, #tpu.memory_space<vmem>>, %arg5: memref<1x128xf32, #tpu.memory_space<vmem>>, %arg6: memref<896x160xbf16, #tpu.memory_space<vmem>>, %arg7: memref<1x160xf32, #tpu.memory_space<vmem>>, %arg8: memref<1120x192xbf16, #tpu.memory_space<vmem>>, %arg9: memref<1x192xf32, #tpu.memory_space<vmem>>, %arg10: memref<192x1088xbf16, #tpu.memory_space<vmem>>, %arg11: memref<192x1088xbf16, #tpu.memory_space<vmem>>, %arg12: memref<1x1088xf32, #tpu.memory_space<vmem>>, %arg13: memref<64x1088xf32, #tpu.memory_space<vmem>>, %arg14: memref<8x24x128xbf16, #tpu.memory_space<vmem>>, %arg15: memref<14x8x160xbf16, #tpu.memory_space<vmem>>) attributes {dimension_semantics = [#tpu.dimension_semantics<parallel>], iteration_bounds = array<i64: 2>, scalar_prefetch = 0 : i64, scratch_operands = 2 : i64, tpu.core_type = #tpu.core_type<tc>, window_params = [{transform_indices = @transform_0, window_bounds = array<i64: 64, 1088>}, {pipeline_mode = #tpu.pipeline_mode<synchronous>, transform_indices = @transform_1, window_bounds = array<i64: 1088, 192>}, {pipeline_mode = #tpu.pipeline_mode<synchronous>, transform_indices = @transform_2, window_bounds = array<i64: 1, 192>}, {pipeline_mode = #tpu.pipeline_mode<synchronous>, transform_indices = @transform_3, window_bounds = array<i64: 1088, 128>}, {pipeline_mode = #tpu.pipeline_mode<synchronous>, transform_indices = @transform_4, window_bounds = array<i64: 1, 128>}, {pipeline_mode = #tpu.pipeline_mode<synchronous>, transform_indices = @transform_5, window_bounds = array<i64: 896, 160>}, {pipeline_mode = #tpu.pipeline_mode<synchronous>, transform_indices = @transform_6, window_bounds = array<i64: 1, 160>}, {pipeline_mode = #tpu.pipeline_mode<synchronous>, transform_indices = @transform_7, window_bounds = array<i64: 1120, 192>}, {pipeline_mode = #tpu.pipeline_mode<synchronous>, transform_indices = @transform_8, window_bounds = array<i64: 1, 192>}, {pipeline_mode = #tpu.pipeline_mode<synchronous>, transform_indices = @transform_9, window_bounds = array<i64: 192, 1088>}, {pipeline_mode = #tpu.pipeline_mode<synchronous>, transform_indices = @transform_10, window_bounds = array<i64: 192, 1088>}, {pipeline_mode = #tpu.pipeline_mode<synchronous>, transform_indices = @transform_11, window_bounds = array<i64: 1, 1088>}, {transform_indices = @transform_12, window_bounds = array<i64: 64, 1088>}]} {
    %c0 = arith.constant 0 : index
    %c0_0 = arith.constant 0 : index
    %0 = vector.load %arg1[%c0, %c0_0] : memref<64x1088xbf16, #tpu.memory_space<vmem>>, vector<64x1088xbf16>
    %c0_1 = arith.constant 0 : index
    %c0_2 = arith.constant 0 : index
    %1 = vector.load %arg2[%c0_1, %c0_2] : memref<1088x192xbf16, #tpu.memory_space<vmem>>, vector<1088x192xbf16>
    %cst = arith.constant dense<0.000000e+00> : vector<64x192xf32>
    %2 = tpu.matmul %0, %1, %cst {dimension_numbers = #tpu.dot_dimension_numbers<[1], [0], [0], [1], [0, 0, 1, 1], [], []>} : vector<64x1088xbf16>, vector<1088x192xbf16>, vector<64x192xf32> -> vector<64x192xf32>
    %c0_3 = arith.constant 0 : index
    %c0_4 = arith.constant 0 : index
    %3 = vector.load %arg3[%c0_3, %c0_4] : memref<1x192xf32, #tpu.memory_space<vmem>>, vector<1x192xf32>
    %4 = vector.broadcast %3 : vector<1x192xf32> to vector<64x192xf32>
    %5 = arith.addf %2, %4 : vector<64x192xf32>
    %cst_5 = arith.constant 0.000000e+00 : f32
    %6 = vector.broadcast %cst_5 : f32 to vector<64x192xf32>
    %7 = arith.maximumf %5, %6 : vector<64x192xf32>
    %8 = arith.truncf %7 : vector<64x192xf32> to vector<64x192xbf16>
    %c0_6 = arith.constant 0 : index
    %c0_7 = arith.constant 0 : index
    %9 = vector.load %arg4[%c0_6, %c0_7] : memref<1088x128xbf16, #tpu.memory_space<vmem>>, vector<1088x128xbf16>
    %cst_8 = arith.constant dense<0.000000e+00> : vector<64x128xf32>
    %10 = tpu.matmul %0, %9, %cst_8 {dimension_numbers = #tpu.dot_dimension_numbers<[1], [0], [0], [1], [0, 0, 1, 1], [], []>} : vector<64x1088xbf16>, vector<1088x128xbf16>, vector<64x128xf32> -> vector<64x128xf32>
    %c0_9 = arith.constant 0 : index
    %c0_10 = arith.constant 0 : index
    %11 = vector.load %arg5[%c0_9, %c0_10] : memref<1x128xf32, #tpu.memory_space<vmem>>, vector<1x128xf32>
    %12 = vector.broadcast %11 : vector<1x128xf32> to vector<64x128xf32>
    %13 = arith.addf %10, %12 : vector<64x128xf32>
    %cst_11 = arith.constant 0.000000e+00 : f32
    %14 = vector.broadcast %cst_11 : f32 to vector<64x128xf32>
    %15 = arith.maximumf %13, %14 : vector<64x128xf32>
    %16 = arith.truncf %15 : vector<64x128xf32> to vector<64x128xbf16>
    %cst_12 = arith.constant 0.000000e+00 : bf16
    %17 = vector.broadcast %cst_12 : bf16 to vector<8x24x128xbf16>
    %c0_13 = arith.constant 0 : index
    %c0_14 = arith.constant 0 : index
    %c0_15 = arith.constant 0 : index
    %18 = vector.load %arg14[%c0_13, %c0_14, %c0_15] : memref<8x24x128xbf16, #tpu.memory_space<vmem>>, vector<8x24x128xbf16>
    tpu.vector_store %arg14[%c0_13, %c0_14, %c0_15], %17 {strides = array<i32>} : memref<8x24x128xbf16, #tpu.memory_space<vmem>>, vector<8x24x128xbf16>,
    %19 = vector.shape_cast %16 : vector<64x128xbf16> to vector<8x8x128xbf16>
    %c0_16 = arith.constant 0 : index
    %c8 = arith.constant 8 : index
    %c0_17 = arith.constant 0 : index
    %20 = vector.load %arg14[%c0_16, %c8, %c0_17] : memref<8x24x128xbf16, #tpu.memory_space<vmem>>, vector<8x8x128xbf16>
    tpu.vector_store %arg14[%c0_16, %c8, %c0_17], %19 {strides = array<i32>} : memref<8x24x128xbf16, #tpu.memory_space<vmem>>, vector<8x8x128xbf16>,
    %cst_18 = arith.constant 0.000000e+00 : f32
    %21 = vector.broadcast %cst_18 : f32 to vector<64x160xf32>
    %c0_19 = arith.constant 0 : index
    %c5 = arith.constant 5 : index
    %c0_20 = arith.constant 0 : index
    %22 = vector.load %arg14[%c0_19, %c5, %c0_20] : memref<8x24x128xbf16, #tpu.memory_space<vmem>>, vector<8x8x128xbf16>
    %23 = vector.shape_cast %22 : vector<8x8x128xbf16> to vector<64x128xbf16>
    %c0_21 = arith.constant 0 : index
    %c0_22 = arith.constant 0 : index
    %24 = vector.load %arg6[%c0_21, %c0_22] : memref<896x160xbf16, #tpu.memory_space<vmem>>, vector<128x160xbf16>
    %cst_23 = arith.constant dense<0.000000e+00> : vector<64x160xf32>
    %25 = tpu.matmul %23, %24, %cst_23 {dimension_numbers = #tpu.dot_dimension_numbers<[1], [0], [0], [1], [0, 0, 1, 1], [], []>} : vector<64x128xbf16>, vector<128x160xbf16>, vector<64x160xf32> -> vector<64x160xf32>
    %26 = arith.addf %21, %25 : vector<64x160xf32>
    %c0_24 = arith.constant 0 : index
    %c6 = arith.constant 6 : index
    %c0_25 = arith.constant 0 : index
    %27 = vector.load %arg14[%c0_24, %c6, %c0_25] : memref<8x24x128xbf16, #tpu.memory_space<vmem>>, vector<8x8x128xbf16>
    %28 = vector.shape_cast %27 : vector<8x8x128xbf16> to vector<64x128xbf16>
    %c128 = arith.constant 128 : index
    %c0_26 = arith.constant 0 : index
    %29 = vector.load %arg6[%c128, %c0_26] : memref<896x160xbf16, #tpu.memory_space<vmem>>, vector<128x160xbf16>
    %cst_27 = arith.constant dense<0.000000e+00> : vector<64x160xf32>
    %30 = tpu.matmul %28, %29, %cst_27 {dimension_numbers = #tpu.dot_dimension_numbers<[1], [0], [0], [1], [0, 0, 1, 1], [], []>} : vector<64x128xbf16>, vector<128x160xbf16>, vector<64x160xf32> -> vector<64x160xf32>
    %31 = arith.addf %26, %30 : vector<64x160xf32>
    %c0_28 = arith.constant 0 : index
    %c7 = arith.constant 7 : index
    %c0_29 = arith.constant 0 : index
    %32 = vector.load %arg14[%c0_28, %c7, %c0_29] : memref<8x24x128xbf16, #tpu.memory_space<vmem>>, vector<8x8x128xbf16>
    %33 = vector.shape_cast %32 : vector<8x8x128xbf16> to vector<64x128xbf16>
    %c256 = arith.constant 256 : index
    %c0_30 = arith.constant 0 : index
    %34 = vector.load %arg6[%c256, %c0_30] : memref<896x160xbf16, #tpu.memory_space<vmem>>, vector<128x160xbf16>
    %cst_31 = arith.constant dense<0.000000e+00> : vector<64x160xf32>
    %35 = tpu.matmul %33, %34, %cst_31 {dimension_numbers = #tpu.dot_dimension_numbers<[1], [0], [0], [1], [0, 0, 1, 1], [], []>} : vector<64x128xbf16>, vector<128x160xbf16>, vector<64x160xf32> -> vector<64x160xf32>
    %36 = arith.addf %31, %35 : vector<64x160xf32>
    %c0_32 = arith.constant 0 : index
    %c8_33 = arith.constant 8 : index
    %c0_34 = arith.constant 0 : index
    %37 = vector.load %arg14[%c0_32, %c8_33, %c0_34] : memref<8x24x128xbf16, #tpu.memory_space<vmem>>, vector<8x8x128xbf16>
    %38 = vector.shape_cast %37 : vector<8x8x128xbf16> to vector<64x128xbf16>
    %c384 = arith.constant 384 : index
    %c0_35 = arith.constant 0 : index
    %39 = vector.load %arg6[%c384, %c0_35] : memref<896x160xbf16, #tpu.memory_space<vmem>>, vector<128x160xbf16>
    %cst_36 = arith.constant dense<0.000000e+00> : vector<64x160xf32>
    %40 = tpu.matmul %38, %39, %cst_36 {dimension_numbers = #tpu.dot_dimension_numbers<[1], [0], [0], [1], [0, 0, 1, 1], [], []>} : vector<64x128xbf16>, vector<128x160xbf16>, vector<64x160xf32> -> vector<64x160xf32>
    %41 = arith.addf %36, %40 : vector<64x160xf32>
    %c0_37 = arith.constant 0 : index
    %c9 = arith.constant 9 : index
    %c0_38 = arith.constant 0 : index
    %42 = vector.load %arg14[%c0_37, %c9, %c0_38] : memref<8x24x128xbf16, #tpu.memory_space<vmem>>, vector<8x8x128xbf16>
    %43 = vector.shape_cast %42 : vector<8x8x128xbf16> to vector<64x128xbf16>
    %c512 = arith.constant 512 : index
    %c0_39 = arith.constant 0 : index
    %44 = vector.load %arg6[%c512, %c0_39] : memref<896x160xbf16, #tpu.memory_space<vmem>>, vector<128x160xbf16>
    %cst_40 = arith.constant dense<0.000000e+00> : vector<64x160xf32>
    %45 = tpu.matmul %43, %44, %cst_40 {dimension_numbers = #tpu.dot_dimension_numbers<[1], [0], [0], [1], [0, 0, 1, 1], [], []>} : vector<64x128xbf16>, vector<128x160xbf16>, vector<64x160xf32> -> vector<64x160xf32>
    %46 = arith.addf %41, %45 : vector<64x160xf32>
    %c0_41 = arith.constant 0 : index
    %c10 = arith.constant 10 : index
    %c0_42 = arith.constant 0 : index
    %47 = vector.load %arg14[%c0_41, %c10, %c0_42] : memref<8x24x128xbf16, #tpu.memory_space<vmem>>, vector<8x8x128xbf16>
    %48 = vector.shape_cast %47 : vector<8x8x128xbf16> to vector<64x128xbf16>
    %c640 = arith.constant 640 : index
    %c0_43 = arith.constant 0 : index
    %49 = vector.load %arg6[%c640, %c0_43] : memref<896x160xbf16, #tpu.memory_space<vmem>>, vector<128x160xbf16>
    %cst_44 = arith.constant dense<0.000000e+00> : vector<64x160xf32>
    %50 = tpu.matmul %48, %49, %cst_44 {dimension_numbers = #tpu.dot_dimension_numbers<[1], [0], [0], [1], [0, 0, 1, 1], [], []>} : vector<64x128xbf16>, vector<128x160xbf16>, vector<64x160xf32> -> vector<64x160xf32>
    %51 = arith.addf %46, %50 : vector<64x160xf32>
    %c0_45 = arith.constant 0 : index
    %c11 = arith.constant 11 : index
    %c0_46 = arith.constant 0 : index
    %52 = vector.load %arg14[%c0_45, %c11, %c0_46] : memref<8x24x128xbf16, #tpu.memory_space<vmem>>, vector<8x8x128xbf16>
    %53 = vector.shape_cast %52 : vector<8x8x128xbf16> to vector<64x128xbf16>
    %c768 = arith.constant 768 : index
    %c0_47 = arith.constant 0 : index
    %54 = vector.load %arg6[%c768, %c0_47] : memref<896x160xbf16, #tpu.memory_space<vmem>>, vector<128x160xbf16>
    %cst_48 = arith.constant dense<0.000000e+00> : vector<64x160xf32>
    %55 = tpu.matmul %53, %54, %cst_48 {dimension_numbers = #tpu.dot_dimension_numbers<[1], [0], [0], [1], [0, 0, 1, 1], [], []>} : vector<64x128xbf16>, vector<128x160xbf16>, vector<64x160xf32> -> vector<64x160xf32>
    %56 = arith.addf %51, %55 : vector<64x160xf32>
    %c0_49 = arith.constant 0 : index
    %c0_50 = arith.constant 0 : index
    %57 = vector.load %arg7[%c0_49, %c0_50] : memref<1x160xf32, #tpu.memory_space<vmem>>, vector<1x160xf32>
    %58 = vector.broadcast %57 : vector<1x160xf32> to vector<64x160xf32>
    %59 = arith.addf %56, %58 : vector<64x160xf32>
    %cst_51 = arith.constant 0.000000e+00 : f32
    %60 = vector.broadcast %cst_51 : f32 to vector<64x160xf32>
    %61 = arith.maximumf %59, %60 : vector<64x160xf32>
    %62 = arith.truncf %61 : vector<64x160xf32> to vector<64x160xbf16>
    %cst_52 = arith.constant 0.000000e+00 : bf16
    %63 = vector.broadcast %cst_52 : bf16 to vector<14x8x160xbf16>
    %c0_53 = arith.constant 0 : index
    %c0_54 = arith.constant 0 : index
    %c0_55 = arith.constant 0 : index
    %64 = vector.load %arg15[%c0_53, %c0_54, %c0_55] : memref<14x8x160xbf16, #tpu.memory_space<vmem>>, vector<14x8x160xbf16>
    tpu.vector_store %arg15[%c0_53, %c0_54, %c0_55], %63 {strides = array<i32>} : memref<14x8x160xbf16, #tpu.memory_space<vmem>>, vector<14x8x160xbf16>,
    %65 = vector.shape_cast %62 : vector<64x160xbf16> to vector<8x8x160xbf16>
    %c3 = arith.constant 3 : index
    %c0_56 = arith.constant 0 : index
    %c0_57 = arith.constant 0 : index
    %66 = vector.load %arg15[%c3, %c0_56, %c0_57] : memref<14x8x160xbf16, #tpu.memory_space<vmem>>, vector<8x8x160xbf16>
    tpu.vector_store %arg15[%c3, %c0_56, %c0_57], %65 {strides = array<i32>} : memref<14x8x160xbf16, #tpu.memory_space<vmem>>, vector<8x8x160xbf16>,
    %cst_58 = arith.constant 0.000000e+00 : f32
    %67 = vector.broadcast %cst_58 : f32 to vector<64x192xf32>
    %c0_59 = arith.constant 0 : index
    %c0_60 = arith.constant 0 : index
    %c0_61 = arith.constant 0 : index
    %68 = vector.load %arg15[%c0_59, %c0_60, %c0_61] : memref<14x8x160xbf16, #tpu.memory_space<vmem>>, vector<8x8x160xbf16>
    %69 = vector.shape_cast %68 : vector<8x8x160xbf16> to vector<64x160xbf16>
    %c0_62 = arith.constant 0 : index
    %c0_63 = arith.constant 0 : index
    %70 = vector.load %arg8[%c0_62, %c0_63] : memref<1120x192xbf16, #tpu.memory_space<vmem>>, vector<160x192xbf16>
    %cst_64 = arith.constant dense<0.000000e+00> : vector<64x192xf32>
    %71 = tpu.matmul %69, %70, %cst_64 {dimension_numbers = #tpu.dot_dimension_numbers<[1], [0], [0], [1], [0, 0, 1, 1], [], []>} : vector<64x160xbf16>, vector<160x192xbf16>, vector<64x192xf32> -> vector<64x192xf32>
    %72 = arith.addf %67, %71 : vector<64x192xf32>
    %c1 = arith.constant 1 : index
    %c0_65 = arith.constant 0 : index
    %c0_66 = arith.constant 0 : index
    %73 = vector.load %arg15[%c1, %c0_65, %c0_66] : memref<14x8x160xbf16, #tpu.memory_space<vmem>>, vector<8x8x160xbf16>
    %74 = vector.shape_cast %73 : vector<8x8x160xbf16> to vector<64x160xbf16>
    %c160 = arith.constant 160 : index
    %c0_67 = arith.constant 0 : index
    %75 = vector.load %arg8[%c160, %c0_67] : memref<1120x192xbf16, #tpu.memory_space<vmem>>, vector<160x192xbf16>
    %cst_68 = arith.constant dense<0.000000e+00> : vector<64x192xf32>
    %76 = tpu.matmul %74, %75, %cst_68 {dimension_numbers = #tpu.dot_dimension_numbers<[1], [0], [0], [1], [0, 0, 1, 1], [], []>} : vector<64x160xbf16>, vector<160x192xbf16>, vector<64x192xf32> -> vector<64x192xf32>
    %77 = arith.addf %72, %76 : vector<64x192xf32>
    %c2 = arith.constant 2 : index
    %c0_69 = arith.constant 0 : index
    %c0_70 = arith.constant 0 : index
    %78 = vector.load %arg15[%c2, %c0_69, %c0_70] : memref<14x8x160xbf16, #tpu.memory_space<vmem>>, vector<8x8x160xbf16>
    %79 = vector.shape_cast %78 : vector<8x8x160xbf16> to vector<64x160xbf16>
    %c320 = arith.constant 320 : index
    %c0_71 = arith.constant 0 : index
    %80 = vector.load %arg8[%c320, %c0_71] : memref<1120x192xbf16, #tpu.memory_space<vmem>>, vector<160x192xbf16>
    %cst_72 = arith.constant dense<0.000000e+00> : vector<64x192xf32>
    %81 = tpu.matmul %79, %80, %cst_72 {dimension_numbers = #tpu.dot_dimension_numbers<[1], [0], [0], [1], [0, 0, 1, 1], [], []>} : vector<64x160xbf16>, vector<160x192xbf16>, vector<64x192xf32> -> vector<64x192xf32>
    %82 = arith.addf %77, %81 : vector<64x192xf32>
    %c3_73 = arith.constant 3 : index
    %c0_74 = arith.constant 0 : index
    %c0_75 = arith.constant 0 : index
    %83 = vector.load %arg15[%c3_73, %c0_74, %c0_75] : memref<14x8x160xbf16, #tpu.memory_space<vmem>>, vector<8x8x160xbf16>
    %84 = vector.shape_cast %83 : vector<8x8x160xbf16> to vector<64x160xbf16>
    %c480 = arith.constant 480 : index
    %c0_76 = arith.constant 0 : index
    %85 = vector.load %arg8[%c480, %c0_76] : memref<1120x192xbf16, #tpu.memory_space<vmem>>, vector<160x192xbf16>
    %cst_77 = arith.constant dense<0.000000e+00> : vector<64x192xf32>
    %86 = tpu.matmul %84, %85, %cst_77 {dimension_numbers = #tpu.dot_dimension_numbers<[1], [0], [0], [1], [0, 0, 1, 1], [], []>} : vector<64x160xbf16>, vector<160x192xbf16>, vector<64x192xf32> -> vector<64x192xf32>
    %87 = arith.addf %82, %86 : vector<64x192xf32>
    %c4 = arith.constant 4 : index
    %c0_78 = arith.constant 0 : index
    %c0_79 = arith.constant 0 : index
    %88 = vector.load %arg15[%c4, %c0_78, %c0_79] : memref<14x8x160xbf16, #tpu.memory_space<vmem>>, vector<8x8x160xbf16>
    %89 = vector.shape_cast %88 : vector<8x8x160xbf16> to vector<64x160xbf16>
    %c640_80 = arith.constant 640 : index
    %c0_81 = arith.constant 0 : index
    %90 = vector.load %arg8[%c640_80, %c0_81] : memref<1120x192xbf16, #tpu.memory_space<vmem>>, vector<160x192xbf16>
    %cst_82 = arith.constant dense<0.000000e+00> : vector<64x192xf32>
    %91 = tpu.matmul %89, %90, %cst_82 {dimension_numbers = #tpu.dot_dimension_numbers<[1], [0], [0], [1], [0, 0, 1, 1], [], []>} : vector<64x160xbf16>, vector<160x192xbf16>, vector<64x192xf32> -> vector<64x192xf32>
    %92 = arith.addf %87, %91 : vector<64x192xf32>
    %c5_83 = arith.constant 5 : index
    %c0_84 = arith.constant 0 : index
    %c0_85 = arith.constant 0 : index
    %93 = vector.load %arg15[%c5_83, %c0_84, %c0_85] : memref<14x8x160xbf16, #tpu.memory_space<vmem>>, vector<8x8x160xbf16>
    %94 = vector.shape_cast %93 : vector<8x8x160xbf16> to vector<64x160xbf16>
    %c800 = arith.constant 800 : index
    %c0_86 = arith.constant 0 : index
    %95 = vector.load %arg8[%c800, %c0_86] : memref<1120x192xbf16, #tpu.memory_space<vmem>>, vector<160x192xbf16>
    %cst_87 = arith.constant dense<0.000000e+00> : vector<64x192xf32>
    %96 = tpu.matmul %94, %95, %cst_87 {dimension_numbers = #tpu.dot_dimension_numbers<[1], [0], [0], [1], [0, 0, 1, 1], [], []>} : vector<64x160xbf16>, vector<160x192xbf16>, vector<64x192xf32> -> vector<64x192xf32>
    %97 = arith.addf %92, %96 : vector<64x192xf32>
    %c6_88 = arith.constant 6 : index
    %c0_89 = arith.constant 0 : index
    %c0_90 = arith.constant 0 : index
    %98 = vector.load %arg15[%c6_88, %c0_89, %c0_90] : memref<14x8x160xbf16, #tpu.memory_space<vmem>>, vector<8x8x160xbf16>
    %99 = vector.shape_cast %98 : vector<8x8x160xbf16> to vector<64x160xbf16>
    %c960 = arith.constant 960 : index
    %c0_91 = arith.constant 0 : index
    %100 = vector.load %arg8[%c960, %c0_91] : memref<1120x192xbf16, #tpu.memory_space<vmem>>, vector<160x192xbf16>
    %cst_92 = arith.constant dense<0.000000e+00> : vector<64x192xf32>
    %101 = tpu.matmul %99, %100, %cst_92 {dimension_numbers = #tpu.dot_dimension_numbers<[1], [0], [0], [1], [0, 0, 1, 1], [], []>} : vector<64x160xbf16>, vector<160x192xbf16>, vector<64x192xf32> -> vector<64x192xf32>
    %102 = arith.addf %97, %101 : vector<64x192xf32>
    %c0_93 = arith.constant 0 : index
    %c0_94 = arith.constant 0 : index
    %103 = vector.load %arg9[%c0_93, %c0_94] : memref<1x192xf32, #tpu.memory_space<vmem>>, vector<1x192xf32>
    %104 = vector.broadcast %103 : vector<1x192xf32> to vector<64x192xf32>
    %105 = arith.addf %102, %104 : vector<64x192xf32>
    %cst_95 = arith.constant 0.000000e+00 : f32
    %106 = vector.broadcast %cst_95 : f32 to vector<64x192xf32>
    %107 = arith.maximumf %105, %106 : vector<64x192xf32>
    %108 = arith.truncf %107 : vector<64x192xf32> to vector<64x192xbf16>
    %c0_96 = arith.constant 0 : index
    %c0_97 = arith.constant 0 : index
    %109 = vector.load %arg10[%c0_96, %c0_97] : memref<192x1088xbf16, #tpu.memory_space<vmem>>, vector<192x1088xbf16>
    %cst_98 = arith.constant dense<0.000000e+00> : vector<64x1088xf32>
    %110 = tpu.matmul %8, %109, %cst_98 {dimension_numbers = #tpu.dot_dimension_numbers<[1], [0], [0], [1], [0, 0, 1, 1], [], []>} : vector<64x192xbf16>, vector<192x1088xbf16>, vector<64x1088xf32> -> vector<64x1088xf32>
    %c0_99 = arith.constant 0 : index
    %c0_100 = arith.constant 0 : index
    %111 = vector.load %arg11[%c0_99, %c0_100] : memref<192x1088xbf16, #tpu.memory_space<vmem>>, vector<192x1088xbf16>
    %cst_101 = arith.constant dense<0.000000e+00> : vector<64x1088xf32>
    %112 = tpu.matmul %108, %111, %cst_101 {dimension_numbers = #tpu.dot_dimension_numbers<[1], [0], [0], [1], [0, 0, 1, 1], [], []>} : vector<64x192xbf16>, vector<192x1088xbf16>, vector<64x1088xf32> -> vector<64x1088xf32>
    %113 = arith.addf %110, %112 : vector<64x1088xf32>
    %c0_102 = arith.constant 0 : index
    %c0_103 = arith.constant 0 : index
    %114 = vector.load %arg12[%c0_102, %c0_103] : memref<1x1088xf32, #tpu.memory_space<vmem>>, vector<1x1088xf32>
    %115 = vector.broadcast %114 : vector<1x1088xf32> to vector<64x1088xf32>
    %116 = arith.addf %113, %115 : vector<64x1088xf32>
    %117 = arith.extf %0 : vector<64x1088xbf16> to vector<64x1088xf32>
    %118 = arith.addf %116, %117 : vector<64x1088xf32>
    %cst_104 = arith.constant 0.000000e+00 : f32
    %119 = vector.broadcast %cst_104 : f32 to vector<64x1088xf32>
    %120 = arith.maximumf %118, %119 : vector<64x1088xf32>
    %c0_105 = arith.constant 0 : index
    %c0_106 = arith.constant 0 : index
    %121 = vector.load %arg13[%c0_105, %c0_106] : memref<64x1088xf32, #tpu.memory_space<vmem>>, vector<64x1088xf32>
    tpu.vector_store %arg13[%c0_105, %c0_106], %120 {strides = array<i32>} : memref<64x1088xf32, #tpu.memory_space<vmem>>, vector<64x1088xf32>,
    return
  }
  func.func @transform_0(%arg0: i32) -> (i32, i32) {
    %c0_i32 = arith.constant 0 : i32
    %c0_i32_0 = arith.constant 0 : i32
    return %arg0, %c0_i32 : i32, i32
  }
  func.func @transform_1(%arg0: i32) -> (i32, i32) {
    %c0_i32 = arith.constant 0 : i32
    %c0_i32_0 = arith.constant 0 : i32
    %c0_i32_1 = arith.constant 0 : i32
    return %c0_i32, %c0_i32_0 : i32, i32
  }
  func.func @transform_2(%arg0: i32) -> (i32, i32) {
    %c0_i32 = arith.constant 0 : i32
    %c0_i32_0 = arith.constant 0 : i32
    %c0_i32_1 = arith.constant 0 : i32
    return %c0_i32, %c0_i32_0 : i32, i32
  }
  func.func @transform_3(%arg0: i32) -> (i32, i32) {
    %c0_i32 = arith.constant 0 : i32
    %c0_i32_0 = arith.constant 0 : i32
    %c0_i32_1 = arith.constant 0 : i32
    return %c0_i32, %c0_i32_0 : i32, i32
  }
  func.func @transform_4(%arg0: i32) -> (i32, i32) {
    %c0_i32 = arith.constant 0 : i32
    %c0_i32_0 = arith.constant 0 : i32
    %c0_i32_1 = arith.constant 0 : i32
    return %c0_i32, %c0_i32_0 : i32, i32
  }
  func.func @transform_5(%arg0: i32) -> (i32, i32) {
    %c0_i32 = arith.constant 0 : i32
    %c0_i32_0 = arith.constant 0 : i32
    %c0_i32_1 = arith.constant 0 : i32
    return %c0_i32, %c0_i32_0 : i32, i32
  }
  func.func @transform_6(%arg0: i32) -> (i32, i32) {
    %c0_i32 = arith.constant 0 : i32
    %c0_i32_0 = arith.constant 0 : i32
    %c0_i32_1 = arith.constant 0 : i32
    return %c0_i32, %c0_i32_0 : i32, i32
  }
  func.func @transform_7(%arg0: i32) -> (i32, i32) {
    %c0_i32 = arith.constant 0 : i32
    %c0_i32_0 = arith.constant 0 : i32
    %c0_i32_1 = arith.constant 0 : i32
    return %c0_i32, %c0_i32_0 : i32, i32
  }
  func.func @transform_8(%arg0: i32) -> (i32, i32) {
    %c0_i32 = arith.constant 0 : i32
    %c0_i32_0 = arith.constant 0 : i32
    %c0_i32_1 = arith.constant 0 : i32
    return %c0_i32, %c0_i32_0 : i32, i32
  }
  func.func @transform_9(%arg0: i32) -> (i32, i32) {
    %c0_i32 = arith.constant 0 : i32
    %c0_i32_0 = arith.constant 0 : i32
    %c0_i32_1 = arith.constant 0 : i32
    return %c0_i32, %c0_i32_0 : i32, i32
  }
  func.func @transform_10(%arg0: i32) -> (i32, i32) {
    %c0_i32 = arith.constant 0 : i32
    %c0_i32_0 = arith.constant 0 : i32
    %c0_i32_1 = arith.constant 0 : i32
    return %c0_i32, %c0_i32_0 : i32, i32
  }
  func.func @transform_11(%arg0: i32) -> (i32, i32) {
    %c0_i32 = arith.constant 0 : i32
    %c0_i32_0 = arith.constant 0 : i32
    %c0_i32_1 = arith.constant 0 : i32
    return %c0_i32, %c0_i32_0 : i32, i32
  }
  func.func @transform_12(%arg0: i32) -> (i32, i32) {
    %c0_i32 = arith.constant 0 : i32
    %c0_i32_0 = arith.constant 0 : i32
    return %arg0, %c0_i32 : i32, i32
  }
}

</mosaic_0001>

<bundles_post_ra>
// kernel: block17_forward.1
= control target key start
LH: loop header
LB: loop body
LE: loop exit
PB: predicated region body
PF: predicated region fallthrough
CT: control target
= control target key end

     0   :  { %17 = vsyncpa [#allocation5], 0  ;;  %s15698_s0 = inlined_call_operand.vmem [shape: bf16[128,1088], index: 0, kind: input, shape index: {}]   ;;  %s15699_s1 = inlined_call_operand.vmem [shape: bf16[1088,192], index: 1, kind: input, shape index: {}]   ;;  %s15700_s2 = inlined_call_operand.vmem [shape: f32[1,192], index: 2, kind: input, shape index: {}]   ;;  %s15701_s3 = inlined_call_operand.vmem [shape: bf16[1088,128], index: 3, kind: input, shape index: {}]   ;;  %s15702_s4 = inlined_call_operand.vmem [shape: f32[1,128], index: 4, kind: input, shape index: {}]   ;;  %s15703_s5 = inlined_call_operand.vmem [shape: bf16[896,160], index: 5, kind: input, shape index: {}]   ;;  %s15704_s6 = inlined_call_operand.vmem [shape: f32[1,160], index: 6, kind: input, shape index: {}]   ;;  %s15705_s7 = inlined_call_operand.vmem [shape: bf16[1120,192], index: 7, kind: input, shape index: {}]   ;;  %s15706_s8 = inlined_call_operand.vmem [shape: f32[1,192], index: 8, kind: input, shape index: {}]   ;;  %s15707_s9 = inlined_call_operand.vmem [shape: bf16[192,1088], index: 9, kind: input, shape index: {}]   ;;  %s15708_s10 = inlined_call_operand.vmem [shape: bf16[192,1088], index: 10, kind: input, shape index: {}]   ;;  %s15709_s11 = inlined_call_operand.vmem [shape: f32[1,1088], index: 11, kind: input, shape index: {}]   ;;  %s15710_s12 = inlined_call_operand.hbm [shape: f32[128,1088], index: 12, kind: output, shape index: {}]  }
   0x1   :  { %19 = vsyncpa [#allocation5 + $0x1], 0  ;;  %s12146_s21 = smov 0   ;;  %s12148_s22 = smov 0  }
   0x2   :  { %s12150_s23 = smov 0   ;;  %s12152_s24 = smov 0  }
   0x3 LB: > { %15715 = sst [smem:[#allocation7_spill]] %s12071_s23  ;;  %s12167_s25 = sadd.s32 4294967295, %s12075_s24   ;;  %s12075_s24 = sphi %s12152_s24, %s15736_s24   ;;  %s12071_s23 = sphi %s12150_s23, %s15738_s23   ;;  %s12067_s22 = sphi %s12148_s22, %s15740_s22   ;;  %s12063_s21 = sphi %s12146_s21, %s15739_s21  }
   0x4   : > { %s9449_s26 = sadd.s32 4294967294, %s12075_s24   ;;  %s12171_s27 = sadd.s32 1, %s12075_s24  }
   0x5   : > { %15716 = sst [smem:[#allocation8_spill]] %s12171_s27  ;;  %s289_s28 = sadd.s32 1, %s12071_s23 }
   0x6   : > { %s286_s29 = ssub.s32 %s12075_s24, %s12171_s27  ;;  %p299_p0 = scmp.ne.s32.totalorder %s12071_s23, %s12067_s22 }
   0x7   : > { %p287_p1 = scmp.eq.s32.totalorder %s286_s29, 0  ;;  %p300_p2 = scmp.eq.s32.totalorder %s12167_s25, 1 }
   0x8   : > { %p305_p3 = scmp.ne.s32.totalorder %s12067_s22, %s12063_s21  ;;  %p306_p4 = scmp.eq.s32.totalorder %s9449_s26, 1 }
   0x9   : > { %s12182_s30 = scalar_select %p287_p1, %s12071_s23, %s289_s28  }
   0xa   : > { %p12184_p5 = por %p300_p2, %p299_p0  ;;  %p12188_p6 = por %p306_p4, %p305_p3 }
   0xb   : > { %15717 = sst [smem:[#allocation9_spill]] %s12182_s30  ;;  %p9452_p7 = scmp.ge.s32.totalorder %s12075_s24, 1 }
   0xc   : > { %s15719_s14 = scalar_select %p12188_p6, 1, 0 }
   0xd   : > { %p367_p8 = scmp.lt.s32.totalorder %s12075_s24, 3 }
   0xe   : > { %15720 = sst [smem:[#allocation10_spill]] %s15719_s14 }
   0xf   : > { %p368_p9 = pnand %p9452_p7, %p367_p8 }
  0x10   : > { %v10951_v0 = vld [vmem:[%s15701_s3 + $0x40] sm:$0xff] (!%p368_p9)   ;;  %s9453_s17 = sshll.u32 (!%p368_p9), %s12167_s25, 3  ;;  %v10953_v2 = vld [vmem:[%s15701_s3 + $0x48] sm:$0xff] (!%p368_p9)   ;;  %v10955_v4 = vld [vmem:[%s15701_s3 + $0x50] sm:$0xff] (!%p368_p9)   ;;  %vm1467_vm0 = vcmask (!%p368_p9), 523264   ;;  %vm3020_vm1 = vcmask (!%p368_p9), 1040384  }
  0x11   : > { %371 = sbr.rel (%p368_p9) target bundleno = 1830 (0x726), region = 68  ;;  %v10952_v1 = vld [vmem:[%s15701_s3] sm:$0xff] (!%p368_p9)   ;;  %p411_p10 = scmp.lt.s32.totalorder (!%p368_p9), %s9453_s17, 15  ;;  %10386 = vmatprep.subr.bf16.mxu1 (!%p368_p9), %v10951_v0  ;;  %v10954_v3 = vld [vmem:[%s15701_s3 + $0x8] sm:$0xff] (!%p368_p9)   ;;  %v10956_v5 = vld [vmem:[%s15701_s3 + $0x10] sm:$0xff] (!%p368_p9)   ;;  %vm3021_vm2 = vcmask (!%p368_p9), 1044484  }
  0x12   : > { %10387 = vmatpush3.bf16.msra.mxu1 (!%p368_p9), %v10952_v1  ;;  %v10957_v6 = vld [vmem:[%s15701_s3 + $0x58] sm:$0xff] (!%p368_p9)   ;;  %v10959_v8 = vld [vmem:[%s15701_s3 + $0x60] sm:$0xff] (!%p368_p9)   ;;  %v10961_v10 = vld [vmem:[%s15701_s3 + $0x68] sm:$0xff] (!%p368_p9)   ;;  %vm2833_vm4 = vsmask.f32 (!%p368_p9), 1280  ;;  %vm4290_vm13 = vcmask (!%p368_p9), 1042432  }
  0x13   : > { %10388 = vmatprep.subr.bf16.mxu1 (!%p368_p9), %v10953_v2  ;;  %v10958_v7 = vld [vmem:[%s15701_s3 + $0x18] sm:$0xff] (!%p368_p9)   ;;  %v10960_v9 = vld [vmem:[%s15701_s3 + $0x20] sm:$0xff] (!%p368_p9)   ;;  %v10962_v14 = vld [vmem:[%s15701_s3 + $0x28] sm:$0xff] (!%p368_p9)   ;;  %vm2834_vm5 = vsmask.f32 (!%p368_p9), 5392  ;;  %vm4291_vm14 = vcmask (!%p368_p9), 1046532  }
  0x14   : > { %v10963_v15 = vld [vmem:[%s15701_s3 + $0x70] sm:$0xff] (!%p368_p9)   ;;  %v10965_v17 = vld [vmem:[%s15701_s3 + $0x78] sm:$0xff] (!%p368_p9)   ;;  %v10969_v19 = vld [vmem:[%s15701_s3 + $0xc0] sm:$0xff] (!%p368_p9)   ;;  %vm3417_vm7 = vsmask.f32 (!%p368_p9), 256  ;;  %s407_s30 = sand.u32 (!%p368_p9), 1, %s12067_s22  }
  0x15   : > { %v10964_v16 = vld [vmem:[%s15701_s3 + $0x30] sm:$0xff] (!%p368_p9)   ;;  %v10966_v18 = vld [vmem:[%s15701_s3 + $0x38] sm:$0xff] (!%p368_p9)   ;;  %v10970_v23 = vld [vmem:[%s15701_s3 + $0x80] sm:$0xff] (!%p368_p9)   ;;  %vm3418_vm8 = vsmask.f32 (!%p368_p9), 4368  ;;  %s10906_s27 = smul.u32 (!%p368_p9), 576, %s407_s30 }
  0x16   : > { %10389 = vmatpush3.bf16.msra.mxu1 (!%p368_p9), %v10954_v3  ;;  %v10971_v25 = vld [vmem:[%s15701_s3 + $0xc8] sm:$0xff] (!%p368_p9)   ;;  %v10975_v27 = vld [vmem:[%s15701_s3 + $0xd0] sm:$0xff] (!%p368_p9)   ;;  %v10977_v33 = vld [vmem:[%s15701_s3 + $0xd8] sm:$0xff] (!%p368_p9)   ;;  %vm3950_vm10 = vsmask.f32 (!%p368_p9), 3328  ;;  %s10908_s28 = smul.u32 (!%p368_p9), 9216, %s12167_s25 }
  0x17   : > { %10390 = vmatprep.subr.bf16.mxu1 (!%p368_p9), %v10955_v4  ;;  %v10972_v26 = vld [vmem:[%s15701_s3 + $0x88] sm:$0xff] (!%p368_p9)   ;;  %v10976_v31 = vld [vmem:[%s15701_s3 + $0x90] sm:$0xff] (!%p368_p9)   ;;  %v10978_v34 = vld [vmem:[%s15701_s3 + $0x98] sm:$0xff] (!%p368_p9)   ;;  %vm3951_vm11 = vsmask.f32 (!%p368_p9), 7440  ;;  %s15399_s14 = scalar_lea.vmem (!%p368_p9), [#allocation4], %s10906_s27 }
  0x18   : > { %s15742_s17 = smov (!%p411_p10, %s9453_s17), 15  ;;  %v10981_v35 = vld [vmem:[%s15701_s3 + $0xe0] sm:$0xff]   ;;  %v10983_v41 = vld [vmem:[%s15701_s3 + $0xe8] sm:$0xff]   ;;  %v10987_v43 = vld [vmem:[%s15701_s3 + $0xf0] sm:$0xff]   ;;  %s15648_s16 = scalar_lea.hbm %s15710_s12, %s10908_s28 }
  0x19   : > { %s10907_s26 = smul.u32 36, %s15742_s17  ;;  %v10982_v39 = vld [vmem:[%s15701_s3 + $0xa0] sm:$0xff]   ;;  %v10984_v42 = vld [vmem:[%s15701_s3 + $0xa8] sm:$0xff]   ;;  %v10988_v47 = vld [vmem:[%s15701_s3 + $0xb0] sm:$0xff]   ;;  %s15657_s25 = scalar_lea.sflag [#allocation5], %s407_s30 }
  0x1a   : > { %10391 = vmatpush3.bf16.msra.mxu1 %v10956_v5  ;;  %v10989_v49 = vld [vmem:[%s15701_s3 + $0xf8] sm:$0xff]   ;;  %v10993_v51 = vld [vmem:[%s15701_s3 + $0x140] sm:$0xff]   ;;  %v10995_v57 = vld [vmem:[%s15701_s3 + $0x148] sm:$0xff]   ;;  %s12078_s17 = smov [#allocation4]  }
  0x1b   : > { %10392 = vmatprep.subr.bf16.mxu1 %v10957_v6  ;;  %s12225_s18 = scalar_lea.vmem %s15698_s0, %s10907_s26  ;;  %v10990_v50 = vld [vmem:[%s15701_s3 + $0xb8] sm:$0xff]   ;;  %v10994_v55 = vld [vmem:[%s15701_s3 + $0x100] sm:$0xff]   ;;  %v10996_v58 = vld [vmem:[%s15701_s3 + $0x108] sm:$0xff]   ;;  %s12017_s23 = sshll.u32 %s12078_s17, 4  ;;  %s12018_s23 = int_to_ptr.vmem [resolvable:$false] %s12017_s23 }
  0x1c   : > { %v419_v11 = vld [vmem:[%s12225_s18] sm:$0xff]  ;;  %v429_v20 = vld [vmem:[%s12225_s18 + $0x48] sm:$0xff]  ;;  %v439_v28 = vld [vmem:[%s12225_s18 + $0x90] sm:$0xff]  ;;  %s12019_s27 = scalar_lea.vmem %s12018_s23, 18432 }
  0x1d   : > { %v424_v12 = vld [vmem:[%s12225_s18 + $0x24] sm:$0xff]  ;;  %v434_v21 = vld [vmem:[%s12225_s18 + $0x6c] sm:$0xff]  ;;  %v444_v29 = vld [vmem:[%s12225_s18 + $0xb4] sm:$0xff] }
  0x1e   : > { %10393 = vmatpush3.bf16.msra.mxu1 %v10958_v7  ;;  %v9456_v13 = vcombine.high %v419_v11, %v424_v12  ;;  %v12255_v22 = vcombine.low %v419_v11, %v424_v12  ;;  %v12260_v24 = vcombine.high %v429_v20, %v434_v21  ;;  %v12275_v30 = vcombine.low %v429_v20, %v434_v21  ;;  %v449_v36 = vld [vmem:[%s12225_s18 + $0xd8] sm:$0xff]  ;;  %v420_v44 = vld [vmem:[%s12225_s18 + $0x8] sm:$0xff]  ;;  %v430_v52 = vld [vmem:[%s12225_s18 + $0x50] sm:$0xff] }
  0x1f   : > { %10394 = vmatprep.subr.bf16.mxu1 %v10959_v8  ;;  %v12280_v32 = vcombine.high %v439_v28, %v444_v29  ;;  %v454_v37 = vld [vmem:[%s12225_s18 + $0xfc] sm:$0xff]  ;;  %v12295_v38 = vcombine.low %v439_v28, %v444_v29  ;;  %v425_v45 = vld [vmem:[%s12225_s18 + $0x2c] sm:$0xff]  ;;  %v435_v53 = vld [vmem:[%s12225_s18 + $0x74] sm:$0xff] }
  0x20   : > { %2452 = vmatprep.mubr.bf16.mxu1 %v9456_v13  ;;  %1512 = vmatprep.mubr.bf16.mxu0 %v9456_v13  ;;  %v12300_v40 = vcombine.high %v449_v36, %v454_v37  ;;  %v12315_v46 = vcombine.low %v449_v36, %v454_v37  ;;  %v12320_v48 = vcombine.high %v420_v44, %v425_v45  ;;  %v10999_v59 = vld [vmem:[%s15701_s3 + $0x150] sm:$0xff]   ;;  %v440_v60 = vld [vmem:[%s12225_s18 + $0x98] sm:$0xff]  ;;  %v11005_v3 = vld [vmem:[%s15701_s3 + $0x160] sm:$0xff]  }
  0x21   : > { %v12335_v54 = vcombine.low %v420_v44, %v425_v45  ;;  %v12340_v56 = vcombine.high %v430_v52, %v435_v53  ;;  %v445_v61 = vld [vmem:[%s12225_s18 + $0xbc] sm:$0xff]  ;;  %v12355_v62 = vcombine.low %v430_v52, %v435_v53  ;;  %v11000_v63 = vld [vmem:[%s15701_s3 + $0x110] sm:$0xff]   ;;  %v455_v5 = vld [vmem:[%s12225_s18 + $0x104] sm:$0xff] }
  0x22   : > { %10395 = vmatpush3.bf16.msra.mxu1 %v10960_v9  ;;  %v12360_v0 = vcombine.high %v440_v60, %v445_v61  ;;  %v11001_v1 = vld [vmem:[%s15701_s3 + $0x158] sm:$0xff]   ;;  %v450_v4 = vld [vmem:[%s12225_s18 + $0xe0] sm:$0xff]  ;;  %v12375_v6 = vcombine.low %v440_v60, %v445_v61  ;;  %v11007_v9 = vld [vmem:[%s15701_s3 + $0x168] sm:$0xff]  }
  0x23   : > { %10396 = vmatprep.subr.bf16.mxu1 %v10961_v10  ;;  %v11002_v2 = vld [vmem:[%s15701_s3 + $0x118] sm:$0xff]   ;;  %v11006_v7 = vld [vmem:[%s15701_s3 + $0x120] sm:$0xff]   ;;  %v12380_v8 = vcombine.high %v450_v4, %v455_v5  ;;  %v11008_v10 = vld [vmem:[%s15701_s3 + $0x128] sm:$0xff]  }
  0x24   : > { %v11011_v11 = vld [vmem:[%s15701_s3 + $0x170] sm:$0xff]   ;;  %v431_v20 = vld [vmem:[%s12225_s18 + $0x58] sm:$0xff]  ;;  %v11020_v28 = vld [vmem:[%s15701_s3 + $0x188] sm:$0xff]  }
  0x25   : > { %v421_v12 = vld [vmem:[%s12225_s18 + $0x10] sm:$0xff]  ;;  %v436_v21 = vld [vmem:[%s12225_s18 + $0x7c] sm:$0xff]  ;;  %v11055_v60 = vld [vmem:[%s15699_s1 + $0x4] ss:$8 sps:$4 sm:$0xff]  }
  0x26   : > { %10397 = vmatpush3.bf16.msra.mxu1 %v10962_v14  ;;  %v426_v13 = vld [vmem:[%s12225_s18 + $0x34] sm:$0xff]  ;;  %v11030_v44 = vld [vmem:[%s15701_s3 + $0x1a0] sm:$0xff]   ;;  %1480 = vmatprep.subr.bf16.mxu0 %v11055_v60  ;;  %vm13140_vm3 = vmor %vm3020_vm1, %vm3021_vm2  ;;  %vm4534_vm1 = vsmask.f32 2304  ;;  %vm4535_vm2 = vsmask.f32 6416 }
  0x27   : > { %10398 = vmatprep.subr.bf16.mxu1 %v10963_v15  ;;  %v11012_v14 = vld [vmem:[%s15701_s3 + $0x130] sm:$0xff]   ;;  %v12398_v15 = vcombine.low %v450_v4, %v455_v5  ;;  %v11025_v36 = vld [vmem:[%s15701_s3 + $0x1d8] sm:$0xff]   ;;  %v11081_v60 = vld [vmem:[%s15699_s1 + $0x80] ss:$8 sps:$4 sm:$0xff]  }
  0x28   : > { %v11023_v29 = vld [vmem:[%s15701_s3 + $0x1d0] sm:$0xff]   ;;  %v422_v52 = vld [vmem:[%s12225_s18 + $0x18] sm:$0xff]  ;;  %vm13290_vm6 = vmor %vm2833_vm4, %vm2834_vm5  ;;  %vm4934_vm4 = vcmask 1043456   ;;  %vm4935_vm5 = vcmask 261124  }
  0x29   : > { %v427_v53 = vld [vmem:[%s12225_s18 + $0x3c] sm:$0xff]  ;;  %v11060_v5 = vld [vmem:[%s15699_s1 + $0x10] ss:$8 sps:$4 sm:$0xff]   ;;  %vm13395_vm9 = vmor %vm3417_vm7, %vm3418_vm8  ;;  %vm5193_vm7 = vcmask 261120  }
  0x2a   : > { %10399 = vmatpush3.bf16.msra.mxu1 %v10964_v16  ;;  %v11013_v16 = vld [vmem:[%s15701_s3 + $0x178] sm:$0xff]   ;;  %vm13576_vm12 = vmor %vm3950_vm10, %vm3951_vm11 }
  0x2b   : > { %10400 = vmatprep.subr.bf16.mxu1 %v10965_v17  ;;  %v12403_v17 = vcombine.high %v421_v12, %v426_v13  ;;  %v11038_v61 = vld [vmem:[%s15701_s3 + $0x1b8] sm:$0xff]   ;;  %vm13711_vm15 = vmor %vm4290_vm13, %vm4291_vm14 }
  0x2c   : > { %v11058_v4 = vld [vmem:[%s15699_s1 + $0x14] ss:$8 sps:$4 sm:$0xff]  }
  0x2e   : > { %10401 = vmatpush3.bf16.msra.mxu1 %v10966_v18  ;;  %v11014_v18 = vld [vmem:[%s15701_s3 + $0x138] sm:$0xff]  }
  0x2f   : > { %10426 = vmatprep.subr.bf16.mxu1 %v10969_v19  ;;  %v11017_v19 = vld [vmem:[%s15701_s3 + $0x1c0] sm:$0xff]  }
  0x31   : > { %2453 = vmatmul.mubr.bf16.vlgmr.msra.gmra.mrb[0].mxu1 %v12255_v22 }
  0x32   : > { %10427 = vmatpush3.bf16.msra.mxu1 %v10970_v23  ;;  %2460 = vmatprep.mubr.bf16.mxu1 %v12260_v24  ;;  %v11018_v23 = vld [vmem:[%s15701_s3 + $0x180] sm:$0xff]  }
  0x33   : > { %10428 = vmatprep.subr.bf16.mxu1 %v10971_v25  ;;  %v12418_v25 = vcombine.low %v421_v12, %v426_v13  ;;  %v11063_v12 = vld [vmem:[%s15699_s1 + $0x20] ss:$8 sps:$4 sm:$0xff]  }
  0x34   : > { %v442_v13 = vld [vmem:[%s12225_s18 + $0xa8] sm:$0xff] }
  0x36   : > { %10429 = vmatpush3.bf16.msra.mxu1 %v10972_v26  ;;  %v11019_v26 = vld [vmem:[%s15701_s3 + $0x1c8] sm:$0xff]  }
  0x37   : > { %10430 = vmatprep.subr.bf16.mxu1 %v10975_v27  ;;  %v12423_v27 = vcombine.high %v431_v20, %v436_v21 }
  0x39   : > { %2461 = vmatmul.mubr.bf16.gmra.mrb[4].mxu1 %v12275_v30 }
  0x3a   : > { %10431 = vmatpush3.bf16.msra.mxu1 %v10976_v31  ;;  %2468 = vmatprep.mubr.bf16.mxu1 %v12280_v32  ;;  %v441_v31 = vld [vmem:[%s12225_s18 + $0xa0] sm:$0xff] }
  0x3b   : > { %10432 = vmatprep.subr.bf16.mxu1 %v10977_v33  ;;  %v446_v33 = vld [vmem:[%s12225_s18 + $0xc4] sm:$0xff] }
  0x3c   : > { %v12443_v37 = vcombine.high %v441_v31, %v446_v33  ;;  %v12458_v45 = vcombine.low %v441_v31, %v446_v33  ;;  %v457_v31 = vld [vmem:[%s12225_s18 + $0x114] sm:$0xff] }
  0x3d   : > { %v11070_v33 = vld [vmem:[%s15699_s1 + $0x54] ss:$8 sps:$4 sm:$0xff]  }
  0x3e   : > { %10433 = vmatpush3.bf16.msra.mxu1 %v10978_v34  ;;  %v11024_v34 = vld [vmem:[%s15701_s3 + $0x190] sm:$0xff]  }
  0x3f   : > { %10434 = vmatprep.subr.bf16.mxu1 %v10981_v35  ;;  %v12438_v35 = vcombine.low %v431_v20, %v436_v21  ;;  %v11050_v21 = vld [vmem:[%s15701_s3 + $0x218] sm:$0xff]  }
  0x41   : > { %2469 = vmatmul.mubr.bf16.gmra.mrb[8].mxu1 %v12295_v38 }
  0x42   : > { %10435 = vmatpush3.bf16.msra.mxu1 %v10982_v39  ;;  %2476 = vmatprep.mubr.bf16.mxu1 %v12300_v40  ;;  %v11026_v39 = vld [vmem:[%s15701_s3 + $0x198] sm:$0xff]  }
  0x43   : > { %10436 = vmatprep.subr.bf16.mxu1 %v10983_v41  ;;  %v11029_v41 = vld [vmem:[%s15701_s3 + $0x1e0] sm:$0xff]  }
  0x46   : > { %10437 = vmatpush3.bf16.msra.mxu1 %v10984_v42  ;;  %v451_v42 = vld [vmem:[%s12225_s18 + $0xe8] sm:$0xff] }
  0x47   : > { %10438 = vmatprep.subr.bf16.mxu1 %v10987_v43  ;;  %v456_v43 = vld [vmem:[%s12225_s18 + $0x10c] sm:$0xff] }
  0x49   : > { %2477 = vmatmul.mubr.bf16.gmra.mrb[12].mxu1 %v12315_v46 }
  0x4a   : > { %10439 = vmatpush3.bf16.msra.mxu1 %v10988_v47  ;;  %2517 = vmatprep.mubr.bf16.mxu1 %v12320_v48  ;;  %v11031_v47 = vld [vmem:[%s15701_s3 + $0x1e8] sm:$0xff]  }
  0x4b   : > { %10440 = vmatprep.subr.bf16.mxu1 %v10989_v49  ;;  %v12463_v49 = vcombine.high %v451_v42, %v456_v43 }
  0x4e   : > { %10441 = vmatpush3.bf16.msra.mxu1 %v10990_v50  ;;  %v11032_v50 = vld [vmem:[%s15701_s3 + $0x1a8] sm:$0xff]  }
  0x4f   : > { %10466 = vmatprep.subr.bf16.mxu1 %v10993_v51  ;;  %v11035_v51 = vld [vmem:[%s15701_s3 + $0x1f0] sm:$0xff]  }
  0x51   : > { %2518 = vmatmul.mubr.bf16.vlgmr.msra.gmra.mrb[16].mxu1 %v12335_v54 }
  0x52   : > { %10467 = vmatpush3.bf16.msra.mxu1 %v10994_v55  ;;  %2525 = vmatprep.mubr.bf16.mxu1 %v12340_v56  ;;  %v11036_v55 = vld [vmem:[%s15701_s3 + $0x1b0] sm:$0xff]  }
  0x53   : > { %10468 = vmatprep.subr.bf16.mxu1 %v10995_v57  ;;  %v12478_v57 = vcombine.low %v451_v42, %v456_v43  ;;  %v11075_v42 = vld [vmem:[%s15699_s1 + $0x60] ss:$8 sps:$4 sm:$0xff]  }
  0x54   : > { %v423_v43 = vld [vmem:[%s12225_s18 + $0x20] sm:$0xf] }
  0x56   : > { %10469 = vmatpush3.bf16.msra.mxu1 %v10996_v58  ;;  %v11037_v58 = vld [vmem:[%s15701_s3 + $0x1f8] sm:$0xff]  }
  0x57   : > { %10470 = vmatprep.subr.bf16.mxu1 %v10999_v59  ;;  %v12483_v59 = vcombine.high %v422_v52, %v427_v53 }
  0x59   : > { %2526 = vmatmul.mubr.bf16.gmra.mrb[20].mxu1 %v12355_v62 }
  0x5a   : > { %10471 = vmatpush3.bf16.msra.mxu1 %v11000_v63  ;;  %2533 = vmatprep.mubr.bf16.mxu1 %v12360_v0  ;;  %v11057_v63 = vld [vmem:[%s15699_s1] ss:$8 sps:$4 sm:$0xff]  }
  0x5b   : > { %10472 = vmatprep.subr.bf16.mxu1 %v11001_v1  ;;  %v11041_v1 = vld [vmem:[%s15701_s3 + $0x200] sm:$0xff]   ;;  %1481 = vmatpush1.bf16.msra.mxu0 %v11057_v63  ;;  %v448_v63 = vld [vmem:[%s12225_s18 + $0xd4] sm:$0xf] }
  0x5c   : > { %1482 = vmatprep.subr.bf16.mxu0 %v11058_v4 }
  0x5e   : > { %10473 = vmatpush3.bf16.msra.mxu1 %v11002_v2  ;;  %v432_v2 = vld [vmem:[%s12225_s18 + $0x60] sm:$0xff] }
  0x5f   : > { %10474 = vmatprep.subr.bf16.mxu1 %v11005_v3  ;;  %v437_v3 = vld [vmem:[%s12225_s18 + $0x84] sm:$0xff]  ;;  %1483 = vmatpush1.bf16.msra.mxu0 %v11060_v5 }
  0x60   : > { %v12533_v20 = vcombine.low %v432_v2, %v437_v3  ;;  %v11085_v5 = vld [vmem:[%s15699_s1 + $0xa4] ss:$8 sps:$4 sm:$0xff]  }
  0x61   : > { %2534 = vmatmul.mubr.bf16.gmra.mrb[24].mxu1 %v12375_v6 }
  0x62   : > { %10475 = vmatpush3.bf16.msra.mxu1 %v11006_v7  ;;  %2541 = vmatprep.mubr.bf16.mxu1 %v12380_v8  ;;  %v12507_v7 = vcombine.low %v422_v52, %v427_v53  ;;  %v11079_v53 = vld [vmem:[%s15699_s1 + $0x84] ss:$8 sps:$4 sm:$0xff]  }
  0x63   : > { %10476 = vmatprep.subr.bf16.mxu1 %v11007_v9  ;;  %v11044_v9 = vld [vmem:[%s15701_s3 + $0x208] sm:$0xff]  }
  0x66   : > { %10477 = vmatpush3.bf16.msra.mxu1 %v11008_v10  ;;  %v12512_v10 = vcombine.high %v432_v2, %v437_v3  ;;  %v11084_v2 = vld [vmem:[%s15699_s1 + $0x90] ss:$8 sps:$4 sm:$0xff]  }
  0x67   : > { %10478 = vmatprep.subr.bf16.mxu1 %v11011_v11  ;;  %v11061_v11 = vld [vmem:[%s15699_s1 + $0x24] ss:$8 sps:$4 sm:$0xff]  }
  0x68   : > { %1484 = vmatprep.subr.bf16.mxu0 %v11061_v11  ;;  %v458_v11 = vld [vmem:[%s12225_s18 + $0x11c] sm:$0xf] }
  0x69   : > { %2542 = vmatmul.mubr.bf16.gmra.mrb[28].mxu1 %v12398_v15  ;;  %1485 = vmatpush1.bf16.msra.mxu0 %v11063_v12  ;;  %v11087_v12 = vld [vmem:[%s15699_s1 + $0xa0] ss:$8 sps:$4 sm:$0xff]  }
  0x6a   : > { %10479 = vmatpush3.bf16.msra.mxu1 %v11012_v14  ;;  %2582 = vmatprep.mubr.bf16.mxu1 %v12403_v17  ;;  %v447_v14 = vld [vmem:[%s12225_s18 + $0xcc] sm:$0xff] }
  0x6b   : > { %10480 = vmatprep.subr.bf16.mxu1 %v11013_v16  ;;  %v11047_v16 = vld [vmem:[%s15701_s3 + $0x210] sm:$0xff]  }
  0x6e   : > { %10481 = vmatpush3.bf16.msra.mxu1 %v11014_v18  ;;  %v11064_v18 = vld [vmem:[%s15699_s1 + $0x34] ss:$8 sps:$4 sm:$0xff]  }
  0x6f   : > { %10506 = vmatprep.subr.bf16.mxu1 %v11017_v19  ;;  %v11066_v19 = vld [vmem:[%s15699_s1 + $0x30] ss:$8 sps:$4 sm:$0xff]   ;;  %1486 = vmatprep.subr.bf16.mxu0 %v11064_v18  ;;  %v11091_v18 = vld [vmem:[%s15699_s1 + $0xc4] ss:$8 sps:$4 sm:$0xff]  }
  0x70   : > { %1487 = vmatpush1.bf16.msra.mxu0 %v11066_v19  ;;  %v11093_v19 = vld [vmem:[%s15699_s1 + $0xc0] ss:$8 sps:$4 sm:$0xff]  }
  0x71   : > { %2583 = vmatmul.mubr.bf16.vlgmr.msra.gmra.mrb[32].mxu1 %v12418_v25 }
  0x72   : > { %10507 = vmatpush3.bf16.msra.mxu1 %v11018_v23  ;;  %2590 = vmatprep.mubr.bf16.mxu1 %v12423_v27  ;;  %v12538_v23 = vcombine.high %v442_v13, %v447_v14 }
  0x73   : > { %10508 = vmatprep.subr.bf16.mxu1 %v11019_v26  ;;  %v11067_v26 = vld [vmem:[%s15699_s1 + $0x44] ss:$8 sps:$4 sm:$0xff]  }
  0x74   : > { %1488 = vmatprep.subr.bf16.mxu0 %v11067_v26  ;;  %v11096_v26 = vld [vmem:[%s15699_s1 + $0xd0] ss:$8 sps:$4 sm:$0xff]  }
  0x76   : > { %10509 = vmatpush3.bf16.msra.mxu1 %v11020_v28  ;;  %v11069_v28 = vld [vmem:[%s15699_s1 + $0x40] ss:$8 sps:$4 sm:$0xff]  }
  0x77   : > { %10510 = vmatprep.subr.bf16.mxu1 %v11023_v29  ;;  %v452_v29 = vld [vmem:[%s12225_s18 + $0xf0] sm:$0xff]  ;;  %1489 = vmatpush1.bf16.msra.mxu0 %v11069_v28  ;;  %v11097_v28 = vld [vmem:[%s15699_s1 + $0xe4] ss:$8 sps:$4 sm:$0xff]  }
  0x78   : > { %1490 = vmatprep.subr.bf16.mxu0 %v11070_v33  ;;  %v11102_v33 = vld [vmem:[%s15699_s1 + $0xf0] ss:$8 sps:$4 sm:$0xff]  }
  0x79   : > { %2591 = vmatmul.mubr.bf16.gmra.mrb[36].mxu1 %v12438_v35 }
  0x7a   : > { %10511 = vmatpush3.bf16.msra.mxu1 %v11024_v34  ;;  %2598 = vmatprep.mubr.bf16.mxu1 %v12443_v37  ;;  %v11072_v34 = vld [vmem:[%s15699_s1 + $0x50] ss:$8 sps:$4 sm:$0xff]  }
  0x7b   : > { %10512 = vmatprep.subr.bf16.mxu1 %v11025_v36  ;;  %v12556_v36 = vcombine.low %v442_v13, %v447_v14  ;;  %1491 = vmatpush1.bf16.msra.mxu0 %v11072_v34  ;;  %v11088_v13 = vld [vmem:[%s15699_s1 + $0xb4] ss:$8 sps:$4 sm:$0xff]   ;;  %v11090_v14 = vld [vmem:[%s15699_s1 + $0xb0] ss:$8 sps:$4 sm:$0xff]   ;;  %v11105_v34 = vld [vmem:[%s15699_s1 + $0x104] ss:$8 sps:$4 sm:$0xff]  }
  0x7e   : > { %10513 = vmatpush3.bf16.msra.mxu1 %v11026_v39  ;;  %v12558_v39 = vcombine.high %v452_v29, %v457_v31 }
  0x7f   : > { %10514 = vmatprep.subr.bf16.mxu1 %v11029_v41  ;;  %v11073_v41 = vld [vmem:[%s15699_s1 + $0x64] ss:$8 sps:$4 sm:$0xff]  }
  0x80   : > { %1492 = vmatprep.subr.bf16.mxu0 %v11073_v41  ;;  %v11103_v41 = vld [vmem:[%s15699_s1 + $0x100] ss:$8 sps:$4 sm:$0xff]  }
  0x81   : > { %2599 = vmatmul.mubr.bf16.gmra.mrb[40].mxu1 %v12458_v45  ;;  %1493 = vmatpush1.bf16.msra.mxu0 %v11075_v42  ;;  %v11108_v42 = vld [vmem:[%s15699_s1 + $0x114] ss:$8 sps:$4 sm:$0xff]  }
  0x82   : > { %10515 = vmatpush3.bf16.msra.mxu1 %v11030_v44  ;;  %2606 = vmatprep.mubr.bf16.mxu1 %v12463_v49  ;;  %v428_v44 = vld [vmem:[%s12225_s18 + $0x44] sm:$0xf] }
  0x83   : > { %10516 = vmatprep.subr.bf16.mxu1 %v11031_v47  ;;  %v11076_v47 = vld [vmem:[%s15699_s1 + $0x74] ss:$8 sps:$4 sm:$0xff]   ;;  %v12578_v52 = vcombine.low %v423_v43, %v428_v44  ;;  %v11106_v43 = vld [vmem:[%s15699_s1 + $0x110] ss:$8 sps:$4 sm:$0xff]   ;;  %v11111_v44 = vld [vmem:[%s15699_s1 + $0x124] ss:$8 sps:$4 sm:$0xff]  }
  0x84   : > { %1494 = vmatprep.subr.bf16.mxu0 %v11076_v47  ;;  %v11112_v47 = vld [vmem:[%s15699_s1 + $0x130] ss:$8 sps:$4 sm:$0xff]  }
  0x86   : > { %10517 = vmatpush3.bf16.msra.mxu1 %v11032_v50  ;;  %v11078_v50 = vld [vmem:[%s15699_s1 + $0x70] ss:$8 sps:$4 sm:$0xff]  }
  0x87   : > { %10518 = vmatprep.subr.bf16.mxu1 %v11035_v51  ;;  %v12576_v51 = vcombine.low %v452_v29, %v457_v31  ;;  %1495 = vmatpush1.bf16.msra.mxu0 %v11078_v50  ;;  %v11099_v29 = vld [vmem:[%s15699_s1 + $0xe0] ss:$8 sps:$4 sm:$0xff]   ;;  %v11100_v31 = vld [vmem:[%s15699_s1 + $0xf4] ss:$8 sps:$4 sm:$0xff]   ;;  %v11117_v50 = vld [vmem:[%s15699_s1 + $0x144] ss:$8 sps:$4 sm:$0xff]  }
  0x88   : > { %1496 = vmatprep.subr.bf16.mxu0 %v11079_v53  ;;  %v11118_v53 = vld [vmem:[%s15699_s1 + $0x150] ss:$8 sps:$4 sm:$0xff]  }
  0x89   : > { %2607 = vmatmul.mubr.bf16.gmra.mrb[44].mxu1 %v12478_v57 }
  0x8a   : > { %10519 = vmatpush3.bf16.msra.mxu1 %v11036_v55  ;;  %2647 = vmatprep.mubr.bf16.mxu1 %v12483_v59  ;;  %v433_v55 = vld [vmem:[%s12225_s18 + $0x68] sm:$0xf] }
  0x8b   : > { %10520 = vmatprep.subr.bf16.mxu1 %v11037_v58  ;;  %v438_v58 = vld [vmem:[%s12225_s18 + $0x8c] sm:$0xf]  ;;  %1497 = vmatpush1.bf16.msra.mxu0 %v11081_v60 }
  0x8c   : > { %v12599_v3 = vcombine.low %v433_v55, %v438_v58  ;;  %v11123_v55 = vld [vmem:[%s15699_s1 + $0x164] ss:$8 sps:$4 sm:$0xff]   ;;  %v11124_v58 = vld [vmem:[%s15699_s1 + $0x170] ss:$8 sps:$4 sm:$0xff]  }
  0x8d   : > { %v11129_v60 = vld [vmem:[%s15699_s1 + $0x184] ss:$8 sps:$4 sm:$0xff]  }
  0x8e   : > { %10521 = vmatpush3.bf16.msra.mxu1 %v11038_v61  ;;  %v443_v61 = vld [vmem:[%s12225_s18 + $0xb0] sm:$0xf] }
  0x8f   : > { %10554 = vmatprep.subr.bf16.mxu1 %v11041_v1  ;;  %v12601_v4 = vcombine.low %v443_v61, %v448_v63  ;;  %v11130_v61 = vld [vmem:[%s15699_s1 + $0x190] ss:$8 sps:$4 sm:$0xff]   ;;  %v11135_v63 = vld [vmem:[%s15699_s1 + $0x1a4] ss:$8 sps:$4 sm:$0xff]  }
  0x91   : > { %2648 = vmatmul.mubr.bf16.vlgmr.msra.gmra.mrb[48].mxu1 %v12507_v7 }
  0x92   : > { %10555 = vmatpush3.bf16.msra.mxu1 %v11041_v1  ;;  %2655 = vmatprep.mubr.bf16.mxu1 %v12512_v10  ;;  %v11082_v1 = vld [vmem:[%s15699_s1 + $0x94] ss:$8 sps:$4 sm:$0xff]  }
  0x93   : > { %10556 = vmatprep.subr.bf16.mxu1 %v11044_v9  ;;  %1498 = vmatprep.subr.bf16.mxu0 %v11082_v1  ;;  %v11133_v1 = vld [vmem:[%s15699_s1 + $0x1a0] ss:$8 sps:$4 sm:$0xff]  }
  0x94   : > { %1499 = vmatpush1.bf16.msra.mxu0 %v11084_v2  ;;  %v11138_v2 = vld [vmem:[%s15699_s1 + $0x1b4] ss:$8 sps:$4 sm:$0xff]  }
  0x95   : > { %1500 = vmatprep.subr.bf16.mxu0 %v11085_v5  ;;  %v11136_v5 = vld [vmem:[%s15699_s1 + $0x1b0] ss:$8 sps:$4 sm:$0xff]  }
  0x96   : > { %10557 = vmatpush3.bf16.msra.mxu1 %v11044_v9  ;;  %v453_v9 = vld [vmem:[%s12225_s18 + $0xf8] sm:$0xf] }
  0x97   : > { %10558 = vmatprep.subr.bf16.mxu1 %v11047_v16 }
  0x98   : > { %1501 = vmatpush1.bf16.msra.mxu0 %v11087_v12  ;;  %v11142_v12 = vld [vmem:[%s15703_s5 + $0x80] ss:$8 sps:$4 sm:$0xff]  }
  0x99   : > { %2656 = vmatmul.mubr.bf16.gmra.mrb[52].mxu1 %v12533_v20  ;;  %1502 = vmatprep.subr.bf16.mxu0 %v11088_v13  ;;  %v11144_v13 = vld [vmem:[%s15703_s5 + $0x84] ss:$8 sps:$4 sm:$0xff]  }
  0x9a   : > { %2663 = vmatprep.mubr.bf16.mxu1 %v12538_v23  ;;  %10559 = vmatpush3.bf16.msra.mxu1 %v11047_v16  ;;  %v12621_v16 = vcombine.low %v453_v9, %v458_v11  ;;  %v11141_v9 = vld [vmem:[%s15699_s1 + $0x1c4] ss:$8 sps:$4 sm:$0xff]   ;;  %v11139_v11 = vld [vmem:[%s15699_s1 + $0x1c0] ss:$8 sps:$4 sm:$0xff]  }
  0x9b   : > { %10560 = vmatprep.subr.bf16.mxu1 %v11050_v21 }
  0x9c   : > { %1503 = vmatpush1.bf16.msra.mxu0 %v11090_v14  ;;  %v11147_v14 = vld [vmem:[%s15699_s1 + $0x1d4] ss:$8 sps:$4 sm:$0xff]  }
  0x9d   : > { %1504 = vmatprep.subr.bf16.mxu0 %v11091_v18  ;;  %v11145_v18 = vld [vmem:[%s15699_s1 + $0x1d0] ss:$8 sps:$4 sm:$0xff]  }
  0x9e   : > { %10561 = vmatpush3.bf16.msra.mxu1 %v11050_v21  ;;  %v11094_v21 = vld [vmem:[%s15699_s1 + $0xd4] ss:$8 sps:$4 sm:$0xff]  }
  0x9f   : > { %3167 = vmatprep.subr.bf16.mxu1 %v11144_v13 }
  0xa0   : > { %1505 = vmatpush1.bf16.msra.mxu0 %v11093_v19  ;;  %v11150_v19 = vld [vmem:[%s15703_s5 + $0x94] ss:$8 sps:$4 sm:$0xff]  }
  0xa1   : > { %2664 = vmatmul.mubr.bf16.gmra.mrb[56].mxu1 %v12556_v36  ;;  %1506 = vmatprep.subr.bf16.mxu0 %v11094_v21  ;;  %v11148_v21 = vld [vmem:[%s15703_s5 + $0x90] ss:$8 sps:$4 sm:$0xff]  }
  0xa2   : > { %2671 = vmatprep.mubr.bf16.mxu1 %v12558_v39 }
  0xa4   : > { %1507 = vmatpush1.bf16.msra.mxu0 %v11096_v26  ;;  %v11153_v26 = vld [vmem:[%s15699_s1 + $0x1e4] ss:$8 sps:$4 sm:$0xff]  }
  0xa5   : > { %1508 = vmatprep.subr.bf16.mxu0 %v11097_v28  ;;  %v11151_v28 = vld [vmem:[%s15699_s1 + $0x1e0] ss:$8 sps:$4 sm:$0xff]  }
  0xa8   : > { %1509 = vmatpush1.bf16.msra.mxu0 %v11099_v29  ;;  %v11154_v29 = vld [vmem:[%s15703_s5 + $0xa0] ss:$8 sps:$4 sm:$0xff]  }
  0xa9   : > { %2672 = vmatmul.mubr.bf16.gmra.mrb[60].mxu1 %v12576_v51  ;;  %1510 = vmatprep.subr.bf16.mxu0 %v11100_v31  ;;  %v11156_v31 = vld [vmem:[%s15703_s5 + $0xa4] ss:$8 sps:$4 sm:$0xff]  }
  0xaa   : > { %10562 = vmatprep.mubr.msk.bf16.mxu1 %vm1467_vm0, %v12578_v52 }
  0xac   : > { %1511 = vmatpush1.bf16.msra.mxu0 %v11102_v33  ;;  %v12077_v33 = vmov 0  }
  0xad   : > { %1553 = vmatprep.subr.bf16.mxu0 %v11105_v34  ;;  %2764 = vst [vmem:[#allocation2 + $0x1c] sm:$0xf] %v12077_v33  ;;  %2757 = vst [vmem:[#allocation2] sm:$0xf] %v12077_v33  ;;  %v11159_v34 = vld [vmem:[%s15699_s1 + $0x1f4] ss:$8 sps:$4 sm:$0xff]  }
  0xae   : > { %2758 = vst [vmem:[#allocation2 + $0x4] sm:$0xf] %v12077_v33  ;;  %2759 = vst [vmem:[#allocation2 + $0x8] sm:$0xf] %v12077_v33 }
  0xaf   : > { %1513 = vmatmul.mubr.bf16.vlgmr.msra.gmra.mrb[0].mxu0 %v12255_v22  ;;  %v11109_v22 = vld [vmem:[%s15699_s1 + $0x120] ss:$8 sps:$4 sm:$0xff]   ;;  %2760 = vst [vmem:[#allocation2 + $0xc] sm:$0xf] %v12077_v33  ;;  %2761 = vst [vmem:[#allocation2 + $0x10] sm:$0xf] %v12077_v33 }
  0xb0   : > { %1554 = vmatpush1.bf16.msra.mxu0 %v11103_v41  ;;  %1522 = vmatprep.mubr.bf16.mxu0 %v12260_v24  ;;  %v11114_v24 = vld [vmem:[%s15699_s1 + $0x134] ss:$8 sps:$4 sm:$0xff]   ;;  %2762 = vst [vmem:[#allocation2 + $0x14] sm:$0xf] %v12077_v33  ;;  %2763 = vst [vmem:[#allocation2 + $0x18] sm:$0xf] %v12077_v33 }
  0xb1   : > { %10563 = vmatmul.mubr.msk.bf16.vlgmr.msra.gmra.mrb[64].mxu1 %vm1467_vm0, %v12599_v3  ;;  %1555 = vmatprep.subr.bf16.mxu0 %v11108_v42  ;;  %2765 = vst [vmem:[#allocation2 + $0x20] sm:$0xf] %v12077_v33  ;;  %2766 = vst [vmem:[#allocation2 + $0x24] sm:$0xf] %v12077_v33  ;;  %v11157_v42 = vld [vmem:[%s15699_s1 + $0x1f0] ss:$8 sps:$4 sm:$0xff]  }
  0xb2   : > { %10566 = vmatprep.mubr.msk.bf16.mxu1 %vm1467_vm0, %v12601_v4  ;;  %3168 = vmatpush1.bf16.msra.mxu1 %v11142_v12  ;;  %2767 = vst [vmem:[#allocation2 + $0x28] sm:$0xf] %v12077_v33  ;;  %2768 = vst [vmem:[#allocation2 + $0x2c] sm:$0xf] %v12077_v33  ;;  %v11183_v12 = vld [vmem:[%s15699_s1 + $0x234] ss:$8 sps:$4 sm:$0xff]  }
  0xb3   : > { %3169 = vmatprep.subr.bf16.mxu1 %v11150_v19  ;;  %2769 = vst [vmem:[#allocation2 + $0x30] sm:$0xf] %v12077_v33  ;;  %2770 = vst [vmem:[#allocation2 + $0x34] sm:$0xf] %v12077_v33 }
  0xb4   : > { %1556 = vmatpush1.bf16.msra.mxu0 %v11106_v43  ;;  %2771 = vst [vmem:[#allocation2 + $0x38] sm:$0xf] %v12077_v33  ;;  %2772 = vst [vmem:[#allocation2 + $0x3c] sm:$0xf] %v12077_v33 }
  0xb5   : > { %1557 = vmatprep.subr.bf16.mxu0 %v11111_v44  ;;  %2773 = vst [vmem:[#allocation2 + $0x40] sm:$0xf] %v12077_v33  ;;  %2774 = vst [vmem:[#allocation2 + $0x44] sm:$0xf] %v12077_v33  ;;  %v11162_v44 = vld [vmem:[%s15703_s5 + $0xb4] ss:$8 sps:$4 sm:$0xff]  }
  0xb6   : > { %3170 = vmatpush1.bf16.msra.mxu1 %v11148_v21  ;;  %2775 = vst [vmem:[#allocation2 + $0x48] sm:$0xf] %v12077_v33  ;;  %2776 = vst [vmem:[#allocation2 + $0x4c] sm:$0xf] %v12077_v33 }
  0xb7   : > { %1523 = vmatmul.mubr.bf16.gmra.mrb[4].mxu0 %v12275_v30  ;;  %v11115_v30 = vld [vmem:[%s15699_s1 + $0x140] ss:$8 sps:$4 sm:$0xff]   ;;  %3171 = vmatprep.subr.bf16.mxu1 %v11156_v31  ;;  %2777 = vst [vmem:[#allocation2 + $0x50] sm:$0xf] %v12077_v33  ;;  %2778 = vst [vmem:[#allocation2 + $0x54] sm:$0xf] %v12077_v33 }
  0xb8   : > { %1558 = vmatpush1.bf16.msra.mxu0 %v11109_v22  ;;  %1532 = vmatprep.mubr.bf16.mxu0 %v12280_v32  ;;  %v11120_v32 = vld [vmem:[%s15699_s1 + $0x154] ss:$8 sps:$4 sm:$0xff]   ;;  %2779 = vst [vmem:[#allocation2 + $0x58] sm:$0xf] %v12077_v33  ;;  %2780 = vst [vmem:[#allocation2 + $0x5c] sm:$0xf] %v12077_v33 }
  0xb9   : > { %10567 = vmatmul.mubr.msk.bf16.gmra.mrb[68].mxu1 %vm1467_vm0, %v12621_v16  ;;  %1559 = vmatprep.subr.bf16.mxu0 %v11114_v24 }
  0xba   : > { %3199 = vmatprep.mubr.bf16.mxu1 %v12077_v33  ;;  %3172 = vmatpush1.bf16.msra.mxu1 %v11154_v29  ;;  %v11189_v29 = vld [vmem:[%s15699_s1 + $0x244] ss:$8 sps:$4 sm:$0xff]  }
  0xbb   : > { %3173 = vmatprep.subr.bf16.mxu1 %v11162_v44 }
  0xbc   : > { %1560 = vmatpush1.bf16.msra.mxu0 %v11112_v47  ;;  %v11160_v47 = vld [vmem:[%s15703_s5 + $0xb0] ss:$8 sps:$4 sm:$0xff]  }
  0xbd   : > { %1561 = vmatprep.subr.bf16.mxu0 %v11117_v50 }
  0xbe   : > { %3174 = vmatpush1.bf16.msra.mxu1 %v11160_v47 }
  0xbf   : > { %1533 = vmatmul.mubr.bf16.gmra.mrb[8].mxu0 %v12295_v38  ;;  %v11121_v38 = vld [vmem:[%s15699_s1 + $0x160] ss:$8 sps:$4 sm:$0xff]  }
  0xc0   : > { %1562 = vmatpush1.bf16.msra.mxu0 %v11115_v30  ;;  %1542 = vmatprep.mubr.bf16.mxu0 %v12300_v40  ;;  %v11126_v40 = vld [vmem:[%s15699_s1 + $0x174] ss:$8 sps:$4 sm:$0xff]   ;;  %v11165_v30 = vld [vmem:[%s15699_s1 + $0x204] ss:$8 sps:$4 sm:$0xff]  }
  0xc1   : > { %1563 = vmatprep.subr.bf16.mxu0 %v11120_v32 }
  0xc4   : > { %1564 = vmatpush1.bf16.msra.mxu0 %v11118_v53  ;;  %v11163_v53 = vld [vmem:[%s15699_s1 + $0x200] ss:$8 sps:$4 sm:$0xff]  }
  0xc5   : > { %1565 = vmatprep.subr.bf16.mxu0 %v11123_v55  ;;  %v11168_v55 = vld [vmem:[%s15703_s5 + $0xc4] ss:$8 sps:$4 sm:$0xff]  }
  0xc6   : > { %3175 = vmatprep.subr.bf16.mxu1 %v11168_v55  ;;  %v11207_v55 = vld [vmem:[%s15699_s1 + $0x274] ss:$8 sps:$4 sm:$0xff]  }
  0xc7   : > { %1543 = vmatmul.mubr.bf16.gmra.mrb[12].mxu0 %v12315_v46  ;;  %v11127_v46 = vld [vmem:[%s15699_s1 + $0x180] ss:$8 sps:$4 sm:$0xff]  }
  0xc8   : > { %1566 = vmatpush1.bf16.msra.mxu0 %v11121_v38  ;;  %1585 = vmatprep.mubr.bf16.mxu0 %v12320_v48  ;;  %v11132_v48 = vld [vmem:[%s15699_s1 + $0x194] ss:$8 sps:$4 sm:$0xff]   ;;  %v11166_v38 = vld [vmem:[%s15703_s5 + $0xc0] ss:$8 sps:$4 sm:$0xff]  }
  0xc9   : > { %1567 = vmatprep.subr.bf16.mxu0 %v11126_v40  ;;  %v11171_v40 = vld [vmem:[%s15699_s1 + $0x214] ss:$8 sps:$4 sm:$0xff]   ;;  %3176 = vmatpush1.bf16.msra.mxu1 %v11166_v38 }
  0xcc   : > { %1568 = vmatpush1.bf16.msra.mxu0 %v11124_v58 }
  0xcd   : > { %1569 = vmatprep.subr.bf16.mxu0 %v11129_v60  ;;  %v11169_v60 = vld [vmem:[%s15699_s1 + $0x210] ss:$8 sps:$4 sm:$0xff]  }
  0xd0   : > { %1570 = vmatpush1.bf16.msra.mxu0 %v11127_v46 }
  0xd1   : > { %1571 = vmatprep.subr.bf16.mxu0 %v11132_v48 }
  0xd4   : > { %1572 = vmatpush1.bf16.msra.mxu0 %v11130_v61 }
  0xd5   : > { %1573 = vmatprep.subr.bf16.mxu0 %v11135_v63  ;;  %v11172_v63 = vld [vmem:[%s15703_s5 + $0xd0] ss:$8 sps:$4 sm:$0xff]  }
  0xd8   : > { %1574 = vmatpush1.bf16.msra.mxu0 %v11133_v1 }
  0xd9   : > { %1575 = vmatprep.subr.bf16.mxu0 %v11138_v2 }
  0xdc   : > { %1576 = vmatpush1.bf16.msra.mxu0 %v11136_v5  ;;  %v11175_v5 = vld [vmem:[%s15699_s1 + $0x220] ss:$8 sps:$4 sm:$0xff]  }
  0xdd   : > { %1577 = vmatprep.subr.bf16.mxu0 %v11141_v9  ;;  %v11180_v9 = vld [vmem:[%s15703_s5 + $0xe4] ss:$8 sps:$4 sm:$0xff]  }
  0xe0   : > { %1578 = vmatpush1.bf16.msra.mxu0 %v11139_v11  ;;  %v11178_v11 = vld [vmem:[%s15703_s5 + $0xe0] ss:$8 sps:$4 sm:$0xff]  }
  0xe1   : > { %1579 = vmatprep.subr.bf16.mxu0 %v11147_v14  ;;  %v11181_v14 = vld [vmem:[%s15699_s1 + $0x230] ss:$8 sps:$4 sm:$0xff]  }
  0xe4   : > { %1580 = vmatpush1.bf16.msra.mxu0 %v11145_v18 }
  0xe5   : > { %1581 = vmatprep.subr.bf16.mxu0 %v11153_v26  ;;  %v11184_v26 = vld [vmem:[%s15703_s5 + $0xf0] ss:$8 sps:$4 sm:$0xff]  }
  0xe8   : > { %1582 = vmatpush1.bf16.msra.mxu0 %v11151_v28 }
  0xe9   : > { %1583 = vmatprep.subr.bf16.mxu0 %v11159_v34  ;;  %v11192_v34 = vld [vmem:[%s15703_s5 + $0x4] ss:$8 sps:$4 sm:$0xff]  }
  0xec   : > { %1584 = vmatpush1.bf16.msra.mxu0 %v11157_v42 }
  0xed   : > { %1626 = vmatprep.subr.bf16.mxu0 %v11165_v30 }
  0xef   : > { %1586 = vmatmul.mubr.bf16.vlgmr.msra.gmra.mrb[0].mxu0 %v12335_v54  ;;  %v11174_v54 = vld [vmem:[%s15703_s5 + $0xd4] ss:$8 sps:$4 sm:$0xff]  }
  0xf0   : > { %1627 = vmatpush1.bf16.msra.mxu0 %v11163_v53  ;;  %1595 = vmatprep.mubr.bf16.mxu0 %v12340_v56  ;;  %v11177_v56 = vld [vmem:[%s15699_s1 + $0x224] ss:$8 sps:$4 sm:$0xff]   ;;  %v11199_v53 = vld [vmem:[%s15699_s1 + $0x260] ss:$8 sps:$4 sm:$0xff]  }
  0xf1   : > { %1628 = vmatprep.subr.bf16.mxu0 %v11171_v40  ;;  %3177 = vmatprep.subr.bf16.mxu1 %v11174_v54  ;;  %v11205_v40 = vld [vmem:[%s15699_s1 + $0x270] ss:$8 sps:$4 sm:$0xff]  }
  0xf2   : > { %3178 = vmatpush1.bf16.msra.mxu1 %v11172_v63 }
  0xf3   : > { %3179 = vmatprep.subr.bf16.mxu1 %v11180_v9 }
  0xf4   : > { %1629 = vmatpush1.bf16.msra.mxu0 %v11169_v60 }
  0xf5   : > { %1630 = vmatprep.subr.bf16.mxu0 %v11177_v56  ;;  %v11211_v56 = vld [vmem:[%s15699_s1 + $0x280] ss:$8 sps:$4 sm:$0xff]  }
  0xf6   : > { %3180 = vmatpush1.bf16.msra.mxu1 %v11178_v11 }
  0xf7   : > { %1596 = vmatmul.mubr.bf16.gmra.mrb[4].mxu0 %v12355_v62  ;;  %v11186_v62 = vld [vmem:[%s15703_s5 + $0xf4] ss:$8 sps:$4 sm:$0xff]  }
  0xf8   : > { %1631 = vmatpush1.bf16.msra.mxu0 %v11175_v5  ;;  %1605 = vmatprep.mubr.bf16.mxu0 %v12360_v0  ;;  %v11187_v0 = vld [vmem:[%s15699_s1 + $0x240] ss:$8 sps:$4 sm:$0xff]   ;;  %v11219_v5 = vld [vmem:[%s15699_s1 + $0x294] ss:$8 sps:$4 sm:$0xff]  }
  0xf9   : > { %1632 = vmatprep.subr.bf16.mxu0 %v11183_v12  ;;  %3181 = vmatprep.subr.bf16.mxu1 %v11186_v62  ;;  %v11225_v62 = vld [vmem:[%s15699_s1 + $0x2a4] ss:$8 sps:$4 sm:$0xff]  }
  0xfa   : > { %3182 = vmatpush1.bf16.msra.mxu1 %v11184_v26 }
  0xfb   : > { %3336 = vmatprep.subr.bf16.mxu1 %v11192_v34 }
  0xfc   : > { %1633 = vmatpush1.bf16.msra.mxu0 %v11181_v14 }
  0xfd   : > { %1634 = vmatprep.subr.bf16.mxu0 %v11189_v29  ;;  %v11231_v29 = vld [vmem:[%s15699_s1 + $0x2b4] ss:$8 sps:$4 sm:$0xff]  }
  0xff   : > { %1606 = vmatmul.mubr.bf16.gmra.mrb[8].mxu0 %v12375_v6  ;;  %v11201_v6 = vld [vmem:[%s15699_s1 + $0x264] ss:$8 sps:$4 sm:$0xff]  }
 0x100   : > { %1635 = vmatpush1.bf16.msra.mxu0 %v11187_v0  ;;  %1615 = vmatprep.mubr.bf16.mxu0 %v12380_v8  ;;  %v12897_v8 = vld [vmem:[%s15702_s4] ss:$0 sm:$0xff] }
 0x101   : > { %v11223_v0 = vld [vmem:[%s15699_s1 + $0x2a0] ss:$8 sps:$4 sm:$0xff]  }
 0x104   : > { %v10402_v41 = vpop.f32.mrb[0].mxu1 }
 0x105   : > { %v10403_v43 = vpop.f32.mrb[1].mxu1 }
 0x106   : > { %v12799_v22 = vadd.f32 %v10403_v43, %v10402_v41  ;;  %v10405_v24 = vpop.f32.mrb[2].mxu1  ;;  %v11195_v41 = vld [vmem:[%s15699_s1 + $0x254] ss:$8 sps:$4 sm:$0xff]   ;;  %v11193_v43 = vld [vmem:[%s15699_s1 + $0x250] ss:$8 sps:$4 sm:$0xff]  }
 0x107   : > { %v10406_v50 = vpop.f32.mrb[3].mxu1  ;;  %1636 = vmatprep.subr.bf16.mxu0 %v11195_v41  ;;  %1616 = vmatmul.mubr.bf16.gmra.mrb[12].mxu0 %v12398_v15 }
 0x108   : > { %v12807_v32 = vadd.f32 %v10406_v50, %v10405_v24  ;;  %1637 = vmatpush1.bf16.msra.mxu0 %v11193_v43  ;;  %1658 = vmatprep.mubr.bf16.mxu0 %v12403_v17  ;;  %v2455_v15 = vadd.f32 %v12799_v22, %v12897_v8 }
 0x109   : > { %1638 = vmatprep.subr.bf16.mxu0 %v11201_v6 }
 0x10a   : > { %v2458_v17 = vadd.f32 %v12807_v32, %v12897_v8  ;;  %v11217_v32 = vld [vmem:[%s15699_s1 + $0x290] ss:$8 sps:$4 sm:$0xff]  }
 0x10c   : > { %v10408_v58 = vpop.f32.mrb[4].mxu1  ;;  %1639 = vmatpush1.bf16.msra.mxu0 %v11199_v53 }
 0x10d   : > { %v10409_v46 = vpop.f32.mrb[5].mxu1  ;;  %1640 = vmatprep.subr.bf16.mxu0 %v11207_v55 }
 0x10e   : > { %v12829_v48 = vadd.f32 %v10409_v46, %v10408_v58  ;;  %v10411_v61 = vpop.f32.mrb[6].mxu1 }
 0x10f   : > { %v10412_v1 = vpop.f32.mrb[7].mxu1 }
 0x110   : > { %v12837_v2 = vadd.f32 %v10412_v1, %v10411_v61  ;;  %1641 = vmatpush1.bf16.msra.mxu0 %v11205_v40  ;;  %v11213_v61 = vld [vmem:[%s15699_s1 + $0x284] ss:$8 sps:$4 sm:$0xff]   ;;  %v2463_v12 = vadd.f32 %v12829_v48, %v12897_v8 }
 0x111   : > { %1642 = vmatprep.subr.bf16.mxu0 %v11213_v61 }
 0x114   : > { %v10414_v13 = vpop.f32.mrb[8].mxu1  ;;  %1643 = vmatpush1.bf16.msra.mxu0 %v11211_v56 }
 0x115   : > { %v10415_v18 = vpop.f32.mrb[9].mxu1  ;;  %1644 = vmatprep.subr.bf16.mxu0 %v11219_v5  ;;  %v11247_v5 = vld [vmem:[%s15699_s1 + $0x2e0] ss:$8 sps:$4 sm:$0xff]  }
 0x116   : > { %v12859_v19 = vadd.f32 %v10415_v18, %v10414_v13  ;;  %v10417_v21 = vpop.f32.mrb[10].mxu1 }
 0x117   : > { %v10418_v28 = vpop.f32.mrb[11].mxu1 }
 0x118   : > { %v12870_v31 = vadd.f32 %v10418_v28, %v10417_v21  ;;  %1645 = vmatpush1.bf16.msra.mxu0 %v11217_v32  ;;  %v2466_v21 = vadd.f32 %v12837_v2, %v12897_v8  ;;  %v11229_v2 = vld [vmem:[%s15699_s1 + $0x2b0] ss:$8 sps:$4 sm:$0xff]  }
 0x119   : > { %1646 = vmatprep.subr.bf16.mxu0 %v11225_v62 }
 0x11a   : > { %v2474_v6 = vadd.f32 %v12870_v31, %v12897_v8  ;;  %v11243_v31 = vld [vmem:[%s15699_s1 + $0x2d4] ss:$8 sps:$4 sm:$0xff]  }
 0x11c   : > { %v10420_v42 = vpop.f32.mrb[12].mxu1  ;;  %1647 = vmatpush1.bf16.msra.mxu0 %v11223_v0 }
 0x11d   : > { %v10421_v44 = vpop.f32.mrb[13].mxu1  ;;  %1648 = vmatprep.subr.bf16.mxu0 %v11231_v29  ;;  %v11265_v29 = vld [vmem:[%s15699_s1 + $0x310] ss:$8 sps:$4 sm:$0xff]  }
 0x11e   : > { %v12883_v24 = vadd.f32 %v10421_v44, %v10420_v42  ;;  %v10423_v47 = vpop.f32.mrb[14].mxu1  ;;  %v2471_v42 = vadd.f32 %v12859_v19, %v12897_v8 }
 0x11f   : > { %v10424_v50 = vpop.f32.mrb[15].mxu1 }
 0x120   : > { %v12888_v30 = vadd.f32 %v10424_v50, %v10423_v47  ;;  %1649 = vmatpush1.bf16.msra.mxu0 %v11229_v2  ;;  %v11237_v50 = vld [vmem:[%s15699_s1 + $0x2c4] ss:$8 sps:$4 sm:$0xff]  }
 0x121   : > { %1650 = vmatprep.subr.bf16.mxu0 %v11237_v50  ;;  %v11277_v50 = vld [vmem:[%s15699_s1 + $0x330] ss:$8 sps:$4 sm:$0xff]  }
 0x124   : > { %v10442_v38 = vpop.f32.mrb[16].mxu1 }
 0x125   : > { %v10443_v58 = vpop.f32.mrb[17].mxu1 }
 0x126   : > { %v10444_v60 = vadd.f32 %v10443_v58, %v10442_v38  ;;  %v10445_v46 = vpop.f32.mrb[18].mxu1  ;;  %v11235_v38 = vld [vmem:[%s15699_s1 + $0x2c0] ss:$8 sps:$4 sm:$0xff]   ;;  %v11241_v58 = vld [vmem:[%s15699_s1 + $0x2d0] ss:$8 sps:$4 sm:$0xff]  }
 0x127   : > { %v10446_v54 = vpop.f32.mrb[19].mxu1  ;;  %1651 = vmatpush1.bf16.msra.mxu0 %v11235_v38 }
 0x128   : > { %v12913_v63 = vadd.f32 %v10444_v60, %v2455_v15  ;;  %v10447_v1 = vadd.f32 %v10446_v54, %v10445_v46  ;;  %v2479_v60 = vadd.f32 %v12883_v24, %v12897_v8  ;;  %1652 = vmatprep.subr.bf16.mxu0 %v11243_v31  ;;  %v11285_v31 = vld [vmem:[%s15699_s1 + $0x344] ss:$8 sps:$4 sm:$0xff]  }
 0x12a   : > { %v12918_v22 = vadd.f32 %v10447_v1, %v2458_v17  ;;  %v2482_v17 = vadd.f32 %v12888_v30, %v12897_v8  ;;  %v11253_v30 = vld [vmem:[%s15699_s1 + $0x2f0] ss:$8 sps:$4 sm:$0xff]   ;;  %v11255_v8 = vld [vmem:[%s15699_s1 + $0x2f4] ss:$8 sps:$4 sm:$0xff]  }
 0x12b   : > { %1653 = vmatpush1.bf16.msra.mxu0 %v11241_v58 }
 0x12c   : > { %v10448_v9 = vpop.f32.mrb[20].mxu1 }
 0x12d   : > { %v10449_v11 = vpop.f32.mrb[21].mxu1 }
 0x12e   : > { %v10450_v13 = vadd.f32 %v10449_v11, %v10448_v9  ;;  %v10451_v14 = vpop.f32.mrb[22].mxu1  ;;  %v11249_v9 = vld [vmem:[%s15699_s1 + $0x2e4] ss:$8 sps:$4 sm:$0xff]  }
 0x12f   : > { %v10452_v18 = vpop.f32.mrb[23].mxu1  ;;  %1654 = vmatprep.subr.bf16.mxu0 %v11249_v9 }
 0x130   : > { %v12933_v26 = vadd.f32 %v10450_v13, %v2463_v12  ;;  %v10453_v28 = vadd.f32 %v10452_v18, %v10451_v14  ;;  %1655 = vmatpush1.bf16.msra.mxu0 %v11247_v5  ;;  %v11297_v5 = vld [vmem:[%s15699_s1 + $0x364] ss:$8 sps:$4 sm:$0xff]  }
 0x131   : > { %1656 = vmatprep.subr.bf16.mxu0 %v11255_v8 }
 0x132   : > { %v12938_v48 = vadd.f32 %v10453_v28, %v2466_v21  ;;  %v11259_v21 = vld [vmem:[%s15699_s1 + $0x300] ss:$8 sps:$4 sm:$0xff]   ;;  %v11261_v28 = vld [vmem:[%s15699_s1 + $0x304] ss:$8 sps:$4 sm:$0xff]  }
 0x134   : > { %v10454_v34 = vpop.f32.mrb[24].mxu1  ;;  %1657 = vmatpush1.bf16.msra.mxu0 %v11253_v30  ;;  %v11303_v30 = vld [vmem:[%s15699_s1 + $0x374] ss:$8 sps:$4 sm:$0xff]  }
 0x135   : > { %v10455_v41 = vpop.f32.mrb[25].mxu1  ;;  %1699 = vmatprep.subr.bf16.mxu0 %v11261_v28  ;;  %v11313_v28 = vld [vmem:[%s15699_s1 + $0x390] ss:$8 sps:$4 sm:$0xff]  }
 0x136   : > { %v10456_v43 = vadd.f32 %v10455_v41, %v10454_v34  ;;  %v10457_v44 = vpop.f32.mrb[26].mxu1  ;;  %v11267_v34 = vld [vmem:[%s15699_s1 + $0x314] ss:$8 sps:$4 sm:$0xff]  }
 0x137   : > { %v10458_v47 = vpop.f32.mrb[27].mxu1  ;;  %1659 = vmatmul.mubr.bf16.vlgmr.msra.gmra.mrb[0].mxu0 %v12418_v25 }
 0x138   : > { %v12953_v53 = vadd.f32 %v10456_v43, %v2471_v42  ;;  %v10459_v55 = vadd.f32 %v10458_v47, %v10457_v44  ;;  %1700 = vmatpush1.bf16.msra.mxu0 %v11259_v21  ;;  %1668 = vmatprep.mubr.bf16.mxu0 %v12423_v27  ;;  %v11271_v27 = vld [vmem:[%s15699_s1 + $0x320] ss:$8 sps:$4 sm:$0xff]   ;;  %v11273_v44 = vld [vmem:[%s15699_s1 + $0x324] ss:$8 sps:$4 sm:$0xff]  }
 0x139   : > { %1701 = vmatprep.subr.bf16.mxu0 %v11267_v34 }
 0x13a   : > { %v12958_v19 = vadd.f32 %v10459_v55, %v2474_v6  ;;  %v11279_v6 = vld [vmem:[%s15699_s1 + $0x334] ss:$8 sps:$4 sm:$0xff]  }
 0x13c   : > { %v10460_v40 = vpop.f32.mrb[28].mxu1  ;;  %1702 = vmatpush1.bf16.msra.mxu0 %v11265_v29 }
 0x13d   : > { %v10461_v15 = vpop.f32.mrb[29].mxu1  ;;  %1703 = vmatprep.subr.bf16.mxu0 %v11273_v44  ;;  %v11325_v44 = vld [vmem:[%s15699_s1 + $0x3b0] ss:$8 sps:$4 sm:$0xff]  }
 0x13e   : > { %v10462_v46 = vadd.f32 %v10461_v15, %v10460_v40  ;;  %v10463_v54 = vpop.f32.mrb[30].mxu1 }
 0x13f   : > { %v10464_v61 = vpop.f32.mrb[31].mxu1  ;;  %1669 = vmatmul.mubr.bf16.gmra.mrb[4].mxu0 %v12438_v35 }
 0x140   : > { %v12970_v1 = vadd.f32 %v10462_v46, %v2479_v60  ;;  %v10465_v56 = vadd.f32 %v10464_v61, %v10463_v54  ;;  %1704 = vmatpush1.bf16.msra.mxu0 %v11271_v27  ;;  %1678 = vmatprep.mubr.bf16.mxu0 %v12443_v37  ;;  %v11283_v37 = vld [vmem:[%s15699_s1 + $0x340] ss:$8 sps:$4 sm:$0xff]   ;;  %v11289_v60 = vld [vmem:[%s15699_s1 + $0x350] ss:$8 sps:$4 sm:$0xff]   ;;  %v11291_v46 = vld [vmem:[%s15699_s1 + $0x354] ss:$8 sps:$4 sm:$0xff]  }
 0x141   : > { %1705 = vmatprep.subr.bf16.mxu0 %v11279_v6 }
 0x142   : > { %v12978_v24 = vadd.f32 %v10465_v56, %v2482_v17 }
 0x144   : > { %v10482_v32 = vpop.f32.mrb[32].mxu1  ;;  %1706 = vmatpush1.bf16.msra.mxu0 %v11277_v50 }
 0x145   : > { %v10483_v11 = vpop.f32.mrb[33].mxu1  ;;  %1707 = vmatprep.subr.bf16.mxu0 %v11285_v31  ;;  %v11338_v31 = vld [vmem:[%s15699_s1 + $0x3d0] ss:$8 sps:$4 sm:$0xff]  }
 0x146   : > { %v10484_v12 = vadd.f32 %v10483_v11, %v10482_v32  ;;  %v10485_v13 = vpop.f32.mrb[34].mxu1  ;;  %v11301_v32 = vld [vmem:[%s15699_s1 + $0x370] ss:$8 sps:$4 sm:$0xff]  }
 0x147   : > { %v10486_v14 = vpop.f32.mrb[35].mxu1  ;;  %1679 = vmatmul.mubr.bf16.gmra.mrb[8].mxu0 %v12458_v45 }
 0x148   : > { %v12987_v18 = vadd.f32 %v10484_v12, %v12913_v63  ;;  %v10487_v62 = vadd.f32 %v10486_v14, %v10485_v13  ;;  %1708 = vmatpush1.bf16.msra.mxu0 %v11283_v37  ;;  %1688 = vmatprep.mubr.bf16.mxu0 %v12463_v49  ;;  %v11295_v49 = vld [vmem:[%s15699_s1 + $0x360] ss:$8 sps:$4 sm:$0xff]   ;;  %v11309_v14 = vld [vmem:[%s15699_s1 + $0x384] ss:$8 sps:$4 sm:$0xff]  }
 0x149   : > { %1709 = vmatprep.subr.bf16.mxu0 %v11291_v46 }
 0x14a   : > { %v12996_v0 = vadd.f32 %v10487_v62, %v12918_v22 }
 0x14c   : > { %v10488_v63 = vpop.f32.mrb[36].mxu1  ;;  %1710 = vmatpush1.bf16.msra.mxu0 %v11289_v60 }
 0x14d   : > { %v10489_v2 = vpop.f32.mrb[37].mxu1  ;;  %1711 = vmatprep.subr.bf16.mxu0 %v11297_v5  ;;  %v11351_v5 = vld [vmem:[%s15699_s1 + $0x3f0] ss:$8 sps:$4 sm:$0xff]  }
 0x14e   : > { %v10490_v41 = vadd.f32 %v10489_v2, %v10488_v63  ;;  %v10491_v42 = vpop.f32.mrb[38].mxu1 }
 0x14f   : > { %v10492_v22 = vpop.f32.mrb[39].mxu1  ;;  %1689 = vmatmul.mubr.bf16.gmra.mrb[12].mxu0 %v12478_v57 }
 0x150   : > { %v13007_v25 = vadd.f32 %v10490_v41, %v12933_v26  ;;  %v10493_v43 = vadd.f32 %v10492_v22, %v10491_v42  ;;  %1712 = vmatpush1.bf16.msra.mxu0 %v11295_v49  ;;  %1731 = vmatprep.mubr.bf16.mxu0 %v12483_v59  ;;  %v11307_v59 = vld [vmem:[%s15699_s1 + $0x380] ss:$8 sps:$4 sm:$0xff]   ;;  %v11321_v22 = vld [vmem:[%s15699_s1 + $0x3a4] ss:$8 sps:$4 sm:$0xff]  }
 0x151   : > { %1713 = vmatprep.subr.bf16.mxu0 %v11303_v30  ;;  %v11319_v42 = vld [vmem:[%s15699_s1 + $0x3a0] ss:$8 sps:$4 sm:$0xff]  }
 0x152   : > { %v13016_v47 = vadd.f32 %v10493_v43, %v12938_v48 }
 0x154   : > { %v10494_v26 = vpop.f32.mrb[40].mxu1  ;;  %1714 = vmatpush1.bf16.msra.mxu0 %v11301_v32 }
 0x155   : > { %v10495_v55 = vpop.f32.mrb[41].mxu1  ;;  %1715 = vmatprep.subr.bf16.mxu0 %v11309_v14 }
 0x156   : > { %v10496_v38 = vadd.f32 %v10495_v55, %v10494_v26  ;;  %v10497_v40 = vpop.f32.mrb[42].mxu1 }
 0x157   : > { %v10498_v48 = vpop.f32.mrb[43].mxu1 }
 0x158   : > { %v13027_v35 = vadd.f32 %v10496_v38, %v12953_v53  ;;  %v10499_v58 = vadd.f32 %v10498_v48, %v10497_v40  ;;  %1716 = vmatpush1.bf16.msra.mxu0 %v11307_v59  ;;  %v11331_v40 = vld [vmem:[%s15699_s1 + $0x3c0] ss:$8 sps:$4 sm:$0xff]   ;;  %v11333_v48 = vld [vmem:[%s15699_s1 + $0x3c4] ss:$8 sps:$4 sm:$0xff]  }
 0x15a   : > { %v13036_v15 = vadd.f32 %v10499_v58, %v12958_v19 }
 0x15c   : > { %v10500_v53 = vpop.f32.mrb[44].mxu1 }
 0x15d   : > { %v10501_v54 = vpop.f32.mrb[45].mxu1 }
 0x15e   : > { %v10502_v61 = vadd.f32 %v10501_v54, %v10500_v53  ;;  %v10503_v17 = vpop.f32.mrb[46].mxu1 }
 0x15f   : > { %v10504_v19 = vpop.f32.mrb[47].mxu1 }
 0x160   : > { %v13047_v45 = vadd.f32 %v10502_v61, %v12970_v1  ;;  %v10505_v56 = vadd.f32 %v10504_v19, %v10503_v17  ;;  %v11344_v17 = vld [vmem:[%s15699_s1 + $0x3e0] ss:$8 sps:$4 sm:$0xff]   ;;  %v11346_v19 = vld [vmem:[%s15699_s1 + $0x3e4] ss:$8 sps:$4 sm:$0xff]  }
 0x162   : > { %v13056_v9 = vadd.f32 %v10505_v56, %v12978_v24 }
 0x164   : > { %v10522_v1 = vpop.f32.mrb[48].mxu1 }
 0x165   : > { %v10523_v8 = vpop.f32.mrb[49].mxu1 }
 0x166   : > { %v10524_v11 = vadd.f32 %v10523_v8, %v10522_v1  ;;  %v10525_v12 = vpop.f32.mrb[50].mxu1 }
 0x167   : > { %v10526_v24 = vpop.f32.mrb[51].mxu1 }
 0x168   : > { %v10527_v13 = vadd.f32 %v10526_v24, %v10525_v12  ;;  %v2650_v57 = vadd.f32 %v10524_v11, %v12987_v18  ;;  %v11315_v18 = vld [vmem:[%s15699_s1 + $0x394] ss:$8 sps:$4 sm:$0xff]  }
 0x169   : > { %1717 = vmatprep.subr.bf16.mxu0 %v11315_v18 }
 0x16a   : > { %v13074_v62 = vadd.f32 %v10527_v13, %v12996_v0  ;;  %1718 = vmatpush1.bf16.msra.mxu0 %v11313_v28 }
 0x16b   : > { %1719 = vmatprep.subr.bf16.mxu0 %v11321_v22  ;;  %v13127_v22 = vld [vmem:[#allocation2] sm:$0x8] }
 0x16c   : > { %v10528_v21 = vpop.f32.mrb[52].mxu1 }
 0x16d   : > { %v10529_v63 = vpop.f32.mrb[53].mxu1 }
 0x16e   : > { %v10530_v29 = vadd.f32 %v10529_v63, %v10528_v21  ;;  %v10531_v34 = vpop.f32.mrb[54].mxu1  ;;  %1720 = vmatpush1.bf16.msra.mxu0 %v11319_v42 }
 0x16f   : > { %v10532_v2 = vpop.f32.mrb[55].mxu1 }
 0x170   : > { %v10533_v41 = vadd.f32 %v10532_v2, %v10531_v34  ;;  %v2658_v0 = vadd.f32 %v10530_v29, %v13007_v25  ;;  %v11327_v25 = vld [vmem:[%s15699_s1 + $0x3b4] ss:$8 sps:$4 sm:$0xff]  }
 0x171   : > { %1721 = vmatprep.subr.bf16.mxu0 %v11327_v25 }
 0x172   : > { %v2661_v43 = vadd.f32 %v10533_v41, %v13016_v47  ;;  %1722 = vmatpush1.bf16.msra.mxu0 %v11325_v44 }
 0x173   : > { %1723 = vmatprep.subr.bf16.mxu0 %v11333_v48 }
 0x174   : > { %v10534_v27 = vpop.f32.mrb[56].mxu1 }
 0x175   : > { %v10535_v26 = vpop.f32.mrb[57].mxu1 }
 0x176   : > { %v10536_v50 = vadd.f32 %v10535_v26, %v10534_v27  ;;  %v10537_v6 = vpop.f32.mrb[58].mxu1  ;;  %1724 = vmatpush1.bf16.msra.mxu0 %v11331_v40 }
 0x177   : > { %v10538_v55 = vpop.f32.mrb[59].mxu1 }
 0x178   : > { %v10539_v38 = vadd.f32 %v10538_v55, %v10537_v6  ;;  %v2666_v47 = vadd.f32 %v10536_v50, %v13027_v35  ;;  %v11340_v35 = vld [vmem:[%s15699_s1 + $0x3d4] ss:$8 sps:$4 sm:$0xff]  }
 0x179   : > { %1725 = vmatprep.subr.bf16.mxu0 %v11340_v35 }
 0x17a   : > { %v2669_v58 = vadd.f32 %v10539_v38, %v13036_v15  ;;  %1726 = vmatpush1.bf16.msra.mxu0 %v11338_v31  ;;  %v9712_v38 = vrot.slane %v13127_v22, 11 }
 0x17b   : > { %1727 = vmatprep.subr.bf16.mxu0 %v11346_v19  ;;  %v11196_v19 = vld [vmem:[%s15703_s5 + $0x10] ss:$8 sps:$4 sm:$0xff]  }
 0x17c   : > { %v10540_v37 = vpop.f32.mrb[60].mxu1 }
 0x17d   : > { %v10541_v53 = vpop.f32.mrb[61].mxu1 }
 0x17e   : > { %v10542_v60 = vadd.f32 %v10541_v53, %v10540_v37  ;;  %v10543_v46 = vpop.f32.mrb[62].mxu1  ;;  %1728 = vmatpush1.bf16.msra.mxu0 %v11344_v17  ;;  %v11190_v53 = vld [vmem:[%s15703_s5] ss:$8 sps:$4 sm:$0xff]  }
 0x17f   : > { %v10544_v54 = vpop.f32.mrb[63].mxu1 }
 0x180   : > { %v10545_v61 = vadd.f32 %v10544_v54, %v10543_v46  ;;  %v2674_v15 = vadd.f32 %v10542_v60, %v13047_v45  ;;  %v11353_v45 = vld [vmem:[%s15699_s1 + $0x3f4] ss:$8 sps:$4 sm:$0xff]  }
 0x181   : > { %1729 = vmatprep.subr.bf16.mxu0 %v11353_v45  ;;  %v11198_v46 = vld [vmem:[%s15703_s5 + $0x14] ss:$8 sps:$4 sm:$0xff]   ;;  %v2817_v45 = vld [vmem:[#allocation2] sm:$0xc] }
 0x182   : > { %v2677_v56 = vadd.f32 %v10545_v61, %v13056_v9  ;;  %1730 = vmatpush1.bf16.msra.mxu0 %v11351_v5  ;;  %v13161_v61 = vld [vmem:[#allocation2 + $0x18] sm:$0x8]  ;;  %v11204_v5 = vld [vmem:[%s15703_s5 + $0x24] ss:$8 sps:$4 sm:$0xff]  }
 0x184   : > { %v10564_v49 = vpop.f32.mrb[64].mxu1 }
 0x185   : > { %v2723_v1 = vadd.f32 %v10564_v49, %v2658_v0  ;;  %v2714_v32 = vpop.f32.mrb[65].mxu1  ;;  %1732 = vmatmul.mubr.bf16.vlgmr.msra.gmra.mrb[0].mxu0 %v12507_v7 }
 0x186   : > { %v2715_v30 = vadd.f32 %v2714_v32, %v2650_v57  ;;  %v10565_v8 = vpop.f32.mrb[66].mxu1  ;;  %1741 = vmatprep.mubr.bf16.mxu0 %v12512_v10  ;;  %v11202_v32 = vld [vmem:[%s15703_s5 + $0x20] ss:$8 sps:$4 sm:$0xff]  }
 0x187   : > { %v2747_v11 = vmax.f32 %v2723_v1, 0.0  ;;  %v2726_v12 = vadd.f32 %v10565_v8, %v2661_v43  ;;  %v2717_v24 = vpop.f32.mrb[67].mxu1  ;;  %v13129_v43 = vld [vmem:[#allocation2 + $0xc] sm:$0x8]  ;;  %v13185_v8 = vld [vmem:[#allocation2 + $0x30] sm:$0x8] }
 0x188   : > { %v2745_v9 = vmax.f32 %v2715_v30, 0.0  ;;  %v2718_v13 = vadd.f32 %v2717_v24, %v13074_v62  ;;  %v9713_v40 = vrot.slane %v13129_v43, 11  ;;  %v2819_v1 = vld [vmem:[#allocation2 + $0xc] sm:$0xc] }
 0x189   : > { %v10372_v59 = vpack.c.bf16 %v2747_v11, %v2747_v11  ;;  %v2748_v14 = vmax.f32 %v2726_v12, 0.0  ;;  %v11371_v12 = vld [vmem:[%s15699_s1 + $0x400] ss:$8 sps:$4 sm:$0xff]   ;;  %v11373_v24 = vld [vmem:[%s15699_s1 + $0x404] ss:$8 sps:$4 sm:$0xff]  }
 0x18a   : > { %v10370_v21 = vpack.c.bf16 %v2745_v9, %v2745_v9  ;;  %v2746_v28 = vmax.f32 %v2718_v13, 0.0  ;;  %v11210_v13 = vld [vmem:[%s15703_s5 + $0x34] ss:$8 sps:$4 sm:$0xff]   ;;  %1772 = vmatprep.subr.bf16.mxu0 %v11373_v24 }
 0x18b   : > { %2811 = vst [vmem:[#allocation2 + $0x1c] sm:$0xf] %v10372_v59  ;;  %v10373_v18 = vpack.c.bf16 %v2748_v14, %v2748_v14  ;;  %1773 = vmatpush1.bf16.msra.mxu0 %v11371_v12 }
 0x18c   : > { %2809 = vst [vmem:[#allocation2 + $0x4] sm:$0xf] %v10370_v21  ;;  %v10371_v57 = vpack.c.bf16 %v2746_v28, %v2746_v28  ;;  %v10568_v63 = vpop.f32.mrb[68].mxu1  ;;  %v11208_v28 = vld [vmem:[%s15703_s5 + $0x30] ss:$8 sps:$4 sm:$0xff]  }
 0x18d   : > { %2812 = vst [vmem:[#allocation2 + $0x28] sm:$0xf] %v10373_v18  ;;  %v2739_v29 = vadd.f32 %v10568_v63, %v2674_v15  ;;  %v2730_v34 = vpop.f32.mrb[69].mxu1  ;;  %1742 = vmatmul.mubr.bf16.gmra.mrb[4].mxu0 %v12533_v20  ;;  %v2837_v18 = vshrl.u32 %v2817_v45, 16  ;;  %v9716_v63 = vrot.slane %v13185_v8, 11 }
 0x18e   : > { %2810 = vst [vmem:[#allocation2 + $0x10] sm:$0xf] %v10371_v57  ;;  %v2731_v2 = vadd.f32 %v2730_v34, %v2666_v47  ;;  %v10569_v41 = vpop.f32.mrb[70].mxu1  ;;  %1751 = vmatprep.mubr.bf16.mxu0 %v12538_v23  ;;  %v13147_v23 = vld [vmem:[#allocation2 + $0x24] sm:$0x8]  ;;  %v2855_v57 = vshrl.u32 %v2819_v1, 16 }
 0x18f   : > { %v2751_v62 = vmax.f32 %v2739_v29, 0.0  ;;  %v2742_v0 = vadd.f32 %v10569_v41, %v2677_v56  ;;  %v2733_v42 = vpop.f32.mrb[71].mxu1  ;;  %v9715_v15 = vrot.slane %v13147_v23, 11  ;;  %v9714_v56 = vrot.slane %v13161_v61, 11  ;;  %v11377_v34 = vld [vmem:[%s15699_s1 + $0x410] ss:$8 sps:$4 sm:$0xff]  }
 0x190   : > { %v2749_v7 = vmax.f32 %v2731_v2, 0.0  ;;  %v2734_v27 = vadd.f32 %v2733_v42, %v2669_v58  ;;  %v11216_v2 = vld [vmem:[%s15703_s5 + $0x44] ss:$8 sps:$4 sm:$0xff]   ;;  %v2858_v41 = vshll.u32 %v2819_v1, 16  ;;  %v13223_v42 = vld [vmem:[#allocation2 + $0x54] sm:$0x8] }
 0x191   : > { %v10376_v44 = vpack.c.bf16 %v2751_v62, %v2751_v62  ;;  %v2752_v10 = vmax.f32 %v2742_v0, 0.0  ;;  %v11228_v1 = vld [vmem:[%s15703_s5 + $0x64] ss:$8 sps:$4 sm:$0xff]  }
 0x192   : > { %v10374_v25 = vpack.c.bf16 %v2749_v7, %v2749_v7  ;;  %v2750_v26 = vmax.f32 %v2734_v27, 0.0  ;;  %v13159_v54 = vld [vmem:[#allocation2 + $0x1c] sm:$0x7]  ;;  %v2840_v7 = vshll.u32 %v2817_v45, 16  ;;  %v13225_v27 = vrot.slane %v2837_v18, 6 }
 0x193   : > { %2815 = vst [vmem:[#allocation2 + $0x4c] sm:$0xf] %v10376_v44  ;;  %v10377_v50 = vpack.c.bf16 %v2752_v10, %v2752_v10  ;;  %v13132_v6 = vld [vmem:[#allocation2 + $0x4] sm:$0x7]  ;;  %v3033_v49 = vrot.slane %v13159_v54, 7 }
 0x194   : > { %2813 = vst [vmem:[#allocation2 + $0x34] sm:$0xf] %v10374_v25  ;;  %v10375_v55 = vpack.c.bf16 %v2750_v26, %v2750_v26  ;;  %v3025_v47 = vrot.slane %v13132_v6, 7  ;;  %v13145_v37 = vld [vmem:[#allocation2 + $0x28] sm:$0x7]  ;;  %v2849_v45 = vshll.u32 %v13132_v6, 16 }
 0x195   : > { %2816 = vst [vmem:[#allocation2 + $0x58] sm:$0xf] %v10377_v50  ;;  %v13138_v48 = vld [vmem:[#allocation2 + $0x10] sm:$0x7]  ;;  %v3037_v17 = vrot.slane %v13145_v37, 7  ;;  %1752 = vmatmul.mubr.bf16.gmra.mrb[8].mxu0 %v12556_v36  ;;  %v3034_v11 = vsel %vm13140_vm3, %v9714_v56, %v3033_v49 }
 0x196   : > { %2814 = vst [vmem:[#allocation2 + $0x40] sm:$0xf] %v10375_v55  ;;  %v3029_v20 = vrot.slane %v13138_v48, 7  ;;  %v3026_v31 = vsel %vm13140_vm3, %v9712_v38, %v3025_v47  ;;  %1761 = vmatprep.mubr.bf16.mxu0 %v12558_v39  ;;  %v13178_v39 = vld [vmem:[#allocation2 + $0x3c] sm:$0x8]  ;;  %v2857_v55 = vrot.slane %v2855_v57, 6 }
 0x197   : > { %v3038_v36 = vsel %vm13140_vm3, %v9715_v15, %v3037_v17  ;;  %v9717_v14 = vrot.slane %v13178_v39, 11  ;;  %v11383_v44 = vld [vmem:[%s15699_s1 + $0x420] ss:$8 sps:$4 sm:$0xff]   ;;  %v11385_v10 = vld [vmem:[%s15699_s1 + $0x424] ss:$8 sps:$4 sm:$0xff]   ;;  %v2842_v17 = vrot.slane %v2840_v7, 7 }
 0x198   : > { %v3030_v35 = vsel %vm13140_vm3, %v9713_v40, %v3029_v20  ;;  %v9721_v9 = vcombine.low %v3034_v11, %v3038_v36  ;;  %v11214_v26 = vld [vmem:[%s15703_s5 + $0x40] ss:$8 sps:$4 sm:$0xff]   ;;  %v2823_v38 = vld [vmem:[#allocation2 + $0x24] sm:$0xc]  ;;  %v11222_v40 = vld [vmem:[%s15703_s5 + $0x54] ss:$8 sps:$4 sm:$0xff]  }
 0x199   : > { %v9720_v60 = vcombine.low %v3026_v31, %v3030_v35  ;;  %v13238_v50 = vld [vmem:[#allocation2 + $0x48] sm:$0x8]  ;;  %v2860_v31 = vrot.slane %v2858_v41, 7  ;;  %v9719_v35 = vrot.slane %v13223_v42, 11  ;;  %v2821_v15 = vld [vmem:[#allocation2 + $0x18] sm:$0xc]  ;;  %v2843_v18 = vor.u32 %v2842_v17, %v13225_v27 }
 0x19a   : > { %v13243_v20 = vld [vmem:[#allocation2 + $0x4c] sm:$0x7]  ;;  %v11391_v56 = vld [vmem:[%s15699_s1 + $0x434] ss:$8 sps:$4 sm:$0xff]   ;;  %v11220_v49 = vld [vmem:[%s15703_s5 + $0x50] ss:$8 sps:$4 sm:$0xff]  }
 0x19b   : > { %3200 = vmatmul.mubr.bf16.vlgmr.msra.gmra.mrb[72].mxu1 %v9720_v60  ;;  %v13198_v59 = vld [vmem:[#allocation2 + $0x34] sm:$0x7]  ;;  %v2864_v60 = vshrl.u32 %v13138_v48, 16  ;;  %v2846_v36 = vshrl.u32 %v13132_v6, 16  ;;  %v2891_v11 = vshrl.u32 %v2823_v38, 16  ;;  %v2903_v7 = vshll.u32 %v13145_v37, 16 }
 0x19c   : > { %3337 = vmatpush1.bf16.msra.mxu1 %v11190_v53  ;;  %3209 = vmatprep.mubr.bf16.mxu1 %v12077_v33  ;;  %v3041_v29 = vrot.slane %v13198_v59, 7  ;;  %v13221_v0 = vld [vmem:[#allocation2 + $0x58] sm:$0x7] }
 0x19d   : > { %3338 = vmatprep.subr.bf16.mxu1 %v11198_v46  ;;  %v13183_v30 = vld [vmem:[#allocation2 + $0x40] sm:$0x7]  ;;  %1762 = vmatmul.mubr.bf16.gmra.mrb[12].mxu0 %v12576_v51  ;;  %v11379_v51 = vld [vmem:[%s15699_s1 + $0x414] ss:$8 sps:$4 sm:$0xff]   ;;  %v3053_v53 = vrot.slane %v13221_v0, 7  ;;  %v2867_v46 = vshll.u32 %v13138_v48, 16 }
 0x19e   : > { %v3045_v21 = vrot.slane %v13183_v30, 7  ;;  %1804 = vmatprep.mubr.bf16.mxu0 %v12077_v33  ;;  %1774 = vmatprep.subr.bf16.mxu0 %v11379_v51  ;;  %v3042_v25 = vsel %vm13140_vm3, %v9716_v63, %v3041_v29  ;;  %v9718_v48 = vrot.slane %v13238_v50, 11  ;;  %v2866_v24 = vrot.slane %v2864_v60, 6 }
 0x19f   : > { %1775 = vmatpush1.bf16.msra.mxu0 %v11377_v34  ;;  %v3054_v12 = vsel %vm13140_vm3, %v9719_v35, %v3053_v53  ;;  %v2848_v57 = vrot.slane %v2846_v36, 6  ;;  %v2851_v63 = vrot.slane %v2849_v45, 7  ;;  %v11234_v34 = vld [vmem:[%s15703_s5 + $0x74] ss:$8 sps:$4 sm:$0xff]  }
 0x1a0   : > { %3339 = vmatpush1.bf16.msra.mxu1 %v11196_v19  ;;  %v3046_v62 = vsel %vm13140_vm3, %v9717_v14, %v3045_v21  ;;  %1776 = vmatprep.subr.bf16.mxu0 %v11385_v10  ;;  %v11389_v19 = vld [vmem:[%s15699_s1 + $0x430] ss:$8 sps:$4 sm:$0xff]   ;;  %v2873_v14 = vshrl.u32 %v2821_v15, 16  ;;  %v2876_v21 = vshll.u32 %v2821_v15, 16  ;;  %v2905_v15 = vrot.slane %v2903_v7, 7 }
 0x1a1   : > { %3340 = vmatprep.subr.bf16.mxu1 %v11204_v5  ;;  %v9722_v47 = vcombine.low %v3042_v25, %v3046_v62  ;;  %v3049_v5 = vrot.slane %v13243_v20, 7  ;;  %v2900_v62 = vshrl.u32 %v13145_v37, 16  ;;  %v2825_v25 = vld [vmem:[#allocation2 + $0x30] sm:$0xc]  ;;  %v2882_v37 = vshrl.u32 %v13159_v54, 16 }
 0x1a2   : > { %v2875_v27 = vrot.slane %v2873_v14, 6  ;;  %v2878_v10 = vrot.slane %v2876_v21, 7  ;;  %v2909_v17 = vshrl.u32 %v2825_v25, 16  ;;  %v11246_v45 = vld [vmem:[%s15703_s5 + $0x114] ss:$8 sps:$4 sm:$0xff]  }
 0x1a3   : > { %3210 = vmatmul.mubr.bf16.gmra.mrb[76].mxu1 %v9721_v9  ;;  %1777 = vmatpush1.bf16.msra.mxu0 %v11383_v44  ;;  %v2869_v9 = vrot.slane %v2867_v46, 7  ;;  %v3050_v6 = vsel %vm13140_vm3, %v9718_v48, %v3049_v5  ;;  %v2827_v44 = vld [vmem:[#allocation2 + $0x3c] sm:$0xc]  ;;  %v2902_v46 = vrot.slane %v2900_v62, 6  ;;  %v2884_v48 = vrot.slane %v2882_v37, 6  ;;  %vm13817_vm3 = vmor %vm4534_vm1, %vm4535_vm2 }
 0x1a4   : > { %3341 = vmatpush1.bf16.msra.mxu1 %v11202_v32  ;;  %3219 = vmatprep.mubr.bf16.mxu1 %v12077_v33  ;;  %v2861_v32 = vor.u32 %v2860_v31, %v2857_v55  ;;  %v9723_v29 = vcombine.low %v3050_v6, %v3054_v12  ;;  %v2844_v55 = vrot.slane %v2843_v18, 4  ;;  %v2927_v31 = vshrl.u32 %v2827_v44, 16 }
 0x1a5   : > { %3342 = vmatprep.subr.bf16.mxu1 %v11210_v13  ;;  %1778 = vmatprep.subr.bf16.mxu0 %v11391_v56  ;;  %v2894_v13 = vshll.u32 %v2823_v38, 16  ;;  %v2870_v41 = vor.u32 %v2869_v9, %v2866_v24  ;;  %v2852_v38 = vor.u32 %v2851_v63, %v2848_v57  ;;  %v2930_v35 = vshll.u32 %v2827_v44, 16  ;;  %v2829_v63 = vld [vmem:[#allocation2 + $0x48] sm:$0xc] }
 0x1a6   : > { %v2862_v51 = vrot.slane %v2861_v32, 4  ;;  %v2906_v12 = vor.u32 %v2905_v15, %v2902_v46  ;;  %v2936_v24 = vshrl.u32 %v13183_v30, 16  ;;  %v2939_v9 = vshll.u32 %v13183_v30, 16  ;;  %v11250_v44 = vld [vmem:[%s15703_s5 + $0x120] ss:$8 sps:$4 sm:$0xff]  }
 0x1a7   : > { %1779 = vmatpush1.bf16.msra.mxu0 %v11389_v19  ;;  %v2896_v58 = vrot.slane %v2894_v13, 7  ;;  %v2912_v19 = vshll.u32 %v2825_v25, 16  ;;  %v2853_v56 = vsel %vm13290_vm6, %v2844_v55, %v2852_v38  ;;  %v2932_v32 = vrot.slane %v2930_v35, 7  ;;  %v2831_v13 = vld [vmem:[#allocation2 + $0x54] sm:$0xc] }
 0x1a8   : > { %3343 = vmatpush1.bf16.msra.mxu1 %v11208_v28  ;;  %v11226_v28 = vld [vmem:[%s15703_s5 + $0x60] ss:$8 sps:$4 sm:$0xff]   ;;  %v2871_v53 = vsel %vm13290_vm6, %v2862_v51, %v2870_v41  ;;  %v2911_v21 = vrot.slane %v2909_v17, 6  ;;  %v2918_v30 = vshrl.u32 %v13198_v59, 16  ;;  %v2921_v57 = vshll.u32 %v13198_v59, 16 }
 0x1a9   : > { %3344 = vmatprep.subr.bf16.mxu1 %v11216_v2  ;;  %v2893_v2 = vrot.slane %v2891_v11, 6  ;;  %v9740_v36 = vcombine.low %v2853_v56, %v2871_v53  ;;  %v2914_v6 = vrot.slane %v2912_v19, 7  ;;  %v2941_v41 = vrot.slane %v2939_v9, 7  ;;  %v11258_v55 = vld [vmem:[%s15703_s5 + $0x134] ss:$8 sps:$4 sm:$0xff]  }
 0x1aa   : > { %9627 = vmatmul.mubr.msk.bf16.vlgmr.msra.gmra.mrb[0].mxu0 %vm1467_vm0, %v12578_v52  ;;  %v2945_v7 = vshrl.u32 %v2829_v63, 16  ;;  %v2948_v25 = vshll.u32 %v2829_v63, 16  ;;  %v2975_v35 = vshll.u32 %v13221_v0, 16  ;;  %v11256_v46 = vld [vmem:[%s15703_s5 + $0x130] ss:$8 sps:$4 sm:$0xff]   ;;  %v2954_v17 = vshrl.u32 %v13243_v20, 16 }
 0x1ab   : > { %3220 = vmatmul.mubr.bf16.gmra.mrb[80].mxu1 %v9722_v47  ;;  %1814 = vmatprep.mubr.bf16.mxu0 %v12077_v33  ;;  %v2885_v47 = vshll.u32 %v13159_v54, 16  ;;  %v2897_v60 = vor.u32 %v2896_v58, %v2893_v2  ;;  %v2879_v54 = vor.u32 %v2878_v10, %v2875_v27  ;;  %v2938_v2 = vrot.slane %v2936_v24, 6  ;;  %v13357_v24 = vld [vmem:[#allocation2 + $0x4] sm:$0xf] }
 0x1ac   : > { %3345 = vmatpush1.bf16.msra.mxu1 %v11214_v26  ;;  %3229 = vmatprep.mubr.bf16.mxu1 %v12077_v33  ;;  %v11232_v26 = vld [vmem:[%s15703_s5 + $0x70] ss:$8 sps:$4 sm:$0xff]   ;;  %v2966_v58 = vshll.u32 %v2831_v13, 16  ;;  %v2915_v62 = vor.u32 %v2914_v6, %v2911_v21  ;;  %v2920_v27 = vrot.slane %v2918_v30, 6  ;;  %v2923_v10 = vrot.slane %v2921_v57, 7 }
 0x1ad   : > { %3346 = vmatprep.subr.bf16.mxu1 %v11222_v40  ;;  %v11240_v40 = vld [vmem:[%s15703_s5 + $0x104] ss:$8 sps:$4 sm:$0xff]   ;;  %v2887_v5 = vrot.slane %v2885_v47, 7  ;;  %v2898_v11 = vrot.slane %v2897_v60, 4  ;;  %v2880_v14 = vrot.slane %v2879_v54, 4  ;;  %v2942_v47 = vor.u32 %v2941_v41, %v2938_v2 }
 0x1ae   : > { %v2916_v53 = vrot.slane %v2915_v62, 4  ;;  %v2947_v60 = vrot.slane %v2945_v7, 6  ;;  %v2924_v15 = vor.u32 %v2923_v10, %v2920_v27  ;;  %v2950_v54 = vrot.slane %v2948_v25, 7  ;;  %v11268_v21 = vld [vmem:[%s15703_s5 + $0x150] ss:$8 sps:$4 sm:$0xff]  }
 0x1af   : > { %v2888_v18 = vor.u32 %v2887_v5, %v2884_v48  ;;  %v2907_v51 = vsel %vm13290_vm6, %v2898_v11, %v2906_v12  ;;  %v2977_v48 = vrot.slane %v2975_v35, 7  ;;  %v13347_v5 = vld [vmem:[#allocation2 + $0x10] sm:$0xf]  ;;  %v11270_v12 = vld [vmem:[%s15703_s5 + $0x154] ss:$8 sps:$4 sm:$0xff]   ;;  %v3434_v57 = vshrl.u32 %v13129_v43, 16 }
 0x1b0   : > { %3347 = vmatpush1.bf16.msra.mxu1 %v11220_v49  ;;  %v11238_v49 = vld [vmem:[%s15703_s5 + $0x100] ss:$8 sps:$4 sm:$0xff]   ;;  %v11276_v30 = vld [vmem:[%s15703_s5 + $0x164] ss:$8 sps:$4 sm:$0xff]   ;;  %v3442_v41 = vshll.u32 %v13347_v5, 16  ;;  %v3429_v52 = vshll.u32 %v13357_v24, 16 }
 0x1b1   : > { %3348 = vmatprep.subr.bf16.mxu1 %v11228_v1  ;;  %v2929_v1 = vrot.slane %v2927_v31, 6  ;;  %v2889_v59 = vsel %vm13290_vm6, %v2880_v14, %v2888_v18  ;;  %v2972_v31 = vshrl.u32 %v13221_v0, 16  ;;  %v2957_v0 = vshll.u32 %v13243_v20, 16  ;;  %v11262_v20 = vld [vmem:[%s15703_s5 + $0x140] ss:$8 sps:$4 sm:$0xff]  }
 0x1b2   : > { %9628 = vmatmul.mubr.msk.bf16.gmra.mrb[4].mxu0 %vm1467_vm0, %v12599_v3  ;;  %v11252_v3 = vld [vmem:[%s15703_s5 + $0x124] ss:$8 sps:$4 sm:$0xff]   ;;  %v3439_v14 = vshrl.u32 %v13347_v5, 16  ;;  %v3426_v18 = vshrl.u32 %v13357_v24, 16  ;;  %v13385_v43 = vld [vmem:[#allocation2 + $0x1c] sm:$0xf] }
 0x1b3   : > { %3230 = vmatmul.mubr.bf16.gmra.mrb[84].mxu1 %v9723_v29  ;;  %1824 = vmatprep.mubr.bf16.mxu0 %v12077_v33  ;;  %v2933_v29 = vor.u32 %v2932_v32, %v2929_v1  ;;  %v2956_v1 = vrot.slane %v2954_v17, 6  ;;  %v2959_v32 = vrot.slane %v2957_v0, 7  ;;  %v9761_v62 = vrot.slane %v3434_v57, 11  ;;  %v11286_v35 = vld [vmem:[%s15703_s5 + $0x180] ss:$8 sps:$4 sm:$0xff]  }
 0x1b4   : > { %3349 = vmatpush1.bf16.msra.mxu1 %v11226_v28  ;;  %3368 = vmatprep.mubr.bf16.mxu1 %v12077_v33  ;;  %v11244_v28 = vld [vmem:[%s15703_s5 + $0x110] ss:$8 sps:$4 sm:$0xff]   ;;  %v3441_v63 = vrot.slane %v3439_v14, 7  ;;  %v3428_v2 = vrot.slane %v3426_v18, 7  ;;  %v3452_v25 = vshrl.u32 %v13385_v43, 16  ;;  %v3455_v17 = vshll.u32 %v13385_v43, 16 }
 0x1b5   : > { %3350 = vmatprep.subr.bf16.mxu1 %v11234_v34  ;;  %v2963_v34 = vshrl.u32 %v2831_v13, 16  ;;  %v2934_v38 = vrot.slane %v2933_v29, 4  ;;  %v13374_v29 = vld [vmem:[#allocation2 + $0x28] sm:$0xf] }
 0x1b6   : > { %v3444_v7 = vor.u32 %v3442_v41, %v3441_v63  ;;  %v3431_v10 = vor.u32 %v3429_v52, %v3428_v2  ;;  %v3512_v2 = vshrl.u32 %v13223_v42, 16  ;;  %v3499_v52 = vshrl.u32 %v13238_v50, 16  ;;  %v11318_v42 = vld [vmem:[%s15703_s5 + $0x1d4] ss:$8 sps:$4 sm:$0xff]  }
 0x1b7   : > { %v2965_v37 = vrot.slane %v2963_v34, 6  ;;  %v2943_v19 = vsel %vm13290_vm6, %v2934_v38, %v2942_v47 }
 0x1b8   : > { %3351 = vmatpush1.bf16.msra.mxu1 %v11232_v26  ;;  %v9741_v26 = vcombine.low %v2889_v59, %v2907_v51  ;;  %v11274_v51 = vld [vmem:[%s15703_s5 + $0x160] ss:$8 sps:$4 sm:$0xff]   ;;  %v3465_v59 = vshrl.u32 %v13374_v29, 16  ;;  %v3445_v38 = vsel %vm13395_vm9, %v9761_v62, %v3444_v7  ;;  %v9766_v50 = vrot.slane %v3499_v52, 11  ;;  %v11370_v52 = vld [vmem:[%s15703_s5 + $0x274] ss:$8 sps:$4 sm:$0xff]  }
 0x1b9   : > { %3636 = vmatprep.subr.bf16.mxu1 %v11240_v40  ;;  %v2968_v40 = vrot.slane %v2966_v58, 7 }
 0x1ba   : > { %9629 = vmatmul.mubr.msk.bf16.gmra.mrb[8].mxu0 %vm1467_vm0, %v12601_v4  ;;  %v11264_v4 = vld [vmem:[%s15703_s5 + $0x144] ss:$8 sps:$4 sm:$0xff]   ;;  %v3467_v47 = vrot.slane %v3465_v59, 7 }
 0x1bb   : > { %3369 = vmatmul.mubr.bf16.vlgmr.msra.gmra.mrb[72].mxu1 %v9740_v36  ;;  %1834 = vmatprep.mubr.bf16.mxu0 %v12077_v33  ;;  %v2969_v56 = vor.u32 %v2968_v40, %v2965_v37  ;;  %v2925_v36 = vsel %vm13290_vm6, %v2916_v53, %v2924_v15  ;;  %v3460_v37 = vshrl.u32 %v13147_v23, 16  ;;  %v13405_v40 = vld [vmem:[#allocation2 + $0x40] sm:$0xf]  ;;  %v3447_v53 = vshrl.u32 %v13161_v61, 16  ;;  %v11294_v23 = vld [vmem:[%s15703_s5 + $0x194] ss:$8 sps:$4 sm:$0xff]  }
 0x1bc   : > { %3637 = vmatpush1.bf16.msra.mxu1 %v11238_v49  ;;  %3378 = vmatprep.mubr.bf16.mxu1 %v12077_v33  ;;  %v2974_v49 = vrot.slane %v2972_v31, 6  ;;  %v9742_v11 = vcombine.low %v2925_v36, %v2943_v19  ;;  %v3491_v19 = vshrl.u32 %v13405_v40, 16  ;;  %v11292_v61 = vld [vmem:[%s15703_s5 + $0x190] ss:$8 sps:$4 sm:$0xff]   ;;  %v11300_v36 = vld [vmem:[%s15703_s5 + $0x1a4] ss:$8 sps:$4 sm:$0xff]  }
 0x1bd   : > { %3638 = vmatprep.subr.bf16.mxu1 %v11246_v45  ;;  %v2951_v45 = vor.u32 %v2950_v54, %v2947_v60  ;;  %v2970_v9 = vrot.slane %v2969_v56, 4  ;;  %v3454_v60 = vrot.slane %v3452_v25, 7  ;;  %v13417_v54 = vld [vmem:[#allocation2 + $0x34] sm:$0xf]  ;;  %v9763_v0 = vrot.slane %v3460_v37, 11 }
 0x1be   : > { %v2978_v13 = vor.u32 %v2977_v48, %v2974_v49  ;;  %v9762_v56 = vrot.slane %v3447_v53, 11  ;;  %v3478_v48 = vshrl.u32 %v13417_v54, 16  ;;  %v3494_v14 = vshll.u32 %v13405_v40, 16  ;;  %v11316_v25 = vld [vmem:[%s15703_s5 + $0x1d0] ss:$8 sps:$4 sm:$0xff]  }
 0x1bf   : > { %v2952_v6 = vrot.slane %v2951_v45, 4  ;;  %v3457_v49 = vor.u32 %v3455_v17, %v3454_v60  ;;  %v3486_v45 = vshrl.u32 %v13178_v39, 16  ;;  %v11306_v39 = vld [vmem:[%s15703_s5 + $0x1b4] ss:$8 sps:$4 sm:$0xff]   ;;  %v11328_v60 = vld [vmem:[%s15703_s5 + $0x1f0] ss:$8 sps:$4 sm:$0xff]  }
 0x1c0   : > { %3639 = vmatpush1.bf16.msra.mxu1 %v11244_v28  ;;  %v2960_v28 = vor.u32 %v2959_v32, %v2956_v1  ;;  %v3493_v1 = vrot.slane %v3491_v19, 7  ;;  %v13432_v32 = vld [vmem:[#allocation2 + $0x58] sm:$0xf]  ;;  %v11330_v53 = vld [vmem:[%s15703_s5 + $0x1f4] ss:$8 sps:$4 sm:$0xff]  }
 0x1c1   : > { %3640 = vmatprep.subr.bf16.mxu1 %v11252_v3  ;;  %v3421_v3 = vshrl.u32 %v13127_v22, 16  ;;  %v11282_v22 = vld [vmem:[%s15703_s5 + $0x174] ss:$8 sps:$4 sm:$0xff]   ;;  %v9765_v18 = vrot.slane %v3486_v45, 11  ;;  %v3520_v7 = vshll.u32 %v13432_v32, 16  ;;  %v9790_v45 = vcombine.low %v13417_v54, %v13405_v40 }
 0x1c2   : > { %9630 = vmatmul.mubr.msk.bf16.gmra.mrb[12].mxu0 %vm1467_vm0, %v12621_v16  ;;  %v2979_v16 = vsel %vm13290_vm6, %v2970_v9, %v2978_v13  ;;  %v2961_v34 = vsel %vm13290_vm6, %v2952_v6, %v2960_v28  ;;  %v3473_v9 = vshrl.u32 %v13185_v8, 16  ;;  %v3480_v13 = vrot.slane %v3478_v48, 7  ;;  %v13444_v6 = vld [vmem:[#allocation2 + $0x4c] sm:$0xf]  ;;  %v11304_v8 = vld [vmem:[%s15703_s5 + $0x1b0] ss:$8 sps:$4 sm:$0xff]   ;;  %vm13893_vm6 = vmor %vm4935_vm5, %vm4934_vm4 }
 0x1c3   : > { %3379 = vmatmul.mubr.bf16.gmra.mrb[76].mxu1 %v9741_v26  ;;  %v9743_v58 = vcombine.low %v2961_v34, %v2979_v16  ;;  %v9760_v27 = vrot.slane %v3421_v3, 11  ;;  %v3481_v28 = vshll.u32 %v13417_v54, 16  ;;  %v3517_v16 = vshrl.u32 %v13432_v32, 16  ;;  %v11312_v34 = vld [vmem:[%s15703_s5 + $0x1c4] ss:$8 sps:$4 sm:$0xff]   ;;  %4940 = vst.msk [vmem:[#allocation3 + $0x18] sm:$0xff] %vm13893_vm6, %v12077_v33 }
 0x1c4   : > { %3641 = vmatpush1.bf16.msra.mxu1 %v11250_v44  ;;  %3388 = vmatprep.mubr.bf16.mxu1 %v12077_v33  ;;  %v11280_v44 = vld [vmem:[%s15703_s5 + $0x170] ss:$8 sps:$4 sm:$0xff]   ;;  %v9764_v57 = vrot.slane %v3473_v9, 11  ;;  %v3504_v3 = vshrl.u32 %v13444_v6, 16  ;;  %v11337_v26 = vld [vmem:[%s15703_s5 + $0x204] ss:$8 sps:$4 sm:$0xff]  }
 0x1c5   : > { %3642 = vmatprep.subr.bf16.mxu1 %v11258_v55  ;;  %v11288_v55 = vld [vmem:[%s15703_s5 + $0x184] ss:$8 sps:$4 sm:$0xff]   ;;  %v3432_v31 = vsel %vm13395_vm9, %v9760_v27, %v3431_v10  ;;  %v3483_v63 = vor.u32 %v3481_v28, %v3480_v13  ;;  %v3519_v41 = vrot.slane %v3517_v16, 7  ;;  %v9767_v27 = vrot.slane %v3512_v2, 11  ;;  %v11341_v17 = vld [vmem:[%s15703_s5 + $0x210] ss:$8 sps:$4 sm:$0xff]  }
 0x1c6   : > { %v9768_v15 = vcombine.low %v3432_v31, %v3445_v38  ;;  %v3506_v62 = vrot.slane %v3504_v3, 7  ;;  %v11324_v38 = vld [vmem:[%s15703_s5 + $0x1e4] ss:$8 sps:$4 sm:$0xff]   ;;  %v11322_v31 = vld [vmem:[%s15703_s5 + $0x1e0] ss:$8 sps:$4 sm:$0xff]   ;;  %4937 = vst.msk [vmem:[#allocation3] sm:$0xff] %vm13893_vm6, %v12077_v33 }
 0x1c7   : > { %v3522_v10 = vor.u32 %v3520_v7, %v3519_v41  ;;  %v3936_v19 = vld [vmem:[#allocation2 + $0x10] sm:$0xf]  ;;  %v11358_v48 = vld [vmem:[%s15703_s5 + $0x240] ss:$8 sps:$4 sm:$0xff]   ;;  %v13532_v9 = vld [vmem:[#allocation2 + $0x14] sm:$0x1] }
 0x1c8   : > { %3643 = vmatpush1.bf16.msra.mxu1 %v11256_v46  ;;  %v3468_v46 = vshll.u32 %v13374_v29, 16  ;;  %v3940_v13 = vld [vmem:[#allocation2 + $0x28] sm:$0xf]  ;;  %v11367_v40 = vld [vmem:[%s15703_s5 + $0x264] ss:$8 sps:$4 sm:$0xff]   ;;  %4938 = vst.msk [vmem:[#allocation3 + $0x8] sm:$0xff] %vm13893_vm6, %v12077_v33 }
 0x1c9   : > { %3644 = vmatprep.subr.bf16.mxu1 %v11264_v4  ;;  %v3523_v37 = vsel %vm13395_vm9, %v9767_v27, %v3522_v10  ;;  %v13541_v54 = vld [vmem:[#allocation2 + $0x8] sm:$0x1]  ;;  %v3938_v28 = vld [vmem:[#allocation2 + $0x1c] sm:$0xf]  ;;  %v11439_v27 = vld [vmem:[%s15705_s7 + $0xc4] ss:$8 sps:$4 sm:$0xff]  }
 0x1ca   : > { %v3470_v4 = vor.u32 %v3468_v46, %v3467_v47  ;;  %v11335_v46 = vld [vmem:[%s15703_s5 + $0x200] ss:$8 sps:$4 sm:$0xff]   ;;  %v11436_v3 = vld [vmem:[%s15705_s7 + $0xb4] ss:$8 sps:$4 sm:$0xff]   ;;  %v3982_v41 = vshrl.u32 %v3938_v28, 16  ;;  %4939 = vst.msk [vmem:[#allocation3 + $0x10] sm:$0xff] %vm13893_vm6, %v12077_v33 }
 0x1cb   : > { %3389 = vmatmul.mubr.bf16.gmra.mrb[80].mxu1 %v9742_v11  ;;  %v3458_v11 = vsel %vm13395_vm9, %v9762_v56, %v3457_v49  ;;  %v11360_v56 = vld [vmem:[%s15703_s5 + $0x244] ss:$8 sps:$4 sm:$0xff]   ;;  %v3971_v49 = vshll.u32 %v3936_v19, 16  ;;  %v3944_v10 = vld [vmem:[#allocation2 + $0x40] sm:$0xf]  ;;  %4941 = vst.msk [vmem:[#allocation3 + $0x20] sm:$0xff] %vm13893_vm6, %v12077_v33 }
 0x1cc   : > { %3645 = vmatpush1.bf16.msra.mxu1 %v11262_v20  ;;  %3398 = vmatprep.mubr.bf16.mxu1 %v12077_v33  ;;  %v3471_v20 = vsel %vm13395_vm9, %v9763_v0, %v3470_v4  ;;  %v11350_v0 = vld [vmem:[%s15703_s5 + $0x224] ss:$8 sps:$4 sm:$0xff]   ;;  %v11356_v4 = vld [vmem:[%s15703_s5 + $0x234] ss:$8 sps:$4 sm:$0xff]   ;;  %4942 = vst.msk [vmem:[#allocation3 + $0x28] sm:$0xff] %vm13893_vm6, %v12077_v33  ;;  %4943 = vst.msk [vmem:[#allocation3 + $0x30] sm:$0xff] %vm13893_vm6, %v12077_v33 }
 0x1cd   : > { %3646 = vmatprep.subr.bf16.mxu1 %v11270_v12  ;;  %v11298_v12 = vld [vmem:[%s15703_s5 + $0x1a0] ss:$8 sps:$4 sm:$0xff]   ;;  %4944 = vst.msk [vmem:[#allocation3 + $0x38] sm:$0xff] %vm13893_vm6, %v12077_v33  ;;  %4945 = vst.msk [vmem:[#allocation3 + $0x40] sm:$0xff] %vm13893_vm6, %v12077_v33 }
 0x1ce   : > { %4946 = vst.msk [vmem:[#allocation3 + $0x48] sm:$0xff] %vm13893_vm6, %v12077_v33  ;;  %4947 = vst.msk [vmem:[#allocation3 + $0x50] sm:$0xff] %vm13893_vm6, %v12077_v33 }
 0x1cf   : > { %4948 = vst.msk [vmem:[#allocation3 + $0x58] sm:$0xff] %vm13893_vm6, %v12077_v33  ;;  %4949 = vst.msk [vmem:[#allocation3 + $0x60] sm:$0xff] %vm13893_vm6, %v12077_v33 }
 0x1d0   : > { %3647 = vmatpush1.bf16.msra.mxu1 %v11268_v21  ;;  %v9769_v21 = vcombine.low %v3458_v11, %v3471_v20  ;;  %4950 = vst.msk [vmem:[#allocation3 + $0x68] sm:$0xff] %vm13893_vm6, %v12077_v33 }
 0x1d1   : > { %3648 = vmatprep.subr.bf16.mxu1 %v11276_v30  ;;  %v3496_v30 = vor.u32 %v3494_v14, %v3493_v1  ;;  %v11363_v1 = vld [vmem:[%s15703_s5 + $0x254] ss:$8 sps:$4 sm:$0xff]   ;;  %v11361_v14 = vld [vmem:[%s15703_s5 + $0x250] ss:$8 sps:$4 sm:$0xff]  }
 0x1d3   : > { %3399 = vmatmul.mubr.bf16.gmra.mrb[84].mxu1 %v9743_v58  ;;  %v3484_v58 = vsel %vm13395_vm9, %v9764_v57, %v3483_v63  ;;  %v3996_v57 = vshrl.u32 %v3940_v13, 16  ;;  %v3999_v63 = vshll.u32 %v3940_v13, 16  ;;  %v11380_v13 = vld [vmem:[%s15703_s5 + $0x290] ss:$8 sps:$4 sm:$0xff]  }
 0x1d4   : > { %3649 = vmatpush1.bf16.msra.mxu1 %v11274_v51  ;;  %3668 = vmatprep.mubr.bf16.mxu1 %v12077_v33  ;;  %v3497_v51 = vsel %vm13395_vm9, %v9765_v18, %v3496_v30  ;;  %v11431_v18 = vld [vmem:[%s15705_s7 + $0xa0] ss:$8 sps:$4 sm:$0xff]   ;;  %v11433_v30 = vld [vmem:[%s15705_s7 + $0xa4] ss:$8 sps:$4 sm:$0xff]  }
 0x1d5   : > { %3650 = vmatprep.subr.bf16.mxu1 %v11282_v22  ;;  %v11310_v22 = vld [vmem:[%s15703_s5 + $0x1c0] ss:$8 sps:$4 sm:$0xff]   ;;  %v9770_v59 = vcombine.low %v3484_v58, %v3497_v51  ;;  %5206 = vmatprep.subr.bf16.mxu0 %v11433_v30  ;;  %v3985_v58 = vshll.u32 %v3938_v28, 16  ;;  %v11388_v28 = vld [vmem:[%s15703_s5 + $0x2a4] ss:$8 sps:$4 sm:$0xff]  }
 0x1d6   : > { %v11365_v51 = vld [vmem:[%s15703_s5 + $0x260] ss:$8 sps:$4 sm:$0xff]   ;;  %5207 = vmatpush1.bf16.msra.mxu0 %v11431_v18  ;;  %v3946_v18 = vld [vmem:[#allocation2 + $0x4c] sm:$0xf] }
 0x1d7   : > { %5208 = vmatprep.subr.bf16.mxu0 %v11436_v3  ;;  %v11443_v30 = vld [vmem:[%s15705_s7 + $0xe0] ss:$8 sps:$4 sm:$0xff]  }
 0x1d8   : > { %3651 = vmatpush1.bf16.msra.mxu1 %v11280_v44  ;;  %v3507_v44 = vshll.u32 %v13444_v6, 16 }
 0x1d9   : > { %3845 = vmatprep.subr.bf16.mxu1 %v11288_v55 }
 0x1da   : > { %v3509_v55 = vor.u32 %v3507_v44, %v3506_v62  ;;  %v11434_v62 = vld [vmem:[%s15705_s7 + $0xb0] ss:$8 sps:$4 sm:$0xff]   ;;  %v4001_v44 = vrot.slane %v3999_v63, 5 }
 0x1db   : > { %3669 = vmatmul.mubr.bf16.vlgmr.msra.gmra.mrb[72].mxu1 %v9768_v15  ;;  %v9788_v15 = vcombine.low %v13357_v24, %v13347_v5  ;;  %v11348_v5 = vld [vmem:[%s15703_s5 + $0x220] ss:$8 sps:$4 sm:$0xff]   ;;  %v9789_v24 = vcombine.low %v13385_v43, %v13374_v29  ;;  %v3934_v29 = vld [vmem:[#allocation2 + $0x4] sm:$0xf]  ;;  %v3968_v43 = vshrl.u32 %v3936_v19, 16  ;;  %5209 = vmatpush1.bf16.msra.mxu0 %v11434_v62 }
 0x1dc   : > { %3846 = vmatpush1.bf16.msra.mxu1 %v11286_v35  ;;  %3678 = vmatprep.mubr.bf16.mxu1 %v12077_v33  ;;  %v3510_v47 = vsel %vm13395_vm9, %v9766_v50, %v3509_v55  ;;  %v3957_v20 = vshll.u32 %v3934_v29, 16  ;;  %v4299_v50 = vrot.slane %v13532_v9, 5 }
 0x1dd   : > { %3847 = vmatprep.subr.bf16.mxu1 %v11294_v23  ;;  %v9771_v35 = vcombine.low %v3510_v47, %v3523_v37  ;;  %v11343_v23 = vld [vmem:[%s15703_s5 + $0x214] ss:$8 sps:$4 sm:$0xff]   ;;  %v3970_v11 = vrot.slane %v3968_v43, 4  ;;  %v3987_v37 = vrot.slane %v3985_v58, 5  ;;  %5210 = vmatprep.subr.bf16.mxu0 %v11439_v27  ;;  %v11440_v43 = vld [vmem:[%s15705_s7 + $0xd0] ss:$8 sps:$4 sm:$0xff]  }
 0x1e0   : > { %3848 = vmatpush1.bf16.msra.mxu1 %v11292_v61  ;;  %v11354_v61 = vld [vmem:[%s15703_s5 + $0x230] ss:$8 sps:$4 sm:$0xff]  }
 0x1e1   : > { %3849 = vmatprep.subr.bf16.mxu1 %v11300_v36  ;;  %v3954_v36 = vshrl.u32 %v3934_v29, 16  ;;  %v11382_v29 = vld [vmem:[%s15703_s5 + $0x294] ss:$8 sps:$4 sm:$0xff]  }
 0x1e3   : > { %3679 = vmatmul.mubr.bf16.gmra.mrb[76].mxu1 %v9769_v21  ;;  %v3956_v21 = vrot.slane %v3954_v36, 4 }
 0x1e4   : > { %3850 = vmatpush1.bf16.msra.mxu1 %v11298_v12  ;;  %3688 = vmatprep.mubr.bf16.mxu1 %v12077_v33  ;;  %v3973_v12 = vrot.slane %v3971_v49, 5 }
 0x1e5   : > { %3851 = vmatprep.subr.bf16.mxu1 %v11306_v39  ;;  %v3959_v39 = vrot.slane %v3957_v20, 5 }
 0x1e6   : > { %v3974_v16 = vor.u32 %v3973_v12, %v3970_v11  ;;  %v13609_v11 = vld [vmem:[#allocation2 + $0x44] sm:$0x1]  ;;  %v3948_v12 = vld [vmem:[#allocation2 + $0x58] sm:$0xf] }
 0x1e7   : > { %v3960_v2 = vor.u32 %v3959_v39, %v3956_v21  ;;  %v4033_v39 = vshll.u32 %v13609_v11, 16  ;;  %v4052_v63 = vshrl.u32 %v3948_v12, 16  ;;  %v4055_v3 = vshll.u32 %v3948_v12, 16 }
 0x1e8   : > { %3852 = vmatpush1.bf16.msra.mxu1 %v11304_v8  ;;  %v3977_v8 = vshll.u32 %v13532_v9, 16  ;;  %v3975_v7 = vrot.slane %v3974_v16, 4  ;;  %v11409_v9 = vld [vmem:[%s15703_s5 + $0x304] ss:$8 sps:$4 sm:$0xff]  }
 0x1e9   : > { %3853 = vmatprep.subr.bf16.mxu1 %v11312_v34  ;;  %v3963_v34 = vshll.u32 %v13541_v54, 16  ;;  %v3961_v55 = vrot.slane %v3960_v2, 4  ;;  %v4054_v27 = vrot.slane %v4052_v63, 4 }
 0x1eb   : > { %3689 = vmatmul.mubr.bf16.gmra.mrb[80].mxu1 %v9770_v59  ;;  %v3979_v59 = vrot.slane %v3977_v8, 5  ;;  %v13624_v8 = vld [vmem:[#allocation2 + $0x38] sm:$0x1] }
 0x1ec   : > { %3854 = vmatpush1.bf16.msra.mxu1 %v11310_v22  ;;  %3698 = vmatprep.mubr.bf16.mxu1 %v12077_v33  ;;  %v9791_v22 = vcombine.low %v13444_v6, %v13432_v32  ;;  %v3965_v32 = vrot.slane %v3963_v34, 5  ;;  %v13568_v6 = vld [vmem:[#allocation2 + $0x2c] sm:$0x1]  ;;  %v11448_v34 = vld [vmem:[%s15705_s7 + $0xf4] ss:$8 sps:$4 sm:$0xff]  }
 0x1ed   : > { %3855 = vmatprep.subr.bf16.mxu1 %v11318_v42  ;;  %v3998_v42 = vrot.slane %v3996_v57, 4  ;;  %v4005_v47 = vshll.u32 %v13568_v6, 16 }
 0x1f0   : > { %3856 = vmatpush1.bf16.msra.mxu1 %v11316_v25  ;;  %v11368_v25 = vld [vmem:[%s15703_s5 + $0x270] ss:$8 sps:$4 sm:$0xff]  }
 0x1f1   : > { %3857 = vmatprep.subr.bf16.mxu1 %v11324_v38  ;;  %v3984_v38 = vrot.slane %v3982_v41, 4  ;;  %v11386_v41 = vld [vmem:[%s15703_s5 + $0x2a0] ss:$8 sps:$4 sm:$0xff]  }
 0x1f3   : > { %3699 = vmatmul.mubr.bf16.gmra.mrb[84].mxu1 %v9771_v35  ;;  %v3942_v35 = vld [vmem:[#allocation2 + $0x34] sm:$0xf] }
 0x1f4   : > { %3858 = vmatpush1.bf16.msra.mxu1 %v11322_v31  ;;  %3877 = vmatprep.mubr.bf16.mxu1 %v12077_v33  ;;  %v11376_v31 = vld [vmem:[%s15703_s5 + $0x284] ss:$8 sps:$4 sm:$0xff]   ;;  %v4010_v19 = vshrl.u32 %v3942_v35, 16 }
 0x1f5   : > { %3859 = vmatprep.subr.bf16.mxu1 %v11330_v53  ;;  %v11437_v53 = vld [vmem:[%s15705_s7 + $0xc0] ss:$8 sps:$4 sm:$0xff]  }
 0x1f6   : > { %5211 = vmatpush1.bf16.msra.mxu0 %v11437_v53  ;;  %v11449_v53 = vld [vmem:[%s15705_s7 + $0x100] ss:$8 sps:$4 sm:$0xff]  }
 0x1f8   : > { %3860 = vmatpush1.bf16.msra.mxu1 %v11328_v60  ;;  %v3980_v60 = vsel %vm13576_vm12, %v3975_v7, %v3979_v59  ;;  %v11394_v7 = vld [vmem:[%s15703_s5 + $0x2b4] ss:$8 sps:$4 sm:$0xff]   ;;  %v11446_v59 = vld [vmem:[%s15705_s7 + $0xf0] ss:$8 sps:$4 sm:$0xff]  }
 0x1f9   : > { %4177 = vmatprep.subr.bf16.mxu1 %v11337_v26  ;;  %v13589_v26 = vld [vmem:[#allocation2 + $0x20] sm:$0x1] }
 0x1fb   : > { %3878 = vmatmul.mubr.bf16.vlgmr.msra.gmra.mrb[72].mxu1 %v9788_v15  ;;  %v4024_v15 = vshrl.u32 %v3944_v10, 16 }
 0x1fc   : > { %4178 = vmatpush1.bf16.msra.mxu1 %v11335_v46  ;;  %3887 = vmatprep.mubr.bf16.mxu1 %v12077_v33  ;;  %v4002_v46 = vor.u32 %v4001_v44, %v3998_v42  ;;  %v4035_v44 = vrot.slane %v4033_v39, 5  ;;  %v11406_v39 = vld [vmem:[%s15703_s5 + $0x2f4] ss:$8 sps:$4 sm:$0xff]  }
 0x1fd   : > { %4179 = vmatprep.subr.bf16.mxu1 %v11343_v23  ;;  %v4027_v23 = vshll.u32 %v3944_v10, 16  ;;  %v4026_v36 = vrot.slane %v4024_v15, 4  ;;  %v11451_v10 = vld [vmem:[%s15705_s7 + $0x104] ss:$8 sps:$4 sm:$0xff]  }
 0x1fe   : > { %v4003_v49 = vrot.slane %v4002_v46, 4 }
 0x1ff   : > { %v4029_v20 = vrot.slane %v4027_v23, 5  ;;  %v11454_v23 = vld [vmem:[%s15705_s7 + $0x114] ss:$8 sps:$4 sm:$0xff]  }
 0x200   : > { %4180 = vmatpush1.bf16.msra.mxu1 %v11341_v17  ;;  %v11442_v17 = vld [vmem:[%s15705_s7 + $0xd4] ss:$8 sps:$4 sm:$0xff]  }
 0x201   : > { %4181 = vmatprep.subr.bf16.mxu1 %v11350_v0  ;;  %v3991_v0 = vshll.u32 %v13589_v26, 16  ;;  %5212 = vmatprep.subr.bf16.mxu0 %v11442_v17  ;;  %v4030_v57 = vor.u32 %v4029_v20, %v4026_v36  ;;  %v13662_v17 = vld [vmem:[#allocation2 + $0x50] sm:$0x1] }
 0x202   : > { %5213 = vmatpush1.bf16.msra.mxu0 %v11440_v43 }
 0x203   : > { %3888 = vmatmul.mubr.bf16.gmra.mrb[76].mxu1 %v9789_v24  ;;  %v11374_v24 = vld [vmem:[%s15703_s5 + $0x280] ss:$8 sps:$4 sm:$0xff]   ;;  %v4031_v42 = vrot.slane %v4030_v57, 4  ;;  %v4295_v57 = vrot.slane %v13541_v54, 5 }
 0x204   : > { %4182 = vmatpush1.bf16.msra.mxu1 %v11348_v5  ;;  %3897 = vmatprep.mubr.bf16.mxu1 %v12077_v33  ;;  %v3966_v5 = vsel %vm13576_vm12, %v3961_v55, %v3965_v32  ;;  %v4057_v32 = vrot.slane %v4055_v3, 5  ;;  %v11407_v54 = vld [vmem:[%s15703_s5 + $0x300] ss:$8 sps:$4 sm:$0xff]  }
 0x205   : > { %4183 = vmatprep.subr.bf16.mxu1 %v11356_v4  ;;  %v3988_v4 = vor.u32 %v3987_v37, %v3984_v38 }
 0x206   : > { %v4058_v46 = vor.u32 %v4057_v32, %v4054_v27  ;;  %v11413_v32 = vld [vmem:[%s15703_s5 + $0x320] ss:$8 sps:$4 sm:$0xff]  }
 0x208   : > { %4184 = vmatpush1.bf16.msra.mxu1 %v11354_v61  ;;  %v4013_v61 = vshll.u32 %v3942_v35, 16  ;;  %v13651_v35 = vld [vmem:[#allocation2 + $0x5c] sm:$0x1] }
 0x209   : > { %4185 = vmatprep.subr.bf16.mxu1 %v11360_v56  ;;  %v9808_v56 = vcombine.low %v3966_v5, %v3980_v60  ;;  %v4036_v60 = vsel %vm13576_vm12, %v4031_v42, %v4035_v44  ;;  %v4061_v15 = vshll.u32 %v13651_v35, 16  ;;  %v11395_v5 = vld [vmem:[%s15703_s5 + $0x2c0] ss:$8 sps:$4 sm:$0xff]   ;;  %v11415_v42 = vld [vmem:[%s15703_s5 + $0x324] ss:$8 sps:$4 sm:$0xff]  }
 0x20a   : > { %v4015_v21 = vrot.slane %v4013_v61, 5  ;;  %v11400_v61 = vld [vmem:[%s15703_s5 + $0x2d4] ss:$8 sps:$4 sm:$0xff]   ;;  %v13745_v44 = vld [vmem:[#allocation2 + $0x40] sm:$0xe] }
 0x20b   : > { %3898 = vmatmul.mubr.bf16.gmra.mrb[80].mxu1 %v9790_v45  ;;  %v11445_v45 = vld [vmem:[%s15705_s7 + $0xe4] ss:$8 sps:$4 sm:$0xff]   ;;  %v4063_v43 = vrot.slane %v4061_v15, 5 }
 0x20c   : > { %4186 = vmatpush1.bf16.msra.mxu1 %v11358_v48  ;;  %3907 = vmatprep.mubr.bf16.mxu1 %v12077_v33  ;;  %v4007_v48 = vrot.slane %v4005_v47, 5 }
 0x20d   : > { %4187 = vmatprep.subr.bf16.mxu1 %v11363_v1  ;;  %v3993_v1 = vrot.slane %v3991_v0, 5  ;;  %5214 = vmatprep.subr.bf16.mxu0 %v11445_v45  ;;  %v11403_v45 = vld [vmem:[%s15703_s5 + $0x2e4] ss:$8 sps:$4 sm:$0xff]  }
 0x20e   : > { %v4008_v16 = vsel %vm13576_vm12, %v4003_v49, %v4007_v48  ;;  %5215 = vmatpush1.bf16.msra.mxu0 %v11443_v30  ;;  %v11457_v49 = vld [vmem:[%s15705_s7 + $0x124] ss:$8 sps:$4 sm:$0xff]   ;;  %v11398_v48 = vld [vmem:[%s15703_s5 + $0x2d0] ss:$8 sps:$4 sm:$0xff]  }
 0x20f   : > { %5216 = vmatprep.subr.bf16.mxu0 %v11448_v34  ;;  %v11404_v30 = vld [vmem:[%s15703_s5 + $0x2f0] ss:$8 sps:$4 sm:$0xff]   ;;  %v13720_v34 = vld [vmem:[#allocation2 + $0x28] sm:$0xe] }
 0x210   : > { %4188 = vmatpush1.bf16.msra.mxu1 %v11361_v14  ;;  %v3989_v14 = vrot.slane %v3988_v4, 4  ;;  %v4047_v4 = vshll.u32 %v13662_v17, 16 }
 0x211   : > { %4189 = vmatprep.subr.bf16.mxu1 %v11367_v40  ;;  %v4012_v40 = vrot.slane %v4010_v19, 4 }
 0x212   : > { %v3994_v2 = vsel %vm13576_vm12, %v3989_v14, %v3993_v1  ;;  %5217 = vmatpush1.bf16.msra.mxu0 %v11446_v59  ;;  %v4049_v20 = vrot.slane %v4047_v4, 5  ;;  %v11455_v1 = vld [vmem:[%s15705_s7 + $0x120] ss:$8 sps:$4 sm:$0xff]   ;;  %v4303_v59 = vrot.slane %v13589_v26, 5  ;;  %v11418_v26 = vld [vmem:[%s15703_s5 + $0x334] ss:$8 sps:$4 sm:$0xff]  }
 0x213   : > { %3908 = vmatmul.mubr.bf16.gmra.mrb[84].mxu1 %v9791_v22  ;;  %v4016_v58 = vor.u32 %v4015_v21, %v4012_v40  ;;  %v4038_v22 = vshrl.u32 %v3946_v18, 16  ;;  %v9809_v62 = vcombine.low %v3994_v2, %v4008_v16  ;;  %5218 = vmatprep.subr.bf16.mxu0 %v11451_v10  ;;  %v11401_v40 = vld [vmem:[%s15703_s5 + $0x2e0] ss:$8 sps:$4 sm:$0xff]  }
 0x214   : > { %4190 = vmatpush1.bf16.msra.mxu1 %v11365_v51  ;;  %4209 = vmatprep.mubr.bf16.mxu1 %v12077_v33  ;;  %v4019_v51 = vshll.u32 %v13624_v8, 16 }
 0x215   : > { %4191 = vmatprep.subr.bf16.mxu1 %v11370_v52  ;;  %v4041_v52 = vshll.u32 %v3946_v18, 16  ;;  %v4017_v55 = vrot.slane %v4016_v58, 4  ;;  %v4040_v37 = vrot.slane %v4038_v22, 4  ;;  %v13730_v58 = vld [vmem:[#allocation2 + $0x1c] sm:$0xe]  ;;  %v9831_v22 = vrot.slane %v13720_v34, 9 }
 0x216   : > { %v4021_v38 = vrot.slane %v4019_v51, 5  ;;  %5219 = vmatpush1.bf16.msra.mxu0 %v11449_v53  ;;  %v11421_v53 = vld [vmem:[%s15703_s5 + $0x344] ss:$8 sps:$4 sm:$0xff]  }
 0x217   : > { %v4043_v47 = vrot.slane %v4041_v52, 5  ;;  %5220 = vmatprep.subr.bf16.mxu0 %v11454_v23  ;;  %v4307_v52 = vrot.slane %v13568_v6, 5  ;;  %v13772_v23 = vld [vmem:[#allocation2 + $0x58] sm:$0xe] }
 0x218   : > { %4192 = vmatpush1.bf16.msra.mxu1 %v11368_v25  ;;  %v11392_v25 = vld [vmem:[%s15703_s5 + $0x2b0] ss:$8 sps:$4 sm:$0xff]   ;;  %v4022_v0 = vsel %vm13576_vm12, %v4017_v55, %v4021_v38  ;;  %v9833_v55 = vrot.slane %v13745_v44, 9  ;;  %v4315_v38 = vrot.slane %v13609_v11, 5 }
 0x219   : > { %4437 = vmatprep.subr.bf16.mxu1 %v11376_v31  ;;  %v11397_v31 = vld [vmem:[%s15703_s5 + $0x2c4] ss:$8 sps:$4 sm:$0xff]   ;;  %v9810_v19 = vcombine.low %v4022_v0, %v4036_v60  ;;  %v4308_v6 = vsel %vm13711_vm15, %v9831_v22, %v4307_v52  ;;  %v4527_v60 = vld [vmem:[#allocation2 + $0x14] sm:$0x3]  ;;  %v4577_v22 = vshll.u32 %v13730_v58, 16 }
 0x21a   : > { %v4316_v11 = vsel %vm13711_vm15, %v9833_v55, %v4315_v38 }
 0x21b   : > { %4210 = vmatmul.mubr.bf16.vlgmr.msra.gmra.mrb[72].mxu1 %v9808_v56  ;;  %v11452_v56 = vld [vmem:[%s15705_s7 + $0x110] ss:$8 sps:$4 sm:$0xff]   ;;  %v4579_v38 = vrot.slane %v4577_v22, 6 }
 0x21c   : > { %4438 = vmatpush1.bf16.msra.mxu1 %v11374_v24  ;;  %4219 = vmatprep.mubr.bf16.mxu1 %v12077_v33  ;;  %v4044_v24 = vor.u32 %v4043_v47, %v4040_v37  ;;  %v11416_v37 = vld [vmem:[%s15703_s5 + $0x330] ss:$8 sps:$4 sm:$0xff]  }
 0x21d   : > { %4439 = vmatprep.subr.bf16.mxu1 %v11382_v29  ;;  %v4059_v29 = vrot.slane %v4058_v46, 4  ;;  %5221 = vmatpush1.bf16.msra.mxu0 %v11452_v56  ;;  %v13784_v56 = vld [vmem:[#allocation2 + $0x4c] sm:$0xe] }
 0x21e   : > { %v4045_v36 = vrot.slane %v4044_v24, 4  ;;  %5222 = vmatprep.subr.bf16.mxu0 %v11457_v49  ;;  %v9835_v49 = vrot.slane %v13772_v23, 9 }
 0x21f   : > { %v4064_v12 = vsel %vm13576_vm12, %v4059_v29, %v4063_v43  ;;  %v4565_v29 = vshrl.u32 %v4527_v60, 16  ;;  %v4568_v43 = vshll.u32 %v4527_v60, 16  ;;  %v4531_v60 = vld [vmem:[#allocation2 + $0x44] sm:$0x3] }
 0x220   : > { %4440 = vmatpush1.bf16.msra.mxu1 %v11380_v13  ;;  %v13691_v13 = vld [vmem:[#allocation2 + $0x10] sm:$0xe]  ;;  %v4050_v14 = vsel %vm13576_vm12, %v4045_v36, %v4049_v20 }
 0x221   : > { %4441 = vmatprep.subr.bf16.mxu1 %v11388_v28  ;;  %v9811_v21 = vcombine.low %v4050_v14, %v4064_v12  ;;  %v13701_v28 = vld [vmem:[#allocation2 + $0x4] sm:$0xe]  ;;  %5223 = vmatpush1.bf16.msra.mxu0 %v11455_v1  ;;  %v9829_v18 = vrot.slane %v13691_v13, 9  ;;  %v4556_v46 = vshrl.u32 %v13691_v13, 16  ;;  %v4559_v15 = vshll.u32 %v13691_v13, 16 }
 0x222   : > { %v9828_v16 = vrot.slane %v13701_v28, 9  ;;  %v4538_v24 = vshrl.u32 %v13701_v28, 16  ;;  %v4541_v4 = vshll.u32 %v13701_v28, 16  ;;  %v11422_v12 = vld [vmem:[%s15703_s5 + $0x350] ss:$8 sps:$4 sm:$0xff]   ;;  %v9834_v13 = vrot.slane %v13784_v56, 9 }
 0x223   : > { %4220 = vmatmul.mubr.bf16.gmra.mrb[76].mxu1 %v9809_v62  ;;  %v4300_v3 = vsel %vm13711_vm15, %v9829_v18, %v4299_v50  ;;  %v11410_v62 = vld [vmem:[%s15703_s5 + $0x310] ss:$8 sps:$4 sm:$0xff]   ;;  %v4558_v36 = vrot.slane %v4556_v46, 5  ;;  %v4561_v20 = vrot.slane %v4559_v15, 6  ;;  %v4319_v14 = vrot.slane %v13662_v17, 5 }
 0x224   : > { %4442 = vmatpush1.bf16.msra.mxu1 %v11386_v41  ;;  %4229 = vmatprep.mubr.bf16.mxu1 %v12077_v33  ;;  %v4296_v51 = vsel %vm13711_vm15, %v9828_v16, %v4295_v57  ;;  %v11412_v41 = vld [vmem:[%s15703_s5 + $0x314] ss:$8 sps:$4 sm:$0xff]   ;;  %v4570_v28 = vrot.slane %v4568_v43, 6  ;;  %v4592_v16 = vshrl.u32 %v13720_v34, 16  ;;  %v4595_v57 = vshll.u32 %v13720_v34, 16 }
 0x225   : > { %4443 = vmatprep.subr.bf16.mxu1 %v11394_v7  ;;  %v9836_v2 = vcombine.low %v4296_v51, %v4300_v3  ;;  %v9830_v7 = vrot.slane %v13730_v58, 9  ;;  %v4562_v50 = vor.u32 %v4561_v20, %v4558_v36  ;;  %v4320_v3 = vsel %vm13711_vm15, %v9834_v13, %v4319_v14  ;;  %v11425_v51 = vld [vmem:[%s15703_s5 + $0x360] ss:$8 sps:$4 sm:$0xff]   ;;  %v11430_v34 = vld [vmem:[%s15703_s5 + $0x374] ss:$8 sps:$4 sm:$0xff]  }
 0x226   : > { %v4628_v46 = vshrl.u32 %v13745_v44, 16  ;;  %v4631_v15 = vshll.u32 %v13745_v44, 16  ;;  %v4637_v43 = vshrl.u32 %v4531_v60, 16 }
 0x227   : > { %v4304_v27 = vsel %vm13711_vm15, %v9830_v7, %v4303_v59  ;;  %v4563_v7 = vrot.slane %v4562_v50, 4  ;;  %v4667_v50 = vshll.u32 %v13772_v23, 16 }
 0x228   : > { %4444 = vmatpush1.bf16.msra.mxu1 %v11392_v25  ;;  %v9837_v10 = vcombine.low %v4304_v27, %v4308_v6  ;;  %v13755_v25 = vld [vmem:[#allocation2 + $0x34] sm:$0xe]  ;;  %v4597_v6 = vrot.slane %v4595_v57, 6  ;;  %v4630_v20 = vrot.slane %v4628_v46, 5 }
 0x229   : > { %4445 = vmatprep.subr.bf16.mxu1 %v11397_v31  ;;  %v9832_v47 = vrot.slane %v13755_v25, 9  ;;  %v4311_v31 = vrot.slane %v13624_v8, 5  ;;  %v11419_v8 = vld [vmem:[%s15703_s5 + $0x340] ss:$8 sps:$4 sm:$0xff]  }
 0x22b   : > { %4230 = vmatmul.mubr.bf16.gmra.mrb[80].mxu1 %v9810_v19  ;;  %v4312_v0 = vsel %vm13711_vm15, %v9832_v47, %v4311_v31 }
 0x22c   : > { %4446 = vmatpush1.bf16.msra.mxu1 %v11395_v5  ;;  %4239 = vmatprep.mubr.bf16.mxu1 %v12077_v33  ;;  %v4526_v5 = vld [vmem:[#allocation2 + $0x8] sm:$0x3]  ;;  %v9838_v19 = vcombine.low %v4312_v0, %v4316_v11 }
 0x22d   : > { %4447 = vmatprep.subr.bf16.mxu1 %v11400_v61  ;;  %v11424_v61 = vld [vmem:[%s15703_s5 + $0x354] ss:$8 sps:$4 sm:$0xff]   ;;  %v4550_v1 = vshll.u32 %v4526_v5, 16 }
 0x230   : > { %4448 = vmatpush1.bf16.msra.mxu1 %v11398_v48  ;;  %v4323_v48 = vrot.slane %v13651_v35, 5  ;;  %v11427_v35 = vld [vmem:[%s15703_s5 + $0x364] ss:$8 sps:$4 sm:$0xff]  }
 0x231   : > { %4449 = vmatprep.subr.bf16.mxu1 %v11403_v45  ;;  %v4547_v45 = vshrl.u32 %v4526_v5, 16 }
 0x232   : > { %v4324_v18 = vsel %vm13711_vm15, %v9835_v49, %v4323_v48  ;;  %v4640_v49 = vshll.u32 %v4531_v60, 16 }
 0x233   : > { %4240 = vmatmul.mubr.bf16.gmra.mrb[84].mxu1 %v9811_v21  ;;  %v4543_v21 = vrot.slane %v4541_v4, 6  ;;  %v4549_v17 = vrot.slane %v4547_v45, 5  ;;  %v9839_v52 = vcombine.low %v4320_v3, %v4324_v18  ;;  %v4530_v4 = vld [vmem:[#allocation2 + $0x38] sm:$0x3]  ;;  %v4633_v45 = vrot.slane %v4631_v15, 6 }
 0x234   : > { %4450 = vmatpush1.bf16.msra.mxu1 %v11401_v40  ;;  %4469 = vmatprep.mubr.bf16.mxu1 %v12077_v33  ;;  %v4540_v40 = vrot.slane %v4538_v24, 5  ;;  %v4619_v44 = vshrl.u32 %v4530_v4, 16  ;;  %v4664_v18 = vshrl.u32 %v13772_v23, 16  ;;  %v4646_v3 = vshrl.u32 %v13784_v56, 16 }
 0x235   : > { %4451 = vmatprep.subr.bf16.mxu1 %v11406_v39  ;;  %v4567_v39 = vrot.slane %v4565_v29, 5 }
 0x237   : > { %v4571_v59 = vor.u32 %v4570_v28, %v4567_v39  ;;  %v4634_v39 = vor.u32 %v4633_v45, %v4630_v20  ;;  %v4533_v28 = vld [vmem:[#allocation2 + $0x5c] sm:$0x3] }
 0x238   : > { %4452 = vmatpush1.bf16.msra.mxu1 %v11404_v30  ;;  %v4529_v30 = vld [vmem:[#allocation2 + $0x2c] sm:$0x3] }
 0x239   : > { %4793 = vmatprep.subr.bf16.mxu1 %v11409_v9  ;;  %v4552_v9 = vrot.slane %v4550_v1, 6  ;;  %v4604_v63 = vshll.u32 %v4529_v30, 16  ;;  %v4622_v1 = vshll.u32 %v4530_v4, 16  ;;  %v4635_v22 = vrot.slane %v4634_v39, 4  ;;  %v595_v4 = vld [vmem:[%s15700_s2] sm:$0x3] }
 0x23b   : > { %4470 = vmatmul.mubr.bf16.vlgmr.msra.gmra.mrb[72].mxu1 %v9836_v2  ;;  %v4528_v2 = vld [vmem:[#allocation2 + $0x20] sm:$0x3]  ;;  %v4606_v31 = vrot.slane %v4604_v63, 6 }
 0x23c   : > { %4794 = vmatpush1.bf16.msra.mxu1 %v11407_v54  ;;  %4479 = vmatprep.mubr.bf16.mxu1 %v12077_v33  ;;  %v4544_v54 = vor.u32 %v4543_v21, %v4540_v40  ;;  %v4583_v27 = vshrl.u32 %v4528_v2, 16  ;;  %v4639_v21 = vrot.slane %v4637_v43, 5 }
 0x23d   : > { %4795 = vmatprep.subr.bf16.mxu1 %v11412_v41  ;;  %v4574_v41 = vshrl.u32 %v13730_v58, 16  ;;  %v11428_v58 = vld [vmem:[%s15703_s5 + $0x370] ss:$8 sps:$4 sm:$0xff]  }
 0x23e   : > { %v4585_v0 = vrot.slane %v4583_v27, 5 }
 0x23f   : > { %v4576_v55 = vrot.slane %v4574_v41, 5  ;;  %v4676_v41 = vshll.u32 %v4533_v28, 16 }
 0x240   : > { %4796 = vmatpush1.bf16.msra.mxu1 %v11410_v62  ;;  %v4601_v62 = vshrl.u32 %v4529_v30, 16  ;;  %v4621_v30 = vrot.slane %v4619_v44, 5 }
 0x241   : > { %4797 = vmatprep.subr.bf16.mxu1 %v11415_v42  ;;  %v4594_v42 = vrot.slane %v4592_v16, 5  ;;  %v4580_v24 = vor.u32 %v4579_v38, %v4576_v55  ;;  %v4624_v16 = vrot.slane %v4622_v1, 6 }
 0x242   : > { %v4603_v47 = vrot.slane %v4601_v62, 5  ;;  %v4669_v62 = vrot.slane %v4667_v50, 6 }
 0x243   : > { %4480 = vmatmul.mubr.bf16.gmra.mrb[76].mxu1 %v9837_v10  ;;  %v4545_v10 = vrot.slane %v4544_v54, 4  ;;  %v4598_v11 = vor.u32 %v4597_v6, %v4594_v42  ;;  %v4648_v42 = vrot.slane %v4646_v3, 5 }
 0x244   : > { %4798 = vmatpush1.bf16.msra.mxu1 %v11413_v32  ;;  %4489 = vmatprep.mubr.bf16.mxu1 %v12077_v33  ;;  %v4586_v32 = vshll.u32 %v4528_v2, 16  ;;  %v4607_v36 = vor.u32 %v4606_v31, %v4603_v47  ;;  %v4673_v2 = vshrl.u32 %v4533_v28, 16 }
 0x245   : > { %4799 = vmatprep.subr.bf16.mxu1 %v11418_v26  ;;  %v4553_v26 = vor.u32 %v4552_v9, %v4549_v17  ;;  %v4599_v48 = vrot.slane %v4598_v11, 4  ;;  %v4532_v9 = vld [vmem:[#allocation2 + $0x50] sm:$0x3] }
 0x246   : > { %v4655_v23 = vshrl.u32 %v4532_v9, 16  ;;  %v4658_v63 = vshll.u32 %v4532_v9, 16 }
 0x247   : > { %v4554_v5 = vsel %vm13817_vm3, %v4545_v10, %v4553_v26 }
 0x248   : > { %4800 = vmatpush1.bf16.msra.mxu1 %v11416_v37  ;;  %v4657_v55 = vrot.slane %v4655_v23, 5  ;;  %v4660_v38 = vrot.slane %v4658_v63, 6 }
 0x249   : > { %4801 = vmatprep.subr.bf16.mxu1 %v11421_v53  ;;  %v4572_v53 = vsel %vm13817_vm3, %v4563_v7, %v4571_v59  ;;  %v4625_v59 = vor.u32 %v4624_v16, %v4621_v30 }
 0x24a   : > { %v9856_v29 = vcombine.low %v4554_v5, %v4572_v53  ;;  %v4661_v60 = vor.u32 %v4660_v38, %v4657_v55 }
 0x24b   : > { %4490 = vmatmul.mubr.bf16.gmra.mrb[80].mxu1 %v9838_v19  ;;  %v4610_v19 = vshrl.u32 %v13755_v25, 16 }
 0x24c   : > { %4802 = vmatpush1.bf16.msra.mxu1 %v11419_v8  ;;  %4499 = vmatprep.mubr.bf16.mxu1 %v12077_v33  ;;  %v4588_v8 = vrot.slane %v4586_v32, 6  ;;  %v4675_v32 = vrot.slane %v4673_v2, 5 }
 0x24d   : > { %4803 = vmatprep.subr.bf16.mxu1 %v11424_v61  ;;  %v4613_v61 = vshll.u32 %v13755_v25, 16  ;;  %v4612_v14 = vrot.slane %v4610_v19, 5  ;;  %v4608_v25 = vsel %vm13817_vm3, %v4599_v48, %v4607_v36 }
 0x24e   : > { %v4589_v13 = vor.u32 %v4588_v8, %v4585_v0  ;;  %v597_v8 = vlaneseq }
 0x24f   : > { %v4615_v40 = vrot.slane %v4613_v61, 6 }
 0x250   : > { %4804 = vmatpush1.bf16.msra.mxu1 %v11422_v12  ;;  %v4581_v12 = vrot.slane %v4580_v24, 4  ;;  %v13848_v5 = vshrl.u32 %v597_v8, 7 }
 0x251   : > { %4805 = vmatprep.subr.bf16.mxu1 %v11427_v35  ;;  %v4642_v35 = vrot.slane %v4640_v49, 6  ;;  %v4616_v17 = vor.u32 %v4615_v40, %v4612_v14 }
 0x252   : > { %v4590_v57 = vsel %vm13817_vm3, %v4581_v12, %v4589_v13  ;;  %v13851_v24 = vsub.s32 0, %v13848_v5  ;;  %v13857_v19 = vsub.s32 1, %v13848_v5 }
 0x253   : > { %4500 = vmatmul.mubr.bf16.gmra.mrb[84].mxu1 %v9839_v52  ;;  %v9857_v54 = vcombine.low %v4590_v57, %v4608_v25  ;;  %v4643_v52 = vor.u32 %v4642_v35, %v4639_v21  ;;  %v4617_v7 = vrot.slane %v4616_v17, 4 }
 0x254   : > { %4806 = vmatpush1.bf16.msra.mxu1 %v11425_v51  ;;  %4825 = vmatprep.mubr.bf16.mxu1 %v12077_v33  ;;  %v4649_v51 = vshll.u32 %v13784_v56, 16  ;;  %v13860_v61 = vrot.slane %v595_v4, %v13851_v24  ;;  %v13863_v37 = vrot.slane %v595_v4, %v13857_v19 }
 0x255   : > { %4807 = vmatprep.subr.bf16.mxu1 %v11430_v34  ;;  %v4666_v34 = vrot.slane %v4664_v18, 5  ;;  %v4644_v27 = vsel %vm13817_vm3, %v4635_v22, %v4643_v52  ;;  %v4626_v10 = vsel %vm13817_vm3, %v4617_v7, %v4625_v59  ;;  %v11458_v59 = vld [vmem:[%s15705_s7 + $0x130] ss:$8 sps:$4 sm:$0xff]  }
 0x256   : > { %v4651_v6 = vrot.slane %v4649_v51, 6  ;;  %v9858_v47 = vcombine.low %v4626_v10, %v4644_v27 }
 0x257   : > { %v4670_v56 = vor.u32 %v4669_v62, %v4666_v34 }
 0x258   : > { %4808 = vmatpush1.bf16.msra.mxu1 %v11428_v58  ;;  %v4678_v58 = vrot.slane %v4676_v41, 6  ;;  %v4652_v26 = vor.u32 %v4651_v6, %v4648_v42  ;;  %v11460_v42 = vld [vmem:[%s15705_s7 + $0x134] ss:$8 sps:$4 sm:$0xff]  }
 0x259   : > { %v4671_v31 = vrot.slane %v4670_v56, 4  ;;  %5224 = vmatprep.subr.bf16.mxu0 %v11460_v42 }
 0x25a   : > { %v4679_v53 = vor.u32 %v4678_v58, %v4675_v32  ;;  %v4653_v11 = vrot.slane %v4652_v26, 4  ;;  %5225 = vmatpush1.bf16.msra.mxu0 %v11458_v59  ;;  %v11465_v26 = vld [vmem:[%s15705_s7 + $0x4] ss:$8 sps:$4 sm:$0xff]   ;;  %v11499_v32 = vld [vmem:[%s15705_s7 + $0x140] ss:$8 sps:$4 sm:$0xff]  }
 0x25b   : > { %4826 = vmatmul.mubr.bf16.vlgmr.msra.gmra.mrb[72].mxu1 %v9856_v29  ;;  %5427 = vmatprep.subr.bf16.mxu0 %v11465_v26 }
 0x25c   : > { %4835 = vmatprep.mubr.bf16.mxu1 %v12077_v33  ;;  %v4680_v46 = vsel %vm13817_vm3, %v4671_v31, %v4679_v53  ;;  %v4662_v15 = vsel %vm13817_vm3, %v4653_v11, %v4661_v60  ;;  %v13946_v11 = vld [vmem:[#allocation3 + $0x8] sm:$0xff]  ;;  %v13948_v60 = vld [vmem:[#allocation3 + $0x10] sm:$0xff] }
 0x25d   : > { %v9859_v0 = vcombine.low %v4662_v15, %v4680_v46  ;;  %v9884_v8 = vcombine.low %v13946_v11, %v13948_v60  ;;  %v9885_v4 = vcombine.high %v13946_v11, %v13948_v60 }
 0x25f   : > { %9912 = vmatprep.mubr.msk.bf16.mxu0 %vm5193_vm7, %v9885_v4 }
 0x260   : > { %5239 = vmatmul.mubr.bf16.vlgmr.msra.gmra.mrb[16].mxu0 %v9884_v8 }
 0x263   : > { %4836 = vmatmul.mubr.bf16.gmra.mrb[76].mxu1 %v9857_v54 }
 0x264   : > { %4845 = vmatprep.mubr.bf16.mxu1 %v12077_v33 }
 0x26b   : > { %4846 = vmatmul.mubr.bf16.gmra.mrb[80].mxu1 %v9858_v47 }
 0x26c   : > { %4855 = vmatprep.mubr.bf16.mxu1 %v12077_v33 }
 0x273   : > { %4856 = vmatmul.mubr.bf16.gmra.mrb[84].mxu1 %v9859_v0 }
 0x27d   : > { %v1806_v29 = vpop.f32.mrb[0].mxu0 }
 0x27e   : > { %v10570_v43 = vadd.f32 %v1806_v29, %v13860_v61  ;;  %v1808_v49 = vpop.f32.mrb[1].mxu0  ;;  %v11463_v29 = vld [vmem:[%s15705_s7] ss:$8 sps:$4 sm:$0xff]  }
 0x27f   : > { %v10571_v48 = vadd.f32 %v1808_v49, %v13863_v37  ;;  %v1810_v36 = vpop.f32.mrb[2].mxu0  ;;  %5428 = vmatpush1.bf16.msra.mxu0 %v11463_v29 }
 0x280   : > { %v1845_v20 = vmax.f32 %v10570_v43, 0.0  ;;  %v10572_v45 = vadd.f32 %v1810_v36, %v13860_v61  ;;  %v1812_v44 = vpop.f32.mrb[3].mxu0  ;;  %v11468_v36 = vld [vmem:[%s15705_s7 + $0x14] ss:$8 sps:$4 sm:$0xff]  }
 0x281   : > { %v1846_v1 = vmax.f32 %v10571_v48, 0.0  ;;  %v10573_v12 = vadd.f32 %v1812_v44, %v13863_v37  ;;  %5429 = vmatprep.subr.bf16.mxu0 %v11468_v36 }
 0x282   : > { %v1847_v13 = vmax.f32 %v10572_v45, 0.0  ;;  %v11466_v45 = vld [vmem:[%s15705_s7 + $0x10] ss:$8 sps:$4 sm:$0xff]  }
 0x283   : > { %v1848_v14 = vmax.f32 %v10573_v12, 0.0  ;;  %5430 = vmatpush1.bf16.msra.mxu0 %v11466_v45  ;;  %v11474_v12 = vld [vmem:[%s15705_s7 + $0x34] ss:$8 sps:$4 sm:$0xff]  }
 0x284   : > { %v13869_v40 = vpack.c.bf16 %v1847_v13, %v1845_v20  ;;  %v11472_v13 = vld [vmem:[%s15705_s7 + $0x30] ss:$8 sps:$4 sm:$0xff]  }
 0x285   : > { %v13871_v21 = vpack.c.bf16 %v1848_v14, %v1846_v1  ;;  %v1816_v35 = vpop.f32.mrb[4].mxu0  ;;  %v11469_v1 = vld [vmem:[%s15705_s7 + $0x20] ss:$8 sps:$4 sm:$0xff]   ;;  %v11478_v14 = vld [vmem:[%s15705_s7 + $0x44] ss:$8 sps:$4 sm:$0xff]  }
 0x286   : > { %v10574_v25 = vadd.f32 %v1816_v35, %v13860_v61  ;;  %v1818_v39 = vpop.f32.mrb[5].mxu0  ;;  %v11476_v35 = vld [vmem:[%s15705_s7 + $0x40] ss:$8 sps:$4 sm:$0xff]  }
 0x287   : > { %v10575_v28 = vadd.f32 %v1818_v39, %v13863_v37  ;;  %v1820_v18 = vpop.f32.mrb[6].mxu0  ;;  %v11480_v39 = vld [vmem:[%s15705_s7 + $0x50] ss:$8 sps:$4 sm:$0xff]  }
 0x288   : > { %v1849_v50 = vmax.f32 %v10574_v25, 0.0  ;;  %v10576_v30 = vadd.f32 %v1820_v18, %v13860_v61  ;;  %v1822_v16 = vpop.f32.mrb[7].mxu0  ;;  %v11482_v25 = vld [vmem:[%s15705_s7 + $0x54] ss:$8 sps:$4 sm:$0xff]   ;;  %v11484_v18 = vld [vmem:[%s15705_s7 + $0x60] ss:$8 sps:$4 sm:$0xff]  }
 0x289   : > { %v1850_v57 = vmax.f32 %v10575_v28, 0.0  ;;  %v10577_v17 = vadd.f32 %v1822_v16, %v13863_v37  ;;  %v11486_v28 = vld [vmem:[%s15705_s7 + $0x64] ss:$8 sps:$4 sm:$0xff]  }
 0x28a   : > { %v1851_v9 = vmax.f32 %v10576_v30, 0.0  ;;  %v11488_v30 = vld [vmem:[%s15705_s7 + $0x70] ss:$8 sps:$4 sm:$0xff]   ;;  %v11494_v16 = vld [vmem:[%s15705_s7 + $0x84] ss:$8 sps:$4 sm:$0xff]  }
 0x28b   : > { %v1852_v3 = vmax.f32 %v10577_v17, 0.0  ;;  %v11498_v17 = vld [vmem:[%s15705_s7 + $0x94] ss:$8 sps:$4 sm:$0xff]  }
 0x28c   : > { %v13877_v51 = vpack.c.bf16 %v1851_v9, %v1849_v50  ;;  %v11490_v50 = vld [vmem:[%s15705_s7 + $0x74] ss:$8 sps:$4 sm:$0xff]   ;;  %v11496_v9 = vld [vmem:[%s15705_s7 + $0x90] ss:$8 sps:$4 sm:$0xff]  }
 0x28d   : > { %v13879_v54 = vpack.c.bf16 %v1852_v3, %v1850_v57  ;;  %v1826_v2 = vpop.f32.mrb[8].mxu0  ;;  %v11492_v57 = vld [vmem:[%s15705_s7 + $0x80] ss:$8 sps:$4 sm:$0xff]   ;;  %v11501_v3 = vld [vmem:[%s15705_s7 + $0x144] ss:$8 sps:$4 sm:$0xff]  }
 0x28e   : > { %v10578_v41 = vadd.f32 %v1826_v2, %v13860_v61  ;;  %v1828_v22 = vpop.f32.mrb[9].mxu0  ;;  %v4882_v2 = vld [vmem:[%s15704_s6] sm:$0x3] }
 0x28f   : > { %v1830_v52 = vpop.f32.mrb[10].mxu0  ;;  %v10579_v7 = vadd.f32 %v1828_v22, %v13863_v37  ;;  %v14028_v22 = vrot.slane %v4882_v2, %v13857_v19 }
 0x290   : > { %v1853_v34 = vmax.f32 %v10578_v41, 0.0  ;;  %v10580_v62 = vadd.f32 %v1830_v52, %v13860_v61  ;;  %v1832_v6 = vpop.f32.mrb[11].mxu0  ;;  %v14025_v41 = vrot.slane %v4882_v2, %v13851_v24 }
 0x291   : > { %v1854_v27 = vmax.f32 %v10579_v7, 0.0  ;;  %v10581_v56 = vadd.f32 %v1832_v6, %v13863_v37 }
 0x292   : > { %v1855_v23 = vmax.f32 %v10580_v62, 0.0 }
 0x293   : > { %v1856_v58 = vmax.f32 %v10581_v56, 0.0 }
 0x294   : > { %v13883_v63 = vpack.c.bf16 %v1855_v23, %v1853_v34 }
 0x295   : > { %v13939_v10 = vpack.c.bf16 %v1856_v58, %v1854_v27  ;;  %v1836_v55 = vpop.f32.mrb[12].mxu0 }
 0x296   : > { %v10582_v38 = vadd.f32 %v1836_v55, %v13860_v61  ;;  %v1838_v47 = vpop.f32.mrb[13].mxu0 }
 0x297   : > { %v10583_v31 = vadd.f32 %v1838_v47, %v13863_v37  ;;  %v1840_v53 = vpop.f32.mrb[14].mxu0 }
 0x298   : > { %v1857_v46 = vmax.f32 %v10582_v38, 0.0  ;;  %v10584_v15 = vadd.f32 %v1840_v53, %v13860_v61  ;;  %v1842_v0 = vpop.f32.mrb[15].mxu0 }
 0x299   : > { %v1858_v43 = vmax.f32 %v10583_v31, 0.0  ;;  %v10585_v49 = vadd.f32 %v1842_v0, %v13863_v37  ;;  %v11471_v37 = vld [vmem:[%s15705_s7 + $0x24] ss:$8 sps:$4 sm:$0xff]  }
 0x29a   : > { %v1859_v48 = vmax.f32 %v10584_v15, 0.0  ;;  %5431 = vmatprep.subr.bf16.mxu0 %v11471_v37 }
 0x29b   : > { %v1860_v61 = vmax.f32 %v10585_v49, 0.0  ;;  %5432 = vmatpush1.bf16.msra.mxu0 %v11469_v1 }
 0x29c   : > { %v13963_v20 = vpack.c.bf16 %v1859_v48, %v1857_v46  ;;  %5433 = vmatprep.subr.bf16.mxu0 %v11474_v12 }
 0x29d   : > { %v13968_v44 = vpack.c.bf16 %v1860_v61, %v1858_v43 }
 0x29f   : > { %5434 = vmatpush1.bf16.msra.mxu0 %v11472_v13 }
 0x2a0   : > { %5435 = vmatprep.subr.bf16.mxu0 %v11478_v14 }
 0x2a3   : > { %5436 = vmatpush1.bf16.msra.mxu0 %v11476_v35 }
 0x2a4   : > { %5437 = vmatprep.subr.bf16.mxu0 %v11482_v25 }
 0x2a7   : > { %5438 = vmatpush1.bf16.msra.mxu0 %v11480_v39 }
 0x2a8   : > { %5439 = vmatprep.subr.bf16.mxu0 %v11486_v28 }
 0x2ab   : > { %5440 = vmatpush1.bf16.msra.mxu0 %v11484_v18 }
 0x2ac   : > { %5441 = vmatprep.subr.bf16.mxu0 %v11490_v50 }
 0x2af   : > { %5442 = vmatpush1.bf16.msra.mxu0 %v11488_v30 }
 0x2b0   : > { %5443 = vmatprep.subr.bf16.mxu0 %v11494_v16 }
 0x2b3   : > { %5444 = vmatpush1.bf16.msra.mxu0 %v11492_v57 }
 0x2b4   : > { %5445 = vmatprep.subr.bf16.mxu0 %v11498_v17 }
 0x2b7   : > { %5446 = vmatpush1.bf16.msra.mxu0 %v11496_v9 }
 0x2b8   : > { %5677 = vmatprep.subr.bf16.mxu0 %v11501_v3 }
 0x32e   : > { %v4827_v52 = vpop.f32.mrb[72].mxu1 }
 0x32f   : > { %v4894_v34 = vadd.f32 %v14025_v41, %v4827_v52  ;;  %v4829_v62 = vpop.f32.mrb[73].mxu1 }
 0x330   : > { %v4895_v23 = vadd.f32 %v14028_v22, %v4829_v62  ;;  %v4831_v7 = vpop.f32.mrb[74].mxu1 }
 0x331   : > { %v4910_v59 = vmax.f32 %v4894_v34, 0.0  ;;  %v4896_v42 = vadd.f32 %v14025_v41, %v4831_v7  ;;  %v4833_v6 = vpop.f32.mrb[75].mxu1 }
 0x332   : > { %v4911_v27 = vmax.f32 %v4895_v23, 0.0  ;;  %v4897_v56 = vadd.f32 %v14028_v22, %v4833_v6 }
 0x333   : > { %v4912_v58 = vmax.f32 %v4896_v42, 0.0 }
 0x334   : > { %v10378_v26 = vpack.c.bf16 %v4911_v27, %v4910_v59  ;;  %v4913_v55 = vmax.f32 %v4897_v56, 0.0 }
 0x336   : > { %4992 = vst.msk [vmem:[#allocation3 + $0x18] sm:$0xff] %vm13893_vm6, %v10378_v26  ;;  %v10379_v38 = vpack.c.bf16 %v4913_v55, %v4912_v58  ;;  %v4837_v47 = vpop.f32.mrb[76].mxu1 }
 0x337   : > { %v4898_v31 = vadd.f32 %v14025_v41, %v4837_v47  ;;  %v4839_v53 = vpop.f32.mrb[77].mxu1 }
 0x338   : > { %4993 = vst.msk [vmem:[#allocation3 + $0x20] sm:$0xff] %vm13893_vm6, %v10379_v38  ;;  %v4899_v46 = vadd.f32 %v14028_v22, %v4839_v53  ;;  %v4841_v15 = vpop.f32.mrb[78].mxu1  ;;  %v5000_v53 = vld [vmem:[#allocation3] sm:$0xff] }
 0x339   : > { %v4914_v0 = vmax.f32 %v4898_v31, 0.0  ;;  %v4900_v8 = vadd.f32 %v14025_v41, %v4841_v15  ;;  %v4843_v4 = vpop.f32.mrb[79].mxu1 }
 0x33a   : > { %v4915_v29 = vmax.f32 %v4899_v46, 0.0  ;;  %v4901_v43 = vadd.f32 %v14028_v22, %v4843_v4  ;;  %v9916_v4 = vcombine.low %v5000_v53, %v13946_v11 }
 0x33b   : > { %v4916_v49 = vmax.f32 %v4900_v8, 0.0  ;;  %v9917_v8 = vcombine.high %v5000_v53, %v13946_v11  ;;  %v11507_v11 = vld [vmem:[%s15705_s7 + $0x164] ss:$8 sps:$4 sm:$0xff]   ;;  %v11551_v53 = vld [vmem:[%s15705_s7 + $0x240] ss:$8 sps:$4 sm:$0xff]  }
 0x33c   : > { %v10380_v48 = vpack.c.bf16 %v4915_v29, %v4914_v0  ;;  %v4917_v36 = vmax.f32 %v4901_v43, 0.0  ;;  %v11504_v29 = vld [vmem:[%s15705_s7 + $0x154] ss:$8 sps:$4 sm:$0xff]  }
 0x33d   : > { %v14045_v12 = vld [vmem:[#allocation3 + $0x18] sm:$0xff] }
 0x33e   : > { %4994 = vst.msk [vmem:[#allocation3 + $0x28] sm:$0xff] %vm13893_vm6, %v10380_v48  ;;  %v10381_v61 = vpack.c.bf16 %v4917_v36, %v4916_v49  ;;  %v4847_v45 = vpop.f32.mrb[80].mxu1  ;;  %v9919_v43 = vcombine.high %v13948_v60, %v14045_v12  ;;  %v11502_v49 = vld [vmem:[%s15705_s7 + $0x150] ss:$8 sps:$4 sm:$0xff]   ;;  %v11505_v48 = vld [vmem:[%s15705_s7 + $0x160] ss:$8 sps:$4 sm:$0xff]   ;;  %v9918_v36 = vcombine.low %v13948_v60, %v14045_v12 }
 0x33f   : > { %v4902_v37 = vadd.f32 %v14025_v41, %v4847_v45  ;;  %v4849_v1 = vpop.f32.mrb[81].mxu1  ;;  %v14047_v13 = vld [vmem:[#allocation3 + $0x20] sm:$0xff] }
 0x340   : > { %4995 = vst.msk [vmem:[#allocation3 + $0x30] sm:$0xff] %vm13893_vm6, %v10381_v61  ;;  %v4903_v14 = vadd.f32 %v14028_v22, %v4849_v1  ;;  %v4851_v35 = vpop.f32.mrb[82].mxu1  ;;  %v14054_v25 = vcombine.high %v14045_v12, %v14047_v13  ;;  %v14058_v39 = vcombine.low %v14045_v12, %v14047_v13  ;;  %v11510_v61 = vld [vmem:[%s15705_s7 + $0x174] ss:$8 sps:$4 sm:$0xff]   ;;  %v11513_v60 = vld [vmem:[%s15705_s7 + $0x184] ss:$8 sps:$4 sm:$0xff]  }
 0x341   : > { %v4918_v28 = vmax.f32 %v4902_v37, 0.0  ;;  %v4904_v18 = vadd.f32 %v14025_v41, %v4851_v35  ;;  %v4853_v50 = vpop.f32.mrb[83].mxu1  ;;  %v11508_v37 = vld [vmem:[%s15705_s7 + $0x170] ss:$8 sps:$4 sm:$0xff]   ;;  %v11511_v1 = vld [vmem:[%s15705_s7 + $0x180] ss:$8 sps:$4 sm:$0xff]  }
 0x342   : > { %v4919_v30 = vmax.f32 %v4903_v14, 0.0  ;;  %v4905_v16 = vadd.f32 %v14028_v22, %v4853_v50  ;;  %9913 = vmatprep.mubr.msk.bf16.mxu0 %vm5193_vm7, %v14054_v25  ;;  %v11517_v14 = vld [vmem:[%s15705_s7 + $0x194] ss:$8 sps:$4 sm:$0xff]  }
 0x343   : > { %v4920_v57 = vmax.f32 %v4904_v18, 0.0  ;;  %5249 = vmatmul.mubr.bf16.gmra.mrb[20].mxu0 %v14058_v39  ;;  %v11518_v18 = vld [vmem:[%s15705_s7 + $0x1a0] ss:$8 sps:$4 sm:$0xff]  }
 0x344   : > { %v10382_v17 = vpack.c.bf16 %v4919_v30, %v4918_v28  ;;  %v4921_v9 = vmax.f32 %v4905_v16, 0.0  ;;  %v11515_v28 = vld [vmem:[%s15705_s7 + $0x190] ss:$8 sps:$4 sm:$0xff]   ;;  %v11524_v30 = vld [vmem:[%s15705_s7 + $0x1b4] ss:$8 sps:$4 sm:$0xff]  }
 0x345   : > { %v5033_v62 = vld [vmem:[#allocation3 + $0x28] sm:$0xff]  ;;  %v11522_v16 = vld [vmem:[%s15705_s7 + $0x1b0] ss:$8 sps:$4 sm:$0xff]  }
 0x346   : > { %4996 = vst.msk [vmem:[#allocation3 + $0x38] sm:$0xff] %vm13893_vm6, %v10382_v17  ;;  %v10383_v3 = vpack.c.bf16 %v4921_v9, %v4920_v57  ;;  %v4857_v2 = vpop.f32.mrb[84].mxu1  ;;  %v14126_v45 = vcombine.high %v14047_v13, %v5033_v62  ;;  %v14140_v12 = vcombine.low %v14047_v13, %v5033_v62  ;;  %v11520_v13 = vld [vmem:[%s15705_s7 + $0x1a4] ss:$8 sps:$4 sm:$0xff]   ;;  %v11525_v17 = vld [vmem:[%s15705_s7 + $0x1c0] ss:$8 sps:$4 sm:$0xff]  }
 0x347   : > { %v4906_v52 = vadd.f32 %v14025_v41, %v4857_v2  ;;  %v4859_v34 = vpop.f32.mrb[85].mxu1  ;;  %v14068_v23 = vld [vmem:[#allocation3 + $0x30] sm:$0xff]  ;;  %v11527_v57 = vld [vmem:[%s15705_s7 + $0x1c4] ss:$8 sps:$4 sm:$0xff]  }
 0x348   : > { %4997 = vst.msk [vmem:[#allocation3 + $0x40] sm:$0xff] %vm13893_vm6, %v10383_v3  ;;  %v4907_v7 = vadd.f32 %v14028_v22, %v4859_v34  ;;  %v4861_v59 = vpop.f32.mrb[86].mxu1  ;;  %v14074_v42 = vcombine.high %v5033_v62, %v14068_v23  ;;  %v14077_v6 = vcombine.low %v5033_v62, %v14068_v23  ;;  %v11530_v9 = vld [vmem:[%s15705_s7 + $0x1d4] ss:$8 sps:$4 sm:$0xff]   ;;  %v11528_v3 = vld [vmem:[%s15705_s7 + $0x1d0] ss:$8 sps:$4 sm:$0xff]  }
 0x349   : > { %v4922_v27 = vmax.f32 %v4906_v52, 0.0  ;;  %v4908_v56 = vadd.f32 %v14025_v41, %v4861_v59  ;;  %v4863_v58 = vpop.f32.mrb[87].mxu1  ;;  %v11533_v2 = vld [vmem:[%s15705_s7 + $0x1e4] ss:$8 sps:$4 sm:$0xff]   ;;  %v11531_v52 = vld [vmem:[%s15705_s7 + $0x1e0] ss:$8 sps:$4 sm:$0xff]  }
 0x34a   : > { %v4923_v26 = vmax.f32 %v4907_v7, 0.0  ;;  %v4909_v55 = vadd.f32 %v14028_v22, %v4863_v58  ;;  %9914 = vmatprep.mubr.msk.bf16.mxu0 %vm5193_vm7, %v14074_v42  ;;  %v11536_v34 = vld [vmem:[%s15705_s7 + $0x1f4] ss:$8 sps:$4 sm:$0xff]   ;;  %v11534_v62 = vld [vmem:[%s15705_s7 + $0x1f0] ss:$8 sps:$4 sm:$0xff]  }
 0x34b   : > { %v4924_v38 = vmax.f32 %v4908_v56, 0.0  ;;  %5259 = vmatmul.mubr.bf16.gmra.mrb[24].mxu0 %v14077_v6  ;;  %v11537_v7 = vld [vmem:[%s15705_s7 + $0x200] ss:$8 sps:$4 sm:$0xff]   ;;  %v11542_v59 = vld [vmem:[%s15705_s7 + $0x214] ss:$8 sps:$4 sm:$0xff]  }
 0x34c   : > { %v10384_v47 = vpack.c.bf16 %v4923_v26, %v4922_v27  ;;  %v4925_v31 = vmax.f32 %v4909_v55, 0.0  ;;  %v11540_v27 = vld [vmem:[%s15705_s7 + $0x210] ss:$8 sps:$4 sm:$0xff]   ;;  %v11545_v56 = vld [vmem:[%s15705_s7 + $0x224] ss:$8 sps:$4 sm:$0xff]  }
 0x34d   : > { %v5035_v15 = vld [vmem:[#allocation3 + $0x38] sm:$0xff]  ;;  %v11543_v26 = vld [vmem:[%s15705_s7 + $0x220] ss:$8 sps:$4 sm:$0xff]  }
 0x34e   : > { %4998 = vst.msk [vmem:[#allocation3 + $0x48] sm:$0xff] %vm13893_vm6, %v10384_v47  ;;  %v10385_v46 = vpack.c.bf16 %v4925_v31, %v4924_v38  ;;  %v14146_v35 = vcombine.high %v14068_v23, %v5035_v15  ;;  %v14161_v50 = vcombine.low %v14068_v23, %v5035_v15  ;;  %v11539_v23 = vld [vmem:[%s15705_s7 + $0x204] ss:$8 sps:$4 sm:$0xff]   ;;  %v11549_v55 = vld [vmem:[%s15705_s7 + $0x234] ss:$8 sps:$4 sm:$0xff]  }
 0x34f   : > { %v14086_v0 = vld [vmem:[#allocation3 + $0x40] sm:$0xff]  ;;  %v11547_v47 = vld [vmem:[%s15705_s7 + $0x230] ss:$8 sps:$4 sm:$0xff]  }
 0x350   : > { %4999 = vst.msk [vmem:[#allocation3 + $0x50] sm:$0xff] %vm13893_vm6, %v10385_v46  ;;  %v14091_v41 = vcombine.high %v5035_v15, %v14086_v0  ;;  %v14094_v22 = vcombine.low %v5035_v15, %v14086_v0  ;;  %v11553_v31 = vld [vmem:[%s15705_s7 + $0x244] ss:$8 sps:$4 sm:$0xff]   ;;  %v11556_v15 = vld [vmem:[%s15705_s7 + $0x254] ss:$8 sps:$4 sm:$0xff]  }
 0x352   : > { %9915 = vmatprep.mubr.msk.bf16.mxu0 %vm5193_vm7, %v14091_v41 }
 0x353   : > { %5269 = vmatmul.mubr.bf16.gmra.mrb[28].mxu0 %v14094_v22 }
 0x354   : > { %9944 = vmatprep.mubr.msk.bf16.mxu0 %vm5193_vm7, %v9917_v8  ;;  %v11554_v8 = vld [vmem:[%s15705_s7 + $0x250] ss:$8 sps:$4 sm:$0xff]  }
 0x355   : > { %v14215_v58 = vld [vmem:[#allocation3 + $0x48] sm:$0xff] }
 0x356   : > { %v14225_v38 = vcombine.high %v14086_v0, %v14215_v58  ;;  %v14241_v46 = vcombine.low %v14086_v0, %v14215_v58  ;;  %v11559_v0 = vld [vmem:[%s15705_s7 + $0x264] ss:$8 sps:$4 sm:$0xff]  }
 0x35b   : > { %5460 = vmatmul.mubr.bf16.vlgmr.msra.gmra.mrb[16].mxu0 %v9916_v4  ;;  %v11557_v4 = vld [vmem:[%s15705_s7 + $0x260] ss:$8 sps:$4 sm:$0xff]  }
 0x35c   : > { %5678 = vmatpush1.bf16.msra.mxu0 %v11499_v32  ;;  %9945 = vmatprep.mubr.msk.bf16.mxu0 %vm5193_vm7, %v9919_v43  ;;  %v11562_v32 = vld [vmem:[%s15705_s7 + $0x274] ss:$8 sps:$4 sm:$0xff]  }
 0x35d   : > { %5679 = vmatprep.subr.bf16.mxu0 %v11504_v29  ;;  %v11565_v29 = vld [vmem:[%s15705_s7 + $0x284] ss:$8 sps:$4 sm:$0xff]  }
 0x360   : > { %5680 = vmatpush1.bf16.msra.mxu0 %v11502_v49  ;;  %v11568_v49 = vld [vmem:[%s15705_s7 + $0x294] ss:$8 sps:$4 sm:$0xff]  }
 0x361   : > { %5681 = vmatprep.subr.bf16.mxu0 %v11507_v11  ;;  %v11566_v11 = vld [vmem:[%s15705_s7 + $0x290] ss:$8 sps:$4 sm:$0xff]  }
 0x363   : > { %5470 = vmatmul.mubr.bf16.gmra.mrb[20].mxu0 %v9918_v36 }
 0x364   : > { %5682 = vmatpush1.bf16.msra.mxu0 %v11505_v48  ;;  %9946 = vmatprep.mubr.msk.bf16.mxu0 %vm5193_vm7, %v14126_v45  ;;  %v11571_v48 = vld [vmem:[%s15705_s7 + $0x2a4] ss:$8 sps:$4 sm:$0xff]  }
 0x365   : > { %5683 = vmatprep.subr.bf16.mxu0 %v11510_v61  ;;  %v11572_v61 = vld [vmem:[%s15705_s7 + $0x2b0] ss:$8 sps:$4 sm:$0xff]  }
 0x368   : > { %5684 = vmatpush1.bf16.msra.mxu0 %v11508_v37  ;;  %v11577_v37 = vld [vmem:[%s15705_s7 + $0x2c4] ss:$8 sps:$4 sm:$0xff]  }
 0x369   : > { %5685 = vmatprep.subr.bf16.mxu0 %v11513_v60  ;;  %v14297_v60 = vld [vmem:[#allocation3 + $0x50] sm:$0xff] }
 0x36b   : > { %5480 = vmatmul.mubr.bf16.gmra.mrb[24].mxu0 %v14140_v12 }
 0x36c   : > { %5686 = vmatpush1.bf16.msra.mxu0 %v11511_v1  ;;  %9947 = vmatprep.mubr.msk.bf16.mxu0 %vm5193_vm7, %v14146_v35  ;;  %v11575_v1 = vld [vmem:[%s15705_s7 + $0x2c0] ss:$8 sps:$4 sm:$0xff]  }
 0x36d   : > { %5687 = vmatprep.subr.bf16.mxu0 %v11517_v14  ;;  %v11581_v14 = vld [vmem:[%s15705_s7 + $0x2d4] ss:$8 sps:$4 sm:$0xff]  }
 0x370   : > { %5688 = vmatpush1.bf16.msra.mxu0 %v11515_v28  ;;  %v14307_v28 = vcombine.high %v14215_v58, %v14297_v60 }
 0x371   : > { %5689 = vmatprep.subr.bf16.mxu0 %v11520_v13  ;;  %v11664_v13 = vld [vmem:[%s15708_s10 + $0x8] ss:$36 sps:$4 sm:$0xff]  }
 0x373   : > { %5490 = vmatmul.mubr.bf16.gmra.mrb[28].mxu0 %v14161_v50 }
 0x374   : > { %5690 = vmatpush1.bf16.msra.mxu0 %v11518_v18  ;;  %9976 = vmatprep.mubr.msk.bf16.mxu0 %vm5193_vm7, %v9919_v43  ;;  %v11563_v43 = vld [vmem:[%s15705_s7 + $0x280] ss:$8 sps:$4 sm:$0xff]   ;;  %v11579_v18 = vld [vmem:[%s15705_s7 + $0x2d0] ss:$8 sps:$4 sm:$0xff]  }
 0x375   : > { %5691 = vmatprep.subr.bf16.mxu0 %v11524_v30  ;;  %v11666_v30 = vld [vmem:[%s15708_s10 + $0xc] ss:$36 sps:$4 sm:$0xff]  }
 0x376   : > { %7758 = vmatprep.subr.bf16.mxu1 %v11666_v30  ;;  %v11617_v30 = vld [vmem:[%s15705_s7 + $0x384] ss:$8 sps:$4 sm:$0xff]  }
 0x377   : > { %7759 = vmatpush1.bf16.msra.mxu1 %v11664_v13 }
 0x378   : > { %5692 = vmatpush1.bf16.msra.mxu0 %v11522_v16  ;;  %v11585_v16 = vld [vmem:[%s15705_s7 + $0x2e4] ss:$8 sps:$4 sm:$0xff]  }
 0x379   : > { %5693 = vmatprep.subr.bf16.mxu0 %v11527_v57  ;;  %v11672_v57 = vld [vmem:[%s15708_s10 + $0x54] ss:$36 sps:$4 sm:$0xff]  }
 0x37a   : > { %7760 = vmatprep.subr.bf16.mxu1 %v11672_v57 }
 0x37c   : > { %5694 = vmatpush1.bf16.msra.mxu0 %v11525_v17  ;;  %v11670_v17 = vld [vmem:[%s15708_s10 + $0x50] ss:$36 sps:$4 sm:$0xff]  }
 0x37d   : > { %5695 = vmatprep.subr.bf16.mxu0 %v11530_v9  ;;  %v11583_v9 = vld [vmem:[%s15705_s7 + $0x2e0] ss:$8 sps:$4 sm:$0xff]   ;;  %7761 = vmatpush1.bf16.msra.mxu1 %v11670_v17  ;;  %v11620_v17 = vld [vmem:[%s15705_s7 + $0x394] ss:$8 sps:$4 sm:$0xff]  }
 0x380   : > { %5696 = vmatpush1.bf16.msra.mxu0 %v11528_v3  ;;  %v14335_v3 = vcombine.low %v14215_v58, %v14297_v60  ;;  %v11688_v58 = vld [vmem:[%s15708_s10 + $0x128] ss:$36 sps:$4 sm:$0xff]  }
 0x381   : > { %5942 = vmatprep.subr.bf16.mxu0 %v11533_v2  ;;  %v11588_v2 = vld [vmem:[%s15705_s7 + $0x2f4] ss:$8 sps:$4 sm:$0xff]  }
 0x383   : > { %5710 = vmatmul.mubr.bf16.vlgmr.msra.gmra.mrb[16].mxu0 %v9918_v36  ;;  %v11569_v36 = vld [vmem:[%s15705_s7 + $0x2a0] ss:$8 sps:$4 sm:$0xff]  }
 0x384   : > { %9977 = vmatprep.mubr.msk.bf16.mxu0 %vm5193_vm7, %v14126_v45  ;;  %5943 = vmatpush1.bf16.msra.mxu0 %v11531_v52  ;;  %v11678_v52 = vld [vmem:[%s15708_s10 + $0x9c] ss:$36 sps:$4 sm:$0xff]  }
 0x385   : > { %5944 = vmatprep.subr.bf16.mxu0 %v11536_v34  ;;  %v11676_v34 = vld [vmem:[%s15708_s10 + $0x98] ss:$36 sps:$4 sm:$0xff]   ;;  %7762 = vmatprep.subr.bf16.mxu1 %v11678_v52 }
 0x386   : > { %7763 = vmatpush1.bf16.msra.mxu1 %v11676_v34  ;;  %v11626_v52 = vld [vmem:[%s15705_s7 + $0x3b4] ss:$8 sps:$4 sm:$0xff]   ;;  %v11629_v34 = vld [vmem:[%s15705_s7 + $0x3c4] ss:$8 sps:$4 sm:$0xff]  }
 0x388   : > { %5945 = vmatpush1.bf16.msra.mxu0 %v11534_v62  ;;  %v11586_v62 = vld [vmem:[%s15705_s7 + $0x2f0] ss:$8 sps:$4 sm:$0xff]  }
 0x389   : > { %5946 = vmatprep.subr.bf16.mxu0 %v11539_v23  ;;  %v11684_v23 = vld [vmem:[%s15708_s10 + $0xe4] ss:$36 sps:$4 sm:$0xff]  }
 0x38a   : > { %7764 = vmatprep.subr.bf16.mxu1 %v11684_v23  ;;  %v11632_v23 = vld [vmem:[%s15705_s7 + $0x3d4] ss:$8 sps:$4 sm:$0xff]  }
 0x38b   : > { %5720 = vmatmul.mubr.bf16.gmra.mrb[20].mxu0 %v14140_v12 }
 0x38c   : > { %9978 = vmatprep.mubr.msk.bf16.mxu0 %vm5193_vm7, %v14146_v35  ;;  %5947 = vmatpush1.bf16.msra.mxu0 %v11537_v7  ;;  %v11591_v7 = vld [vmem:[%s15705_s7 + $0x304] ss:$8 sps:$4 sm:$0xff]  }
 0x38d   : > { %5948 = vmatprep.subr.bf16.mxu0 %v11542_v59  ;;  %v11682_v59 = vld [vmem:[%s15708_s10 + $0xe0] ss:$36 sps:$4 sm:$0xff]  }
 0x38e   : > { %7765 = vmatpush1.bf16.msra.mxu1 %v11682_v59  ;;  %v11635_v59 = vld [vmem:[%s15705_s7 + $0x3e4] ss:$8 sps:$4 sm:$0xff]  }
 0x390   : > { %5949 = vmatpush1.bf16.msra.mxu0 %v11540_v27  ;;  %v11690_v27 = vld [vmem:[%s15708_s10 + $0x12c] ss:$36 sps:$4 sm:$0xff]  }
 0x391   : > { %5950 = vmatprep.subr.bf16.mxu0 %v11545_v56  ;;  %v11594_v56 = vld [vmem:[%s15705_s7 + $0x314] ss:$8 sps:$4 sm:$0xff]   ;;  %7766 = vmatprep.subr.bf16.mxu1 %v11690_v27  ;;  %v11641_v27 = vld [vmem:[%s15705_s7 + $0x404] ss:$8 sps:$4 sm:$0xff]  }
 0x392   : > { %7767 = vmatpush1.bf16.msra.mxu1 %v11688_v58  ;;  %v11644_v58 = vld [vmem:[%s15705_s7 + $0x414] ss:$8 sps:$4 sm:$0xff]  }
 0x393   : > { %5730 = vmatmul.mubr.bf16.gmra.mrb[24].mxu0 %v14161_v50 }
 0x394   : > { %9979 = vmatprep.mubr.msk.bf16.mxu0 %vm5193_vm7, %v14225_v38  ;;  %5951 = vmatpush1.bf16.msra.mxu0 %v11543_v26  ;;  %v11592_v26 = vld [vmem:[%s15705_s7 + $0x310] ss:$8 sps:$4 sm:$0xff]  }
 0x395   : > { %5952 = vmatprep.subr.bf16.mxu0 %v11549_v55  ;;  %v11696_v55 = vld [vmem:[%s15708_s10 + $0x174] ss:$36 sps:$4 sm:$0xff]  }
 0x396   : > { %7768 = vmatprep.subr.bf16.mxu1 %v11696_v55  ;;  %v11649_v55 = vld [vmem:[%s15705_s7 + $0x424] ss:$8 sps:$4 sm:$0xff]  }
 0x398   : > { %5953 = vmatpush1.bf16.msra.mxu0 %v11547_v47  ;;  %v11597_v47 = vld [vmem:[%s15705_s7 + $0x324] ss:$8 sps:$4 sm:$0xff]  }
 0x399   : > { %5954 = vmatprep.subr.bf16.mxu0 %v11553_v31  ;;  %v11694_v31 = vld [vmem:[%s15708_s10 + $0x170] ss:$36 sps:$4 sm:$0xff]  }
 0x39a   : > { %7769 = vmatpush1.bf16.msra.mxu1 %v11694_v31  ;;  %v11652_v31 = vld [vmem:[%s15705_s7 + $0x434] ss:$8 sps:$4 sm:$0xff]  }
 0x39b   : > { %5740 = vmatmul.mubr.bf16.gmra.mrb[28].mxu0 %v14241_v46 }
 0x39c   : > { %5955 = vmatpush1.bf16.msra.mxu0 %v11551_v53  ;;  %10008 = vmatprep.mubr.msk.bf16.mxu0 %vm5193_vm7, %v14054_v25  ;;  %v11560_v25 = vld [vmem:[%s15705_s7 + $0x270] ss:$8 sps:$4 sm:$0xff]   ;;  %v11595_v53 = vld [vmem:[%s15705_s7 + $0x320] ss:$8 sps:$4 sm:$0xff]  }
 0x39d   : > { %5956 = vmatprep.subr.bf16.mxu0 %v11556_v15  ;;  %v11600_v15 = vld [vmem:[%s15705_s7 + $0x334] ss:$8 sps:$4 sm:$0xff]  }
 0x3a0   : > { %5957 = vmatpush1.bf16.msra.mxu0 %v11554_v8  ;;  %v11702_v8 = vld [vmem:[%s15708_s10 + $0x1bc] ss:$36 sps:$4 sm:$0xff]  }
 0x3a1   : > { %5958 = vmatprep.subr.bf16.mxu0 %v11559_v0  ;;  %v11700_v0 = vld [vmem:[%s15708_s10 + $0x1b8] ss:$36 sps:$4 sm:$0xff]   ;;  %7770 = vmatprep.subr.bf16.mxu1 %v11702_v8  ;;  %v11653_v8 = vld [vmem:[%s15705_s7 + $0x440] ss:$8 sps:$4 sm:$0xff]  }
 0x3a2   : > { %7771 = vmatpush1.bf16.msra.mxu1 %v11700_v0  ;;  %v11658_v0 = vld [vmem:[%s15705_s7 + $0x454] ss:$8 sps:$4 sm:$0xff]  }
 0x3a4   : > { %5959 = vmatpush1.bf16.msra.mxu0 %v11557_v4  ;;  %v11598_v4 = vld [vmem:[%s15705_s7 + $0x330] ss:$8 sps:$4 sm:$0xff]  }
 0x3a5   : > { %5960 = vmatprep.subr.bf16.mxu0 %v11562_v32  ;;  %v11708_v32 = vld [vmem:[%s15708_s10 + $0x204] ss:$36 sps:$4 sm:$0xff]  }
 0x3a6   : > { %7772 = vmatprep.subr.bf16.mxu1 %v11708_v32  ;;  %v11661_v32 = vld [vmem:[%s15708_s10] ss:$36 sps:$4 sm:$0xff]  }
 0x3a8   : > { %5961 = vmatpush1.bf16.msra.mxu0 %v11560_v25  ;;  %v11706_v25 = vld [vmem:[%s15708_s10 + $0x200] ss:$36 sps:$4 sm:$0xff]  }
 0x3a9   : > { %6208 = vmatprep.subr.bf16.mxu0 %v11565_v29  ;;  %v11601_v29 = vld [vmem:[%s15705_s7 + $0x340] ss:$8 sps:$4 sm:$0xff]   ;;  %7773 = vmatpush1.bf16.msra.mxu1 %v11706_v25 }
 0x3aa   : > { %v11667_v25 = vld [vmem:[%s15708_s10 + $0x48] ss:$36 sps:$4 sm:$0xff]  }
 0x3ab   : > { %5975 = vmatmul.mubr.bf16.vlgmr.msra.gmra.mrb[16].mxu0 %v14058_v39  ;;  %v11574_v39 = vld [vmem:[%s15705_s7 + $0x2b4] ss:$8 sps:$4 sm:$0xff]  }
 0x3ac   : > { %10009 = vmatprep.mubr.msk.bf16.mxu0 %vm5193_vm7, %v14074_v42  ;;  %6209 = vmatpush1.bf16.msra.mxu0 %v11563_v43  ;;  %v11606_v43 = vld [vmem:[%s15705_s7 + $0x354] ss:$8 sps:$4 sm:$0xff]  }
 0x3ad   : > { %6210 = vmatprep.subr.bf16.mxu0 %v11568_v49  ;;  %v11714_v49 = vld [vmem:[%s15708_s10 + $0x24c] ss:$36 sps:$4 sm:$0xff]  }
 0x3ae   : > { %7774 = vmatprep.subr.bf16.mxu1 %v11714_v49  ;;  %v6571_v49 = vld [vmem:[#allocation3 + $0x68] sm:$0xff] }
 0x3b0   : > { %6211 = vmatpush1.bf16.msra.mxu0 %v11566_v11  ;;  %v11712_v11 = vld [vmem:[%s15708_s10 + $0x248] ss:$36 sps:$4 sm:$0xff]  }
 0x3b1   : > { %6212 = vmatprep.subr.bf16.mxu0 %v11571_v48  ;;  %v11604_v48 = vld [vmem:[%s15705_s7 + $0x350] ss:$8 sps:$4 sm:$0xff]   ;;  %7775 = vmatpush1.bf16.msra.mxu1 %v11712_v11  ;;  %v11687_v11 = vld [vmem:[%s15708_s10 + $0x124] ss:$36 sps:$4 sm:$0xff]  }
 0x3b3   : > { %5985 = vmatmul.mubr.bf16.gmra.mrb[20].mxu0 %v14077_v6 }
 0x3b4   : > { %10010 = vmatprep.mubr.msk.bf16.mxu0 %vm5193_vm7, %v14091_v41  ;;  %6213 = vmatpush1.bf16.msra.mxu0 %v11569_v36  ;;  %v11720_v36 = vld [vmem:[%s15708_s10 + $0x294] ss:$36 sps:$4 sm:$0xff]  }
 0x3b5   : > { %6214 = vmatprep.subr.bf16.mxu0 %v11574_v39  ;;  %v11609_v39 = vld [vmem:[%s15705_s7 + $0x364] ss:$8 sps:$4 sm:$0xff]   ;;  %7776 = vmatprep.subr.bf16.mxu1 %v11720_v36 }
 0x3b6   : > { %v11693_v36 = vld [vmem:[%s15708_s10 + $0x16c] ss:$36 sps:$4 sm:$0xff]  }
 0x3b8   : > { %6215 = vmatpush1.bf16.msra.mxu0 %v11572_v61  ;;  %v14436_v61 = vld [vmem:[#allocation3 + $0x58] sm:$0xff] }
 0x3b9   : > { %6216 = vmatprep.subr.bf16.mxu0 %v11577_v37  ;;  %v11718_v37 = vld [vmem:[%s15708_s10 + $0x290] ss:$36 sps:$4 sm:$0xff]   ;;  %v14449_v13 = vcombine.high %v14297_v60, %v14436_v61  ;;  %v14465_v57 = vcombine.low %v14297_v60, %v14436_v61  ;;  %v11623_v60 = vld [vmem:[%s15705_s7 + $0x3a4] ss:$8 sps:$4 sm:$0xff]  }
 0x3ba   : > { %7777 = vmatpush1.bf16.msra.mxu1 %v11718_v37 }
 0x3bb   : > { %5995 = vmatmul.mubr.bf16.gmra.mrb[24].mxu0 %v14094_v22 }
 0x3bc   : > { %10011 = vmatprep.mubr.msk.bf16.mxu0 %vm5193_vm7, %v14307_v28  ;;  %6217 = vmatpush1.bf16.msra.mxu0 %v11575_v1  ;;  %v11607_v1 = vld [vmem:[%s15705_s7 + $0x360] ss:$8 sps:$4 sm:$0xff]  }
 0x3bd   : > { %6218 = vmatprep.subr.bf16.mxu0 %v11581_v14  ;;  %v11613_v14 = vld [vmem:[%s15705_s7 + $0x374] ss:$8 sps:$4 sm:$0xff]  }
 0x3c0   : > { %6219 = vmatpush1.bf16.msra.mxu0 %v11579_v18  ;;  %v11611_v18 = vld [vmem:[%s15705_s7 + $0x370] ss:$8 sps:$4 sm:$0xff]  }
 0x3c1   : > { %6220 = vmatprep.subr.bf16.mxu0 %v11585_v16  ;;  %v11615_v16 = vld [vmem:[%s15705_s7 + $0x380] ss:$8 sps:$4 sm:$0xff]  }
 0x3c3   : > { %6005 = vmatmul.mubr.bf16.gmra.mrb[28].mxu0 %v14335_v3 }
 0x3c4   : > { %6221 = vmatpush1.bf16.msra.mxu0 %v11583_v9  ;;  %10040 = vmatprep.mubr.msk.bf16.mxu0 %vm5193_vm7, %v14126_v45  ;;  %v11589_v45 = vld [vmem:[%s15705_s7 + $0x300] ss:$8 sps:$4 sm:$0xff]   ;;  %v11618_v9 = vld [vmem:[%s15705_s7 + $0x390] ss:$8 sps:$4 sm:$0xff]  }
 0x3c5   : > { %6222 = vmatprep.subr.bf16.mxu0 %v11588_v2  ;;  %v11621_v2 = vld [vmem:[%s15705_s7 + $0x3a0] ss:$8 sps:$4 sm:$0xff]  }
 0x3c8   : > { %6223 = vmatpush1.bf16.msra.mxu0 %v11586_v62  ;;  %v11627_v62 = vld [vmem:[%s15705_s7 + $0x3c0] ss:$8 sps:$4 sm:$0xff]  }
 0x3c9   : > { %6224 = vmatprep.subr.bf16.mxu0 %v11591_v7  ;;  %v11630_v7 = vld [vmem:[%s15705_s7 + $0x3d0] ss:$8 sps:$4 sm:$0xff]  }
 0x3cc   : > { %6225 = vmatpush1.bf16.msra.mxu0 %v11589_v45  ;;  %v11633_v45 = vld [vmem:[%s15705_s7 + $0x3e0] ss:$8 sps:$4 sm:$0xff]  }
 0x3cd   : > { %6226 = vmatprep.subr.bf16.mxu0 %v11594_v56  ;;  %v14521_v56 = vld [vmem:[#allocation3 + $0x60] sm:$0xff] }
 0x3ce   : > { %v10082_v37 = vcombine.low %v14521_v56, %v6571_v49 }
 0x3d0   : > { %6227 = vmatpush1.bf16.msra.mxu0 %v11592_v26  ;;  %v11642_v26 = vld [vmem:[%s15705_s7 + $0x410] ss:$8 sps:$4 sm:$0xff]  }
 0x3d1   : > { %6474 = vmatprep.subr.bf16.mxu0 %v11597_v47  ;;  %v10050_v47 = vcombine.low %v14436_v61, %v14521_v56 }
 0x3d3   : > { %6241 = vmatmul.mubr.bf16.vlgmr.msra.gmra.mrb[16].mxu0 %v14140_v12  ;;  %v11603_v12 = vld [vmem:[%s15705_s7 + $0x344] ss:$8 sps:$4 sm:$0xff]  }
 0x3d4   : > { %10041 = vmatprep.mubr.msk.bf16.mxu0 %vm5193_vm7, %v14146_v35  ;;  %6475 = vmatpush1.bf16.msra.mxu0 %v11595_v53  ;;  %v11650_v53 = vld [vmem:[%s15705_s7 + $0x430] ss:$8 sps:$4 sm:$0xff]  }
 0x3d5   : > { %6476 = vmatprep.subr.bf16.mxu0 %v11600_v15  ;;  %v11655_v15 = vld [vmem:[%s15705_s7 + $0x444] ss:$8 sps:$4 sm:$0xff]  }
 0x3d8   : > { %6477 = vmatpush1.bf16.msra.mxu0 %v11598_v4  ;;  %v11663_v4 = vld [vmem:[%s15708_s10 + $0x4] ss:$36 sps:$4 sm:$0xff]  }
 0x3d9   : > { %6478 = vmatprep.subr.bf16.mxu0 %v11603_v12  ;;  %v11669_v12 = vld [vmem:[%s15708_s10 + $0x4c] ss:$36 sps:$4 sm:$0xff]  }
 0x3db   : > { %6251 = vmatmul.mubr.bf16.gmra.mrb[20].mxu0 %v14161_v50 }
 0x3dc   : > { %10042 = vmatprep.mubr.msk.bf16.mxu0 %vm5193_vm7, %v14225_v38  ;;  %6479 = vmatpush1.bf16.msra.mxu0 %v11601_v29  ;;  %v11675_v29 = vld [vmem:[%s15708_s10 + $0x94] ss:$36 sps:$4 sm:$0xff]  }
 0x3dd   : > { %6480 = vmatprep.subr.bf16.mxu0 %v11606_v43  ;;  %v11673_v43 = vld [vmem:[%s15708_s10 + $0x90] ss:$36 sps:$4 sm:$0xff]  }
 0x3e0   : > { %6481 = vmatpush1.bf16.msra.mxu0 %v11604_v48  ;;  %v10083_v48 = vcombine.high %v14521_v56, %v6571_v49  ;;  %v11737_v49 = vld [vmem:[%s15708_s10 + $0x58] ss:$36 sps:$4 sm:$0xff]  }
 0x3e1   : > { %6482 = vmatprep.subr.bf16.mxu0 %v11609_v39  ;;  %v11691_v39 = vld [vmem:[%s15708_s10 + $0x168] ss:$36 sps:$4 sm:$0xff]  }
 0x3e3   : > { %6261 = vmatmul.mubr.bf16.gmra.mrb[24].mxu0 %v14241_v46 }
 0x3e4   : > { %10043 = vmatprep.mubr.msk.bf16.mxu0 %vm5193_vm7, %v14449_v13  ;;  %6483 = vmatpush1.bf16.msra.mxu0 %v11607_v1  ;;  %v11697_v1 = vld [vmem:[%s15708_s10 + $0x1b0] ss:$36 sps:$4 sm:$0xff]  }
 0x3e5   : > { %6484 = vmatprep.subr.bf16.mxu0 %v11613_v14  ;;  %v11705_v14 = vld [vmem:[%s15708_s10 + $0x1fc] ss:$36 sps:$4 sm:$0xff]  }
 0x3e8   : > { %6485 = vmatpush1.bf16.msra.mxu0 %v11611_v18  ;;  %v11711_v18 = vld [vmem:[%s15708_s10 + $0x244] ss:$36 sps:$4 sm:$0xff]  }
 0x3e9   : > { %6486 = vmatprep.subr.bf16.mxu0 %v11617_v30  ;;  %v11709_v30 = vld [vmem:[%s15708_s10 + $0x240] ss:$36 sps:$4 sm:$0xff]  }
 0x3eb   : > { %6271 = vmatmul.mubr.bf16.gmra.mrb[28].mxu0 %v14465_v57 }
 0x3ec   : > { %6487 = vmatpush1.bf16.msra.mxu0 %v11615_v16  ;;  %10072 = vmatprep.mubr.msk.bf16.mxu0 %vm5193_vm7, %v14074_v42  ;;  %v11624_v42 = vld [vmem:[%s15705_s7 + $0x3b0] ss:$8 sps:$4 sm:$0xff]  }
 0x3ed   : > { %6488 = vmatprep.subr.bf16.mxu0 %v11620_v17  ;;  %v11717_v16 = vld [vmem:[%s15708_s10 + $0x28c] ss:$36 sps:$4 sm:$0xff]  }
 0x3ee   : > { %v11721_v17 = vld [vmem:[%s15708_s10 + $0x2d0] ss:$36 sps:$4 sm:$0xff]  }
 0x3f0   : > { %6489 = vmatpush1.bf16.msra.mxu0 %v11618_v9  ;;  %v11723_v9 = vld [vmem:[%s15708_s10 + $0x2d4] ss:$36 sps:$4 sm:$0xff]  }
 0x3f1   : > { %6490 = vmatprep.subr.bf16.mxu0 %v11623_v60  ;;  %v11724_v60 = vld [vmem:[%s15708_s10 + $0x2d8] ss:$36 sps:$4 sm:$0xff]  }
 0x3f4   : > { %6491 = vmatpush1.bf16.msra.mxu0 %v11621_v2  ;;  %v11726_v2 = vld [vmem:[%s15708_s10 + $0x2dc] ss:$36 sps:$4 sm:$0xff]  }
 0x3f5   : > { %6492 = vmatprep.subr.bf16.mxu0 %v11626_v52  ;;  %v11729_v52 = vld [vmem:[%s15708_s10 + $0x31c] ss:$36 sps:$4 sm:$0xff]   ;;  %7778 = vmatprep.subr.bf16.mxu1 %v11726_v2 }
 0x3f6   : > { %7779 = vmatpush1.bf16.msra.mxu1 %v11724_v60 }
 0x3f8   : > { %6493 = vmatpush1.bf16.msra.mxu0 %v11624_v42  ;;  %v11732_v42 = vld [vmem:[%s15708_s10 + $0x324] ss:$36 sps:$4 sm:$0xff]  }
 0x3f9   : > { %6740 = vmatprep.subr.bf16.mxu0 %v11629_v34  ;;  %v11727_v34 = vld [vmem:[%s15708_s10 + $0x318] ss:$36 sps:$4 sm:$0xff]   ;;  %7780 = vmatprep.subr.bf16.mxu1 %v11732_v42  ;;  %v11745_v42 = vld [vmem:[%s15708_s10 + $0xe8] ss:$36 sps:$4 sm:$0xff]  }
 0x3fb   : > { %6507 = vmatmul.mubr.bf16.vlgmr.msra.gmra.mrb[16].mxu0 %v14077_v6  ;;  %v11638_v6 = vld [vmem:[%s15705_s7 + $0x3f4] ss:$8 sps:$4 sm:$0xff]  }
 0x3fc   : > { %10073 = vmatprep.mubr.msk.bf16.mxu0 %vm5193_vm7, %v14091_v41  ;;  %6741 = vmatpush1.bf16.msra.mxu0 %v11627_v62  ;;  %v11636_v41 = vld [vmem:[%s15705_s7 + $0x3f0] ss:$8 sps:$4 sm:$0xff]   ;;  %v11730_v62 = vld [vmem:[%s15708_s10 + $0x320] ss:$36 sps:$4 sm:$0xff]  }
 0x3fd   : > { %6742 = vmatprep.subr.bf16.mxu0 %v11632_v23  ;;  %7781 = vmatpush1.bf16.msra.mxu1 %v11730_v62  ;;  %v11735_v23 = vld [vmem:[%s15708_s10 + $0x14] ss:$36 sps:$4 sm:$0xff]  }
 0x3fe   : > { %7831 = vmatprep.subr.bf16.mxu1 %v11735_v23 }
 0x400   : > { %6743 = vmatpush1.bf16.msra.mxu0 %v11630_v7  ;;  %v6829_v7 = vld [vmem:[%s15706_s8] sm:$0x3] }
 0x401   : > { %6744 = vmatprep.subr.bf16.mxu0 %v11635_v59  ;;  %v14666_v59 = vrot.slane %v6829_v7, %v13851_v24 }
 0x403   : > { %6517 = vmatmul.mubr.bf16.gmra.mrb[20].mxu0 %v14094_v22  ;;  %v11639_v22 = vld [vmem:[%s15705_s7 + $0x400] ss:$8 sps:$4 sm:$0xff]  }
 0x404   : > { %10074 = vmatprep.mubr.msk.bf16.mxu0 %vm5193_vm7, %v14307_v28  ;;  %6745 = vmatpush1.bf16.msra.mxu0 %v11633_v45  ;;  %v10051_v28 = vcombine.high %v14436_v61, %v14521_v56  ;;  %v11699_v61 = vld [vmem:[%s15708_s10 + $0x1b4] ss:$36 sps:$4 sm:$0xff]   ;;  %v14669_v45 = vrot.slane %v6829_v7, %v13857_v19 }
 0x405   : > { %6746 = vmatprep.subr.bf16.mxu0 %v11638_v6  ;;  %v11751_v7 = vld [vmem:[%s15708_s10 + $0x134] ss:$36 sps:$4 sm:$0xff]  }
 0x408   : > { %6747 = vmatpush1.bf16.msra.mxu0 %v11636_v41 }
 0x409   : > { %6748 = vmatprep.subr.bf16.mxu0 %v11641_v27 }
 0x40b   : > { %6527 = vmatmul.mubr.bf16.gmra.mrb[24].mxu0 %v14335_v3  ;;  %v11647_v3 = vld [vmem:[%s15705_s7 + $0x420] ss:$8 sps:$4 sm:$0xff]  }
 0x40c   : > { %6749 = vmatpush1.bf16.msra.mxu0 %v11639_v22  ;;  %10075 = vmatprep.mubr.msk.bf16.mxu0 %vm5193_vm7, %v10051_v28 }
 0x40d   : > { %6750 = vmatprep.subr.bf16.mxu0 %v11644_v58 }
 0x410   : > { %6751 = vmatpush1.bf16.msra.mxu0 %v11642_v26 }
 0x411   : > { %6752 = vmatprep.subr.bf16.mxu0 %v11649_v55 }
 0x413   : > { %6537 = vmatmul.mubr.bf16.gmra.mrb[28].mxu0 %v10050_v47 }
 0x414   : > { %6753 = vmatpush1.bf16.msra.mxu0 %v11647_v3  ;;  %10104 = vmatprep.mubr.msk.bf16.mxu0 %vm5193_vm7, %v14146_v35  ;;  %v11656_v35 = vld [vmem:[%s15705_s7 + $0x450] ss:$8 sps:$4 sm:$0xff]  }
 0x415   : > { %6754 = vmatprep.subr.bf16.mxu0 %v11652_v31 }
 0x418   : > { %6755 = vmatpush1.bf16.msra.mxu0 %v11650_v53 }
 0x419   : > { %6756 = vmatprep.subr.bf16.mxu0 %v11655_v15 }
 0x41c   : > { %6757 = vmatpush1.bf16.msra.mxu0 %v11653_v8 }
 0x41d   : > { %6758 = vmatprep.subr.bf16.mxu0 %v11658_v0  ;;  %v11733_v0 = vld [vmem:[%s15708_s10 + $0x10] ss:$36 sps:$4 sm:$0xff]  }
 0x420   : > { %6759 = vmatpush1.bf16.msra.mxu0 %v11656_v35  ;;  %v11736_v35 = vld [vmem:[%s15708_s10 + $0x20] ss:$36 sps:$4 sm:$0xff]  }
 0x421   : > { %7685 = vmatprep.subr.bf16.mxu0 %v11663_v4 }
 0x423   : > { %6773 = vmatmul.mubr.bf16.vlgmr.msra.gmra.mrb[16].mxu0 %v14161_v50  ;;  %v11681_v50 = vld [vmem:[%s15708_s10 + $0xdc] ss:$36 sps:$4 sm:$0xff]  }
 0x424   : > { %10105 = vmatprep.mubr.msk.bf16.mxu0 %vm5193_vm7, %v14225_v38  ;;  %7686 = vmatpush1.bf16.msra.mxu0 %v11661_v32  ;;  %v11679_v38 = vld [vmem:[%s15708_s10 + $0xd8] ss:$36 sps:$4 sm:$0xff]  }
 0x425   : > { %7687 = vmatprep.subr.bf16.mxu0 %v11669_v12  ;;  %v11739_v12 = vld [vmem:[%s15708_s10 + $0x5c] ss:$36 sps:$4 sm:$0xff]  }
 0x428   : > { %7688 = vmatpush1.bf16.msra.mxu0 %v11667_v25 }
 0x429   : > { %7689 = vmatprep.subr.bf16.mxu0 %v11675_v29 }
 0x42b   : > { %6783 = vmatmul.mubr.bf16.gmra.mrb[20].mxu0 %v14241_v46  ;;  %v11685_v46 = vld [vmem:[%s15708_s10 + $0x120] ss:$36 sps:$4 sm:$0xff]  }
 0x42c   : > { %10106 = vmatprep.mubr.msk.bf16.mxu0 %vm5193_vm7, %v14449_v13  ;;  %7690 = vmatpush1.bf16.msra.mxu0 %v11673_v43  ;;  %v11703_v13 = vld [vmem:[%s15708_s10 + $0x1f8] ss:$36 sps:$4 sm:$0xff]  }
 0x42d   : > { %7691 = vmatprep.subr.bf16.mxu0 %v11681_v50 }
 0x430   : > { %7692 = vmatpush1.bf16.msra.mxu0 %v11679_v38 }
 0x431   : > { %7693 = vmatprep.subr.bf16.mxu0 %v11687_v11  ;;  %v11740_v11 = vld [vmem:[%s15708_s10 + $0x68] ss:$36 sps:$4 sm:$0xff]  }
 0x433   : > { %6793 = vmatmul.mubr.bf16.gmra.mrb[24].mxu0 %v14465_v57  ;;  %v11715_v57 = vld [vmem:[%s15708_s10 + $0x288] ss:$36 sps:$4 sm:$0xff]  }
 0x434   : > { %10107 = vmatprep.mubr.msk.bf16.mxu0 %vm5193_vm7, %v10083_v48  ;;  %7694 = vmatpush1.bf16.msra.mxu0 %v11685_v46 }
 0x435   : > { %7695 = vmatprep.subr.bf16.mxu0 %v11693_v36  ;;  %v11743_v36 = vld [vmem:[%s15708_s10 + $0xa4] ss:$36 sps:$4 sm:$0xff]  }
 0x438   : > { %7696 = vmatpush1.bf16.msra.mxu0 %v11691_v39 }
 0x439   : > { %7697 = vmatprep.subr.bf16.mxu0 %v11699_v61 }
 0x43b   : > { %6803 = vmatmul.mubr.bf16.gmra.mrb[28].mxu0 %v10082_v37 }
 0x43c   : > { %7698 = vmatpush1.bf16.msra.mxu0 %v11697_v1 }
 0x43d   : > { %7699 = vmatprep.subr.bf16.mxu0 %v11705_v14 }
 0x440   : > { %7700 = vmatpush1.bf16.msra.mxu0 %v11703_v13  ;;  %v11741_v13 = vld [vmem:[%s15708_s10 + $0xa0] ss:$36 sps:$4 sm:$0xff]  }
 0x441   : > { %7701 = vmatprep.subr.bf16.mxu0 %v11711_v18  ;;  %v11744_v18 = vld [vmem:[%s15708_s10 + $0xb0] ss:$36 sps:$4 sm:$0xff]  }
 0x444   : > { %7702 = vmatpush1.bf16.msra.mxu0 %v11709_v30 }
 0x445   : > { %7703 = vmatprep.subr.bf16.mxu0 %v11717_v16 }
 0x448   : > { %7704 = vmatpush1.bf16.msra.mxu0 %v11715_v57  ;;  %v11747_v57 = vld [vmem:[%s15708_s10 + $0xec] ss:$36 sps:$4 sm:$0xff]  }
 0x449   : > { %7705 = vmatprep.subr.bf16.mxu0 %v11723_v9 }
 0x44c   : > { %7706 = vmatpush1.bf16.msra.mxu0 %v11721_v17 }
 0x44d   : > { %7707 = vmatprep.subr.bf16.mxu0 %v11729_v52 }
 0x450   : > { %7708 = vmatpush1.bf16.msra.mxu0 %v11727_v34  ;;  %v11748_v34 = vld [vmem:[%s15708_s10 + $0xf8] ss:$36 sps:$4 sm:$0xff]  }
 0x451   : > { %7977 = vmatprep.subr.bf16.mxu0 %v12077_v33 }
 0x4f6   : > { %v6774_v6 = vpop.f32.mrb[16].mxu0 }
 0x4f7   : > { %v6841_v41 = vadd.f32 %v14666_v59, %v6774_v6  ;;  %v6776_v27 = vpop.f32.mrb[17].mxu0 }
 0x4f8   : > { %v6842_v56 = vadd.f32 %v14669_v45, %v6776_v27  ;;  %v6778_v22 = vpop.f32.mrb[18].mxu0 }
 0x4f9   : > { %v6843_v28 = vadd.f32 %v14666_v59, %v6778_v22  ;;  %v6780_v58 = vpop.f32.mrb[19].mxu0  ;;  %v6857_v55 = vmax.f32 %v6841_v41, 0.0 }
 0x4fa   : > { %v6844_v26 = vadd.f32 %v14669_v45, %v6780_v58  ;;  %v6858_v3 = vmax.f32 %v6842_v56, 0.0  ;;  %v11752_v58 = vld [vmem:[%s15708_s10 + $0x140] ss:$36 sps:$4 sm:$0xff]  }
 0x4fb   : > { %v6859_v47 = vmax.f32 %v6843_v28, 0.0  ;;  %v11749_v28 = vld [vmem:[%s15708_s10 + $0x130] ss:$36 sps:$4 sm:$0xff]  }
 0x4fc   : > { %v6860_v31 = vmax.f32 %v6844_v26, 0.0 }
 0x4fd   : > { %v14675_v53 = vpack.c.bf16 %v6859_v47, %v6857_v55  ;;  %v11755_v47 = vld [vmem:[%s15708_s10 + $0x17c] ss:$36 sps:$4 sm:$0xff]  }
 0x4fe   : > { %v14677_v15 = vpack.c.bf16 %v6860_v31, %v6858_v3  ;;  %v6784_v8 = vpop.f32.mrb[20].mxu0 }
 0x4ff   : > { %v6845_v4 = vadd.f32 %v14666_v59, %v6784_v8  ;;  %v6786_v32 = vpop.f32.mrb[21].mxu0 }
 0x500   : > { %v6846_v25 = vadd.f32 %v14669_v45, %v6786_v32  ;;  %v6788_v29 = vpop.f32.mrb[22].mxu0  ;;  %10216 = vmatprep.mubr.msk.bf16.mxu0 %vm1467_vm0, %v14677_v15  ;;  %10220 = vmatprep.mubr.msk.bf16.mxu1 %vm1467_vm0, %v14677_v15  ;;  %v11756_v32 = vld [vmem:[%s15708_s10 + $0x188] ss:$36 sps:$4 sm:$0xff]  }
 0x501   : > { %v6847_v43 = vadd.f32 %v14666_v59, %v6788_v29  ;;  %v6790_v50 = vpop.f32.mrb[23].mxu0  ;;  %7718 = vmatmul.mubr.bf16.vlgmr.msra.gmra.mrb[32].mxu0 %v14675_v53  ;;  %7791 = vmatmul.mubr.bf16.vlgmr.msra.gmra.mrb[88].mxu1 %v14675_v53  ;;  %v6861_v48 = vmax.f32 %v6845_v4, 0.0  ;;  %v11753_v4 = vld [vmem:[%s15708_s10 + $0x178] ss:$36 sps:$4 sm:$0xff]  }
 0x502   : > { %v6848_v38 = vadd.f32 %v14669_v45, %v6790_v50  ;;  %7832 = vmatpush1.bf16.msra.mxu1 %v11733_v0  ;;  %7978 = vmatpush1.bf16.msra.mxu0 %v11736_v35  ;;  %v6862_v39 = vmax.f32 %v6846_v25, 0.0 }
 0x503   : > { %v6863_v46 = vmax.f32 %v6847_v43, 0.0  ;;  %7833 = vmatprep.subr.bf16.mxu1 %v11739_v12  ;;  %7979 = vmatprep.subr.bf16.mxu0 %v12077_v33 }
 0x504   : > { %v6864_v61 = vmax.f32 %v6848_v38, 0.0  ;;  %v11757_v38 = vld [vmem:[%s15708_s10 + $0x1c0] ss:$36 sps:$4 sm:$0xff]  }
 0x505   : > { %v14708_v37 = vpack.c.bf16 %v6863_v46, %v6861_v48  ;;  %v11761_v48 = vld [vmem:[%s15708_s10 + $0x208] ss:$36 sps:$4 sm:$0xff]   ;;  %v11764_v46 = vld [vmem:[%s15708_s10 + $0x218] ss:$36 sps:$4 sm:$0xff]  }
 0x506   : > { %v14710_v1 = vpack.c.bf16 %v6864_v61, %v6862_v39  ;;  %7834 = vmatpush1.bf16.msra.mxu1 %v11737_v49  ;;  %7980 = vmatpush1.bf16.msra.mxu0 %v11740_v11  ;;  %v6794_v14 = vpop.f32.mrb[24].mxu0  ;;  %v11760_v49 = vld [vmem:[%s15708_s10 + $0x1d0] ss:$36 sps:$4 sm:$0xff]   ;;  %v11768_v61 = vld [vmem:[%s15708_s10 + $0x260] ss:$36 sps:$4 sm:$0xff]  }
 0x507   : > { %v6849_v30 = vadd.f32 %v14666_v59, %v6794_v14  ;;  %v6796_v16 = vpop.f32.mrb[25].mxu0  ;;  %7835 = vmatprep.subr.bf16.mxu1 %v11743_v36  ;;  %7981 = vmatprep.subr.bf16.mxu0 %v12077_v33  ;;  %v11763_v11 = vld [vmem:[%s15708_s10 + $0x20c] ss:$36 sps:$4 sm:$0xff]   ;;  %v11767_v36 = vld [vmem:[%s15708_s10 + $0x254] ss:$36 sps:$4 sm:$0xff]  }
 0x508   : > { %v6850_v17 = vadd.f32 %v14669_v45, %v6796_v16  ;;  %v6798_v9 = vpop.f32.mrb[26].mxu0  ;;  %10217 = vmatprep.mubr.msk.bf16.mxu0 %vm1467_vm0, %v14710_v1  ;;  %10221 = vmatprep.mubr.msk.bf16.mxu1 %vm1467_vm0, %v14710_v1  ;;  %v11765_v39 = vld [vmem:[%s15708_s10 + $0x250] ss:$36 sps:$4 sm:$0xff]   ;;  %v11771_v14 = vld [vmem:[%s15708_s10 + $0x29c] ss:$36 sps:$4 sm:$0xff]  }
 0x509   : > { %v6851_v60 = vadd.f32 %v14666_v59, %v6798_v9  ;;  %v6800_v2 = vpop.f32.mrb[27].mxu0  ;;  %7728 = vmatmul.mubr.bf16.gmra.mrb[36].mxu0 %v14708_v37  ;;  %7801 = vmatmul.mubr.bf16.gmra.mrb[92].mxu1 %v14708_v37  ;;  %v6865_v62 = vmax.f32 %v6849_v30, 0.0  ;;  %v11775_v30 = vld [vmem:[%s15708_s10 + $0x2e4] ss:$36 sps:$4 sm:$0xff]  }
 0x50a   : > { %v6852_v52 = vadd.f32 %v14669_v45, %v6800_v2  ;;  %7836 = vmatpush1.bf16.msra.mxu1 %v11741_v13  ;;  %7982 = vmatpush1.bf16.msra.mxu0 %v11744_v18  ;;  %v6866_v6 = vmax.f32 %v6850_v17, 0.0  ;;  %v11769_v13 = vld [vmem:[%s15708_s10 + $0x298] ss:$36 sps:$4 sm:$0xff]   ;;  %v11772_v18 = vld [vmem:[%s15708_s10 + $0x2a8] ss:$36 sps:$4 sm:$0xff]  }
 0x50b   : > { %v6867_v23 = vmax.f32 %v6851_v60, 0.0  ;;  %7837 = vmatprep.subr.bf16.mxu1 %v11747_v57  ;;  %7983 = vmatprep.subr.bf16.mxu0 %v12077_v33  ;;  %v11773_v16 = vld [vmem:[%s15708_s10 + $0x2e0] ss:$36 sps:$4 sm:$0xff]   ;;  %v11776_v57 = vld [vmem:[%s15708_s10 + $0x2f0] ss:$36 sps:$4 sm:$0xff]  }
 0x50c   : > { %v6868_v41 = vmax.f32 %v6852_v52, 0.0  ;;  %v11779_v17 = vld [vmem:[%s15708_s10 + $0x32c] ss:$36 sps:$4 sm:$0xff]   ;;  %v11780_v60 = vld [vmem:[%s15708_s10 + $0x338] ss:$36 sps:$4 sm:$0xff]  }
 0x50d   : > { %v14742_v27 = vpack.c.bf16 %v6867_v23, %v6865_v62  ;;  %v11777_v9 = vld [vmem:[%s15708_s10 + $0x328] ss:$36 sps:$4 sm:$0xff]   ;;  %v11783_v2 = vld [vmem:[%s15708_s10 + $0x1c] ss:$36 sps:$4 sm:$0xff]  }
 0x50e   : > { %v14744_v56 = vpack.c.bf16 %v6868_v41, %v6866_v6  ;;  %7838 = vmatpush1.bf16.msra.mxu1 %v11745_v42  ;;  %7984 = vmatpush1.bf16.msra.mxu0 %v11748_v34  ;;  %v6804_v22 = vpop.f32.mrb[28].mxu0  ;;  %v11781_v52 = vld [vmem:[%s15708_s10 + $0x18] ss:$36 sps:$4 sm:$0xff]   ;;  %v11784_v42 = vld [vmem:[%s15707_s9 + $0x20] ss:$36 sps:$4 sm:$0xff]  }
 0x50f   : > { %v6853_v26 = vadd.f32 %v14666_v59, %v6804_v22  ;;  %v6806_v55 = vpop.f32.mrb[29].mxu0  ;;  %7839 = vmatprep.subr.bf16.mxu1 %v11751_v7  ;;  %7985 = vmatprep.subr.bf16.mxu0 %v12077_v33  ;;  %v11787_v34 = vld [vmem:[%s15708_s10 + $0x64] ss:$36 sps:$4 sm:$0xff]   ;;  %v11791_v7 = vld [vmem:[%s15708_s10 + $0xac] ss:$36 sps:$4 sm:$0xff]  }
 0x510   : > { %v6854_v3 = vadd.f32 %v14669_v45, %v6806_v55  ;;  %v6808_v31 = vpop.f32.mrb[30].mxu0  ;;  %10218 = vmatprep.mubr.msk.bf16.mxu0 %vm1467_vm0, %v14744_v56  ;;  %10222 = vmatprep.mubr.msk.bf16.mxu1 %vm1467_vm0, %v14744_v56  ;;  %v11785_v62 = vld [vmem:[%s15708_s10 + $0x60] ss:$36 sps:$4 sm:$0xff]   ;;  %v11788_v23 = vld [vmem:[%s15707_s9 + $0x68] ss:$36 sps:$4 sm:$0xff]  }
 0x511   : > { %v6855_v8 = vadd.f32 %v14666_v59, %v6808_v31  ;;  %v6810_v0 = vpop.f32.mrb[31].mxu0  ;;  %7738 = vmatmul.mubr.bf16.gmra.mrb[40].mxu0 %v14742_v27  ;;  %7811 = vmatmul.mubr.bf16.gmra.mrb[96].mxu1 %v14742_v27  ;;  %v6869_v12 = vmax.f32 %v6853_v26, 0.0  ;;  %v11759_v59 = vld [vmem:[%s15708_s10 + $0x1c4] ss:$36 sps:$4 sm:$0xff]   ;;  %v11792_v41 = vld [vmem:[%s15707_s9 + $0xb0] ss:$36 sps:$4 sm:$0xff]  }
 0x512   : > { %v6856_v35 = vadd.f32 %v14669_v45, %v6810_v0  ;;  %7840 = vmatpush1.bf16.msra.mxu1 %v11749_v28  ;;  %7986 = vmatpush1.bf16.msra.mxu0 %v11752_v58  ;;  %v6870_v45 = vmax.f32 %v6854_v3, 0.0  ;;  %v11789_v6 = vld [vmem:[%s15708_s10 + $0xa8] ss:$36 sps:$4 sm:$0xff]   ;;  %v11795_v22 = vld [vmem:[%s15708_s10 + $0xf4] ss:$36 sps:$4 sm:$0xff]  }
 0x513   : > { %v6871_v25 = vmax.f32 %v6855_v8, 0.0  ;;  %7841 = vmatprep.subr.bf16.mxu1 %v11755_v47  ;;  %7987 = vmatprep.subr.bf16.mxu0 %v12077_v33  ;;  %v11793_v28 = vld [vmem:[%s15708_s10 + $0xf0] ss:$36 sps:$4 sm:$0xff]   ;;  %v11796_v58 = vld [vmem:[%s15707_s9 + $0xf8] ss:$36 sps:$4 sm:$0xff]  }
 0x514   : > { %v6872_v29 = vmax.f32 %v6856_v35, 0.0  ;;  %v11799_v26 = vld [vmem:[%s15708_s10 + $0x13c] ss:$36 sps:$4 sm:$0xff]   ;;  %v11803_v3 = vld [vmem:[%s15708_s10 + $0x184] ss:$36 sps:$4 sm:$0xff]  }
 0x515   : > { %v14776_v43 = vpack.c.bf16 %v6871_v25, %v6869_v12  ;;  %v11797_v55 = vld [vmem:[%s15708_s10 + $0x138] ss:$36 sps:$4 sm:$0xff]   ;;  %v11800_v47 = vld [vmem:[%s15707_s9 + $0x140] ss:$36 sps:$4 sm:$0xff]   ;;  %v11804_v8 = vld [vmem:[%s15707_s9 + $0x188] ss:$36 sps:$4 sm:$0xff]  }
 0x516   : > { %v14778_v50 = vpack.c.bf16 %v6872_v29, %v6870_v45  ;;  %7842 = vmatpush1.bf16.msra.mxu1 %v11753_v4  ;;  %7988 = vmatpush1.bf16.msra.mxu0 %v11756_v32  ;;  %v11801_v31 = vld [vmem:[%s15708_s10 + $0x180] ss:$36 sps:$4 sm:$0xff]   ;;  %v11807_v0 = vld [vmem:[%s15708_s10 + $0x1cc] ss:$36 sps:$4 sm:$0xff]   ;;  %v11811_v32 = vld [vmem:[%s15708_s10 + $0x214] ss:$36 sps:$4 sm:$0xff]  }
 0x517   : > { %7843 = vmatprep.subr.bf16.mxu1 %v11759_v59  ;;  %7989 = vmatprep.subr.bf16.mxu0 %v12077_v33  ;;  %v11805_v35 = vld [vmem:[%s15708_s10 + $0x1c8] ss:$36 sps:$4 sm:$0xff]   ;;  %v11808_v4 = vld [vmem:[%s15707_s9 + $0x1d0] ss:$36 sps:$4 sm:$0xff]   ;;  %v11812_v25 = vld [vmem:[%s15707_s9 + $0x218] ss:$36 sps:$4 sm:$0xff]  }
 0x518   : > { %10219 = vmatprep.mubr.msk.bf16.mxu0 %vm1467_vm0, %v14778_v50  ;;  %10223 = vmatprep.mubr.msk.bf16.mxu1 %vm1467_vm0, %v14778_v50  ;;  %v11809_v12 = vld [vmem:[%s15708_s10 + $0x210] ss:$36 sps:$4 sm:$0xff]   ;;  %v11815_v59 = vld [vmem:[%s15708_s10 + $0x25c] ss:$36 sps:$4 sm:$0xff]   ;;  %v11819_v29 = vld [vmem:[%s15708_s10 + $0x2a4] ss:$36 sps:$4 sm:$0xff]  }
 0x519   : > { %7748 = vmatmul.mubr.bf16.gmra.mrb[44].mxu0 %v14776_v43  ;;  %7821 = vmatmul.mubr.bf16.gmra.mrb[100].mxu1 %v14776_v43  ;;  %v11816_v45 = vld [vmem:[%s15707_s9 + $0x260] ss:$36 sps:$4 sm:$0xff]  }
 0x51a   : > { %7844 = vmatpush1.bf16.msra.mxu1 %v11757_v38  ;;  %7990 = vmatpush1.bf16.msra.mxu0 %v11760_v49  ;;  %v11817_v38 = vld [vmem:[%s15708_s10 + $0x2a0] ss:$36 sps:$4 sm:$0xff]   ;;  %v11820_v49 = vld [vmem:[%s15707_s9 + $0x2a8] ss:$36 sps:$4 sm:$0xff]  }
 0x51b   : > { %10224 = vmatprep.mubr.msk.bf16.mxu1 %vm1467_vm0, %v14677_v15  ;;  %10232 = vmatprep.mubr.msk.bf16.mxu0 %vm1467_vm0, %v14677_v15 }
 0x51c   : > { %7845 = vmatprep.subr.bf16.mxu1 %v11763_v11  ;;  %7991 = vmatprep.subr.bf16.mxu0 %v12077_v33  ;;  %v11823_v11 = vld [vmem:[%s15708_s10 + $0x2ec] ss:$36 sps:$4 sm:$0xff]  }
 0x51e   : > { %7846 = vmatpush1.bf16.msra.mxu1 %v11761_v48  ;;  %7992 = vmatpush1.bf16.msra.mxu0 %v11764_v46  ;;  %v11821_v48 = vld [vmem:[%s15708_s10 + $0x2e8] ss:$36 sps:$4 sm:$0xff]   ;;  %v11824_v46 = vld [vmem:[%s15707_s9 + $0x2f0] ss:$36 sps:$4 sm:$0xff]  }
 0x51f   : > { %7847 = vmatprep.subr.bf16.mxu1 %v11767_v36  ;;  %7993 = vmatprep.subr.bf16.mxu0 %v12077_v33  ;;  %v11827_v36 = vld [vmem:[%s15708_s10 + $0x334] ss:$36 sps:$4 sm:$0xff]  }
 0x522   : > { %7848 = vmatpush1.bf16.msra.mxu1 %v11765_v39  ;;  %7994 = vmatpush1.bf16.msra.mxu0 %v11768_v61  ;;  %v11825_v39 = vld [vmem:[%s15708_s10 + $0x330] ss:$36 sps:$4 sm:$0xff]   ;;  %v11828_v61 = vld [vmem:[%s15707_s9 + $0x338] ss:$36 sps:$4 sm:$0xff]  }
 0x523   : > { %7849 = vmatprep.subr.bf16.mxu1 %v11771_v14  ;;  %7995 = vmatprep.subr.bf16.mxu0 %v12077_v33  ;;  %v11831_v14 = vld [vmem:[%s15707_s9 + $0x4] ss:$36 sps:$4 sm:$0xff]  }
 0x526   : > { %7850 = vmatpush1.bf16.msra.mxu1 %v11769_v13  ;;  %7996 = vmatpush1.bf16.msra.mxu0 %v11772_v18  ;;  %v11829_v13 = vld [vmem:[%s15707_s9] ss:$36 sps:$4 sm:$0xff]   ;;  %v11834_v18 = vld [vmem:[%s15707_s9 + $0x4c] ss:$36 sps:$4 sm:$0xff]  }
 0x527   : > { %7851 = vmatprep.subr.bf16.mxu1 %v11775_v30  ;;  %7997 = vmatprep.subr.bf16.mxu0 %v12077_v33  ;;  %v11837_v30 = vld [vmem:[%s15707_s9 + $0x94] ss:$36 sps:$4 sm:$0xff]  }
 0x52a   : > { %7852 = vmatpush1.bf16.msra.mxu1 %v11773_v16  ;;  %7998 = vmatpush1.bf16.msra.mxu0 %v11776_v57  ;;  %v11838_v16 = vld [vmem:[%s15707_s9 + $0xd8] ss:$36 sps:$4 sm:$0xff]   ;;  %v11843_v57 = vld [vmem:[%s15707_s9 + $0x124] ss:$36 sps:$4 sm:$0xff]  }
 0x52b   : > { %7853 = vmatprep.subr.bf16.mxu1 %v11779_v17  ;;  %7999 = vmatprep.subr.bf16.mxu0 %v12077_v33  ;;  %v11844_v17 = vld [vmem:[%s15707_s9 + $0x168] ss:$36 sps:$4 sm:$0xff]  }
 0x52e   : > { %7854 = vmatpush1.bf16.msra.mxu1 %v11777_v9  ;;  %8000 = vmatpush1.bf16.msra.mxu0 %v11780_v60  ;;  %v11849_v9 = vld [vmem:[%s15707_s9 + $0x1b4] ss:$36 sps:$4 sm:$0xff]  }
 0x52f   : > { %7904 = vmatprep.subr.bf16.mxu1 %v11783_v2  ;;  %8898 = vmatprep.subr.bf16.mxu0 %v12077_v33  ;;  %v11850_v60 = vld [vmem:[%s15707_s9 + $0x1f8] ss:$36 sps:$4 sm:$0xff]   ;;  %v11855_v2 = vld [vmem:[%s15707_s9 + $0x244] ss:$36 sps:$4 sm:$0xff]  }
 0x531   : > { %7864 = vmatmul.mubr.bf16.vlgmr.msra.gmra.mrb[104].mxu1 %v14675_v53  ;;  %8010 = vmatmul.mubr.bf16.vlgmr.msra.gmra.mrb[48].mxu0 %v14675_v53 }
 0x532   : > { %10225 = vmatprep.mubr.msk.bf16.mxu1 %vm1467_vm0, %v14710_v1  ;;  %7905 = vmatpush1.bf16.msra.mxu1 %v11781_v52  ;;  %v11858_v52 = vld [vmem:[%s15707_s9 + $0x28c] ss:$36 sps:$4 sm:$0xff]  }
 0x533   : > { %10233 = vmatprep.mubr.msk.bf16.mxu0 %vm1467_vm0, %v14710_v1  ;;  %8899 = vmatpush1.bf16.msra.mxu0 %v11784_v42  ;;  %v11856_v42 = vld [vmem:[%s15707_s9 + $0x288] ss:$36 sps:$4 sm:$0xff]  }
 0x534   : > { %7906 = vmatprep.subr.bf16.mxu1 %v11787_v34  ;;  %8900 = vmatprep.subr.bf16.mxu0 %v12077_v33  ;;  %v11861_v34 = vld [vmem:[%s15707_s9 + $0x2d4] ss:$36 sps:$4 sm:$0xff]  }
 0x536   : > { %7907 = vmatpush1.bf16.msra.mxu1 %v11785_v62  ;;  %v11859_v62 = vld [vmem:[%s15707_s9 + $0x2d0] ss:$36 sps:$4 sm:$0xff]  }
 0x537   : > { %8901 = vmatpush1.bf16.msra.mxu0 %v11788_v23  ;;  %7908 = vmatprep.subr.bf16.mxu1 %v11791_v7  ;;  %v11864_v23 = vld [vmem:[%s15707_s9 + $0x31c] ss:$36 sps:$4 sm:$0xff]  }
 0x538   : > { %8902 = vmatprep.subr.bf16.mxu0 %v12077_v33  ;;  %v11862_v7 = vld [vmem:[%s15707_s9 + $0x318] ss:$36 sps:$4 sm:$0xff]  }
 0x539   : > { %7874 = vmatmul.mubr.bf16.gmra.mrb[108].mxu1 %v14708_v37  ;;  %8018 = vmatmul.mubr.bf16.gmra.mrb[52].mxu0 %v14708_v37 }
 0x53a   : > { %10226 = vmatprep.mubr.msk.bf16.mxu1 %vm1467_vm0, %v14744_v56  ;;  %7909 = vmatpush1.bf16.msra.mxu1 %v11789_v6  ;;  %v11867_v6 = vld [vmem:[%s15707_s9 + $0xc] ss:$36 sps:$4 sm:$0xff]  }
 0x53b   : > { %10234 = vmatprep.mubr.msk.bf16.mxu0 %vm1467_vm0, %v14744_v56  ;;  %8903 = vmatpush1.bf16.msra.mxu0 %v11792_v41  ;;  %v11865_v41 = vld [vmem:[%s15707_s9 + $0x8] ss:$36 sps:$4 sm:$0xff]  }
 0x53c   : > { %7910 = vmatprep.subr.bf16.mxu1 %v11795_v22  ;;  %8904 = vmatprep.subr.bf16.mxu0 %v12077_v33  ;;  %v11870_v22 = vld [vmem:[%s15707_s9 + $0x54] ss:$36 sps:$4 sm:$0xff]  }
 0x53e   : > { %7911 = vmatpush1.bf16.msra.mxu1 %v11793_v28  ;;  %v11868_v28 = vld [vmem:[%s15707_s9 + $0x50] ss:$36 sps:$4 sm:$0xff]  }
 0x53f   : > { %8905 = vmatpush1.bf16.msra.mxu0 %v11796_v58  ;;  %7912 = vmatprep.subr.bf16.mxu1 %v11799_v26  ;;  %v11873_v58 = vld [vmem:[%s15707_s9 + $0x9c] ss:$36 sps:$4 sm:$0xff]  }
 0x540   : > { %8906 = vmatprep.subr.bf16.mxu0 %v12077_v33  ;;  %v11871_v26 = vld [vmem:[%s15707_s9 + $0x98] ss:$36 sps:$4 sm:$0xff]  }
 0x541   : > { %7884 = vmatmul.mubr.bf16.gmra.mrb[112].mxu1 %v14742_v27  ;;  %8026 = vmatmul.mubr.bf16.gmra.mrb[56].mxu0 %v14742_v27 }
 0x542   : > { %10227 = vmatprep.mubr.msk.bf16.mxu1 %vm1467_vm0, %v14778_v50  ;;  %7913 = vmatpush1.bf16.msra.mxu1 %v11797_v55  ;;  %v11876_v55 = vld [vmem:[%s15707_s9 + $0xe4] ss:$36 sps:$4 sm:$0xff]  }
 0x543   : > { %10235 = vmatprep.mubr.msk.bf16.mxu0 %vm1467_vm0, %v14778_v50  ;;  %8907 = vmatpush1.bf16.msra.mxu0 %v11800_v47  ;;  %v11874_v47 = vld [vmem:[%s15707_s9 + $0xe0] ss:$36 sps:$4 sm:$0xff]  }
 0x544   : > { %7914 = vmatprep.subr.bf16.mxu1 %v11803_v3  ;;  %8908 = vmatprep.subr.bf16.mxu0 %v12077_v33  ;;  %v11879_v3 = vld [vmem:[%s15707_s9 + $0x12c] ss:$36 sps:$4 sm:$0xff]  }
 0x546   : > { %7915 = vmatpush1.bf16.msra.mxu1 %v11801_v31  ;;  %v11877_v31 = vld [vmem:[%s15707_s9 + $0x128] ss:$36 sps:$4 sm:$0xff]  }
 0x547   : > { %8909 = vmatpush1.bf16.msra.mxu0 %v11804_v8  ;;  %7916 = vmatprep.subr.bf16.mxu1 %v11807_v0  ;;  %v11882_v8 = vld [vmem:[%s15707_s9 + $0x174] ss:$36 sps:$4 sm:$0xff]  }
 0x548   : > { %8910 = vmatprep.subr.bf16.mxu0 %v12077_v33  ;;  %v11880_v0 = vld [vmem:[%s15707_s9 + $0x170] ss:$36 sps:$4 sm:$0xff]  }
 0x549   : > { %7894 = vmatmul.mubr.bf16.gmra.mrb[116].mxu1 %v14776_v43  ;;  %8034 = vmatmul.mubr.bf16.gmra.mrb[60].mxu0 %v14776_v43 }
 0x54a   : > { %7917 = vmatpush1.bf16.msra.mxu1 %v11805_v35  ;;  %10228 = vmatprep.mubr.msk.bf16.mxu1 %vm1467_vm0, %v14677_v15  ;;  %v11813_v15 = vld [vmem:[%s15708_s10 + $0x258] ss:$36 sps:$4 sm:$0xff]  }
 0x54b   : > { %8911 = vmatpush1.bf16.msra.mxu0 %v11808_v4  ;;  %10360 = vmatprep.mubr.msk.bf16.mxu0 %vm1467_vm0, %v13871_v21  ;;  %v11885_v35 = vld [vmem:[%s15707_s9 + $0x1bc] ss:$36 sps:$4 sm:$0xff]  }
 0x54c   : > { %7918 = vmatprep.subr.bf16.mxu1 %v11811_v32  ;;  %8912 = vmatprep.subr.bf16.mxu0 %v12077_v33  ;;  %v11883_v4 = vld [vmem:[%s15707_s9 + $0x1b8] ss:$36 sps:$4 sm:$0xff]   ;;  %v11888_v32 = vld [vmem:[%s15707_s9 + $0x204] ss:$36 sps:$4 sm:$0xff]  }
 0x54e   : > { %7919 = vmatpush1.bf16.msra.mxu1 %v11809_v12  ;;  %v11886_v12 = vld [vmem:[%s15707_s9 + $0x200] ss:$36 sps:$4 sm:$0xff]  }
 0x54f   : > { %8913 = vmatpush1.bf16.msra.mxu0 %v11812_v25  ;;  %7920 = vmatprep.subr.bf16.mxu1 %v11815_v59  ;;  %v11891_v25 = vld [vmem:[%s15707_s9 + $0x24c] ss:$36 sps:$4 sm:$0xff]  }
 0x550   : > { %8914 = vmatprep.subr.bf16.mxu0 %v12077_v33  ;;  %v11889_v59 = vld [vmem:[%s15707_s9 + $0x248] ss:$36 sps:$4 sm:$0xff]  }
 0x552   : > { %7921 = vmatpush1.bf16.msra.mxu1 %v11813_v15  ;;  %v11894_v15 = vld [vmem:[%s15707_s9 + $0x294] ss:$36 sps:$4 sm:$0xff]  }
 0x553   : > { %8915 = vmatpush1.bf16.msra.mxu0 %v11816_v45  ;;  %7922 = vmatprep.subr.bf16.mxu1 %v11819_v29  ;;  %v11892_v45 = vld [vmem:[%s15707_s9 + $0x290] ss:$36 sps:$4 sm:$0xff]   ;;  %v11897_v29 = vld [vmem:[%s15707_s9 + $0x2dc] ss:$36 sps:$4 sm:$0xff]  }
 0x554   : > { %8916 = vmatprep.subr.bf16.mxu0 %v12077_v33 }
 0x556   : > { %7923 = vmatpush1.bf16.msra.mxu1 %v11817_v38  ;;  %v11895_v38 = vld [vmem:[%s15707_s9 + $0x2d8] ss:$36 sps:$4 sm:$0xff]  }
 0x557   : > { %8917 = vmatpush1.bf16.msra.mxu0 %v11820_v49  ;;  %7924 = vmatprep.subr.bf16.mxu1 %v11823_v11  ;;  %v11900_v49 = vld [vmem:[%s15707_s9 + $0x324] ss:$36 sps:$4 sm:$0xff]  }
 0x558   : > { %8918 = vmatprep.subr.bf16.mxu0 %v12077_v33  ;;  %v11898_v11 = vld [vmem:[%s15707_s9 + $0x320] ss:$36 sps:$4 sm:$0xff]  }
 0x55a   : > { %7925 = vmatpush1.bf16.msra.mxu1 %v11821_v48  ;;  %v11903_v48 = vld [vmem:[%s15707_s9 + $0x14] ss:$36 sps:$4 sm:$0xff]  }
 0x55b   : > { %8919 = vmatpush1.bf16.msra.mxu0 %v11824_v46  ;;  %7926 = vmatprep.subr.bf16.mxu1 %v11827_v36  ;;  %v11901_v46 = vld [vmem:[%s15707_s9 + $0x10] ss:$36 sps:$4 sm:$0xff]   ;;  %v11906_v36 = vld [vmem:[%s15707_s9 + $0x5c] ss:$36 sps:$4 sm:$0xff]  }
 0x55c   : > { %8920 = vmatprep.subr.bf16.mxu0 %v12077_v33  ;;  %v11832_v33 = vld [vmem:[%s15707_s9 + $0x48] ss:$36 sps:$4 sm:$0xff]  }
 0x55e   : > { %7927 = vmatpush1.bf16.msra.mxu1 %v11825_v39  ;;  %v11904_v39 = vld [vmem:[%s15707_s9 + $0x58] ss:$36 sps:$4 sm:$0xff]  }
 0x55f   : > { %8921 = vmatpush1.bf16.msra.mxu0 %v11828_v61  ;;  %8606 = vmatprep.subr.bf16.mxu1 %v11831_v14  ;;  %v11909_v61 = vld [vmem:[%s15707_s9 + $0xa4] ss:$36 sps:$4 sm:$0xff]  }
 0x560   : > { %v11907_v14 = vld [vmem:[%s15707_s9 + $0xa0] ss:$36 sps:$4 sm:$0xff]  }
 0x561   : > { %7937 = vmatmul.mubr.bf16.vlgmr.msra.gmra.mrb[120].mxu1 %v14675_v53  ;;  %v11835_v53 = vld [vmem:[%s15707_s9 + $0x90] ss:$36 sps:$4 sm:$0xff]  }
 0x562   : > { %8931 = vmatmul.mubr.bf16.vlgmr.msra.gmra.mrb[64].mxu0 %v13869_v40  ;;  %10229 = vmatprep.mubr.msk.bf16.mxu1 %vm1467_vm0, %v14710_v1  ;;  %v11840_v1 = vld [vmem:[%s15707_s9 + $0xdc] ss:$36 sps:$4 sm:$0xff]  }
 0x563   : > { %8607 = vmatpush1.bf16.msra.mxu1 %v11829_v13  ;;  %10361 = vmatprep.mubr.msk.bf16.mxu0 %vm1467_vm0, %v13879_v54  ;;  %v11912_v13 = vld [vmem:[%s15707_s9 + $0xec] ss:$36 sps:$4 sm:$0xff]  }
 0x564   : > { %8608 = vmatprep.subr.bf16.mxu1 %v11834_v18  ;;  %v11910_v18 = vld [vmem:[%s15707_s9 + $0xe8] ss:$36 sps:$4 sm:$0xff]  }
 0x567   : > { %8609 = vmatpush1.bf16.msra.mxu1 %v11832_v33  ;;  %v11915_v33 = vld [vmem:[%s15707_s9 + $0x134] ss:$36 sps:$4 sm:$0xff]  }
 0x568   : > { %8610 = vmatprep.subr.bf16.mxu1 %v11837_v30  ;;  %v11913_v30 = vld [vmem:[%s15707_s9 + $0x130] ss:$36 sps:$4 sm:$0xff]  }
 0x569   : > { %7947 = vmatmul.mubr.bf16.gmra.mrb[124].mxu1 %v14708_v37  ;;  %v11841_v37 = vld [vmem:[%s15707_s9 + $0x120] ss:$36 sps:$4 sm:$0xff]  }
 0x56a   : > { %8939 = vmatmul.mubr.bf16.gmra.mrb[68].mxu0 %v13877_v51  ;;  %10230 = vmatprep.mubr.msk.bf16.mxu1 %vm1467_vm0, %v14744_v56  ;;  %v11846_v56 = vld [vmem:[%s15707_s9 + $0x16c] ss:$36 sps:$4 sm:$0xff]  }
 0x56b   : > { %8611 = vmatpush1.bf16.msra.mxu1 %v11835_v53  ;;  %10362 = vmatprep.mubr.msk.bf16.mxu0 %vm1467_vm0, %v13939_v10  ;;  %v11918_v53 = vld [vmem:[%s15707_s9 + $0x17c] ss:$36 sps:$4 sm:$0xff]  }
 0x56c   : > { %8612 = vmatprep.subr.bf16.mxu1 %v11840_v1  ;;  %v11916_v1 = vld [vmem:[%s15707_s9 + $0x178] ss:$36 sps:$4 sm:$0xff]  }
 0x56f   : > { %8613 = vmatpush1.bf16.msra.mxu1 %v11838_v16 }
 0x570   : > { %8614 = vmatprep.subr.bf16.mxu1 %v11843_v57  ;;  %v11921_v57 = vld [vmem:[%s15707_s9 + $0x1c4] ss:$36 sps:$4 sm:$0xff]  }
 0x571   : > { %7957 = vmatmul.mubr.bf16.gmra.mrb[128].mxu1 %v14742_v27  ;;  %v11847_v27 = vld [vmem:[%s15707_s9 + $0x1b0] ss:$36 sps:$4 sm:$0xff]  }
 0x572   : > { %8947 = vmatmul.mubr.bf16.gmra.mrb[72].mxu0 %v13883_v63  ;;  %10231 = vmatprep.mubr.msk.bf16.mxu1 %vm1467_vm0, %v14778_v50  ;;  %v11852_v50 = vld [vmem:[%s15707_s9 + $0x1fc] ss:$36 sps:$4 sm:$0xff]  }
 0x573   : > { %8615 = vmatpush1.bf16.msra.mxu1 %v11841_v37  ;;  %10363 = vmatprep.mubr.msk.bf16.mxu0 %vm1467_vm0, %v13968_v44 }
 0x574   : > { %8616 = vmatprep.subr.bf16.mxu1 %v11846_v56 }
 0x577   : > { %8617 = vmatpush1.bf16.msra.mxu1 %v11844_v17 }
 0x578   : > { %8618 = vmatprep.subr.bf16.mxu1 %v11849_v9  ;;  %v11919_v9 = vld [vmem:[%s15707_s9 + $0x1c0] ss:$36 sps:$4 sm:$0xff]  }
 0x579   : > { %7967 = vmatmul.mubr.bf16.gmra.mrb[132].mxu1 %v14776_v43  ;;  %v11853_v43 = vld [vmem:[%s15707_s9 + $0x240] ss:$36 sps:$4 sm:$0xff]  }
 0x57a   : > { %8955 = vmatmul.mubr.bf16.gmra.mrb[76].mxu0 %v13963_v20  ;;  %10344 = vmatprep.mubr.msk.bf16.mxu1 %vm1467_vm0, %v13871_v21 }
 0x57b   : > { %8619 = vmatpush1.bf16.msra.mxu1 %v11847_v27  ;;  %v11924_v27 = vld [vmem:[%s15707_s9 + $0x20c] ss:$36 sps:$4 sm:$0xff]  }
 0x57c   : > { %8620 = vmatprep.subr.bf16.mxu1 %v11852_v50  ;;  %v11922_v50 = vld [vmem:[%s15707_s9 + $0x208] ss:$36 sps:$4 sm:$0xff]  }
 0x57f   : > { %8621 = vmatpush1.bf16.msra.mxu1 %v11850_v60 }
 0x580   : > { %8622 = vmatprep.subr.bf16.mxu1 %v11855_v2  ;;  %v11927_v2 = vld [vmem:[%s15707_s9 + $0x254] ss:$36 sps:$4 sm:$0xff]  }
 0x583   : > { %8623 = vmatpush1.bf16.msra.mxu1 %v11853_v43 }
 0x584   : > { %8624 = vmatprep.subr.bf16.mxu1 %v11858_v52 }
 0x587   : > { %8625 = vmatpush1.bf16.msra.mxu1 %v11856_v42 }
 0x588   : > { %8626 = vmatprep.subr.bf16.mxu1 %v11861_v34  ;;  %v11925_v34 = vld [vmem:[%s15707_s9 + $0x250] ss:$36 sps:$4 sm:$0xff]  }
 0x58b   : > { %8627 = vmatpush1.bf16.msra.mxu1 %v11859_v62  ;;  %v11930_v62 = vld [vmem:[%s15707_s9 + $0x29c] ss:$36 sps:$4 sm:$0xff]  }
 0x58c   : > { %8628 = vmatprep.subr.bf16.mxu1 %v11864_v23  ;;  %v11928_v23 = vld [vmem:[%s15707_s9 + $0x298] ss:$36 sps:$4 sm:$0xff]  }
 0x58f   : > { %8629 = vmatpush1.bf16.msra.mxu1 %v11862_v7 }
 0x590   : > { %8679 = vmatprep.subr.bf16.mxu1 %v11867_v6  ;;  %v11933_v6 = vld [vmem:[%s15707_s9 + $0x2e4] ss:$36 sps:$4 sm:$0xff]  }
 0x592   : > { %8639 = vmatmul.mubr.bf16.vlgmr.msra.gmra.mrb[136].mxu1 %v13869_v40 }
 0x593   : > { %10345 = vmatprep.mubr.msk.bf16.mxu1 %vm1467_vm0, %v13879_v54  ;;  %8680 = vmatpush1.bf16.msra.mxu1 %v11865_v41 }
 0x594   : > { %8681 = vmatprep.subr.bf16.mxu1 %v11870_v22 }
 0x597   : > { %8682 = vmatpush1.bf16.msra.mxu1 %v11868_v28 }
 0x598   : > { %8683 = vmatprep.subr.bf16.mxu1 %v11873_v58  ;;  %v11931_v58 = vld [vmem:[%s15707_s9 + $0x2e0] ss:$36 sps:$4 sm:$0xff]  }
 0x59a   : > { %8649 = vmatmul.mubr.bf16.gmra.mrb[140].mxu1 %v13877_v51 }
 0x59b   : > { %10346 = vmatprep.mubr.msk.bf16.mxu1 %vm1467_vm0, %v13939_v10  ;;  %8684 = vmatpush1.bf16.msra.mxu1 %v11871_v26  ;;  %v11936_v26 = vld [vmem:[%s15707_s9 + $0x32c] ss:$36 sps:$4 sm:$0xff]  }
 0x59c   : > { %8685 = vmatprep.subr.bf16.mxu1 %v11876_v55  ;;  %v11934_v55 = vld [vmem:[%s15707_s9 + $0x328] ss:$36 sps:$4 sm:$0xff]  }
 0x59f   : > { %8686 = vmatpush1.bf16.msra.mxu1 %v11874_v47 }
 0x5a0   : > { %8687 = vmatprep.subr.bf16.mxu1 %v11879_v3  ;;  %v11939_v3 = vld [vmem:[%s15707_s9 + $0x1c] ss:$36 sps:$4 sm:$0xff]  }
 0x5a2   : > { %8659 = vmatmul.mubr.bf16.gmra.mrb[144].mxu1 %v13883_v63 }
 0x5a3   : > { %10347 = vmatprep.mubr.msk.bf16.mxu1 %vm1467_vm0, %v13968_v44  ;;  %8688 = vmatpush1.bf16.msra.mxu1 %v11877_v31 }
 0x5a4   : > { %8689 = vmatprep.subr.bf16.mxu1 %v11882_v8 }
 0x5a7   : > { %8690 = vmatpush1.bf16.msra.mxu1 %v11880_v0 }
 0x5a8   : > { %8691 = vmatprep.subr.bf16.mxu1 %v11885_v35  ;;  %v11937_v35 = vld [vmem:[%s15707_s9 + $0x18] ss:$36 sps:$4 sm:$0xff]  }
 0x5aa   : > { %8669 = vmatmul.mubr.bf16.gmra.mrb[148].mxu1 %v13963_v20 }
 0x5ab   : > { %8692 = vmatpush1.bf16.msra.mxu1 %v11883_v4  ;;  %10348 = vmatprep.mubr.msk.bf16.mxu1 %vm1467_vm0, %v13871_v21  ;;  %v11942_v4 = vld [vmem:[%s15707_s9 + $0x64] ss:$36 sps:$4 sm:$0xff]  }
 0x5ac   : > { %8693 = vmatprep.subr.bf16.mxu1 %v11888_v32  ;;  %v11940_v32 = vld [vmem:[%s15707_s9 + $0x60] ss:$36 sps:$4 sm:$0xff]  }
 0x5af   : > { %8694 = vmatpush1.bf16.msra.mxu1 %v11886_v12  ;;  %v11945_v12 = vld [vmem:[%s15707_s9 + $0xac] ss:$36 sps:$4 sm:$0xff]  }
 0x5b0   : > { %8695 = vmatprep.subr.bf16.mxu1 %v11891_v25  ;;  %v11943_v25 = vld [vmem:[%s15707_s9 + $0xa8] ss:$36 sps:$4 sm:$0xff]  }
 0x5b3   : > { %8696 = vmatpush1.bf16.msra.mxu1 %v11889_v59  ;;  %v11948_v59 = vld [vmem:[%s15707_s9 + $0xf4] ss:$36 sps:$4 sm:$0xff]  }
 0x5b4   : > { %8697 = vmatprep.subr.bf16.mxu1 %v11894_v15  ;;  %v11946_v15 = vld [vmem:[%s15707_s9 + $0xf0] ss:$36 sps:$4 sm:$0xff]  }
 0x5b7   : > { %8698 = vmatpush1.bf16.msra.mxu1 %v11892_v45  ;;  %v11951_v45 = vld [vmem:[%s15707_s9 + $0x13c] ss:$36 sps:$4 sm:$0xff]  }
 0x5b8   : > { %8699 = vmatprep.subr.bf16.mxu1 %v11897_v29  ;;  %v11949_v29 = vld [vmem:[%s15707_s9 + $0x138] ss:$36 sps:$4 sm:$0xff]  }
 0x5bb   : > { %8700 = vmatpush1.bf16.msra.mxu1 %v11895_v38  ;;  %v11954_v38 = vld [vmem:[%s15707_s9 + $0x184] ss:$36 sps:$4 sm:$0xff]  }
 0x5bc   : > { %8701 = vmatprep.subr.bf16.mxu1 %v11900_v49  ;;  %v11952_v49 = vld [vmem:[%s15707_s9 + $0x180] ss:$36 sps:$4 sm:$0xff]  }
 0x5bf   : > { %8702 = vmatpush1.bf16.msra.mxu1 %v11898_v11 }
 0x5c0   : > { %8752 = vmatprep.subr.bf16.mxu1 %v11903_v48  ;;  %v11957_v48 = vld [vmem:[%s15707_s9 + $0x1cc] ss:$36 sps:$4 sm:$0xff]  }
 0x5c2   : > { %8712 = vmatmul.mubr.bf16.vlgmr.msra.gmra.mrb[88].mxu1 %v13869_v40 }
 0x5c3   : > { %10349 = vmatprep.mubr.msk.bf16.mxu1 %vm1467_vm0, %v13879_v54  ;;  %8753 = vmatpush1.bf16.msra.mxu1 %v11901_v46 }
 0x5c4   : > { %8754 = vmatprep.subr.bf16.mxu1 %v11906_v36 }
 0x5c7   : > { %8755 = vmatpush1.bf16.msra.mxu1 %v11904_v39 }
 0x5c8   : > { %8756 = vmatprep.subr.bf16.mxu1 %v11909_v61  ;;  %v11955_v61 = vld [vmem:[%s15707_s9 + $0x1c8] ss:$36 sps:$4 sm:$0xff]  }
 0x5ca   : > { %8722 = vmatmul.mubr.bf16.gmra.mrb[92].mxu1 %v13877_v51 }
 0x5cb   : > { %10350 = vmatprep.mubr.msk.bf16.mxu1 %vm1467_vm0, %v13939_v10  ;;  %8757 = vmatpush1.bf16.msra.mxu1 %v11907_v14  ;;  %v11960_v14 = vld [vmem:[%s15707_s9 + $0x214] ss:$36 sps:$4 sm:$0xff]  }
 0x5cc   : > { %8758 = vmatprep.subr.bf16.mxu1 %v11912_v13  ;;  %v11958_v13 = vld [vmem:[%s15707_s9 + $0x210] ss:$36 sps:$4 sm:$0xff]  }
 0x5cf   : > { %8759 = vmatpush1.bf16.msra.mxu1 %v11910_v18 }
 0x5d0   : > { %8760 = vmatprep.subr.bf16.mxu1 %v11915_v33  ;;  %v11963_v33 = vld [vmem:[%s15707_s9 + $0x25c] ss:$36 sps:$4 sm:$0xff]  }
 0x5d2   : > { %8732 = vmatmul.mubr.bf16.gmra.mrb[96].mxu1 %v13883_v63 }
 0x5d3   : > { %10351 = vmatprep.mubr.msk.bf16.mxu1 %vm1467_vm0, %v13968_v44  ;;  %8761 = vmatpush1.bf16.msra.mxu1 %v11913_v30 }
 0x5d4   : > { %v15214_v16 = vpop.f32.mrb[32].mxu0  ;;  %8762 = vmatprep.subr.bf16.mxu1 %v11918_v53 }
 0x5d5   : > { %v15219_v37 = vpop.f32.mrb[33].mxu0 }
 0x5d6   : > { %v15221_v56 = vpop.f32.mrb[34].mxu0 }
 0x5d7   : > { %8763 = vmatpush1.bf16.msra.mxu1 %v11916_v1  ;;  %v15223_v17 = vpop.f32.mrb[35].mxu0 }
 0x5d8   : > { %8764 = vmatprep.subr.bf16.mxu1 %v11921_v57  ;;  %v11961_v57 = vld [vmem:[%s15707_s9 + $0x258] ss:$36 sps:$4 sm:$0xff]  }
 0x5da   : > { %8742 = vmatmul.mubr.bf16.gmra.mrb[100].mxu1 %v13963_v20 }
 0x5db   : > { %8765 = vmatpush1.bf16.msra.mxu1 %v11919_v9  ;;  %10352 = vmatprep.mubr.msk.bf16.mxu1 %vm1467_vm0, %v13871_v21  ;;  %v11964_v9 = vld [vmem:[%s15707_s9 + $0x2a0] ss:$36 sps:$4 sm:$0xff]  }
 0x5dc   : > { %v15237_v60 = vpop.f32.mrb[36].mxu0  ;;  %8766 = vmatprep.subr.bf16.mxu1 %v11924_v27 }
 0x5dd   : > { %v15242_v43 = vpop.f32.mrb[37].mxu0 }
 0x5de   : > { %v15244_v52 = vpop.f32.mrb[38].mxu0 }
 0x5df   : > { %8767 = vmatpush1.bf16.msra.mxu1 %v11922_v50  ;;  %v15246_v42 = vpop.f32.mrb[39].mxu0  ;;  %v11969_v50 = vld [vmem:[%s15707_s9 + $0x2ec] ss:$36 sps:$4 sm:$0xff]  }
 0x5e0   : > { %8768 = vmatprep.subr.bf16.mxu1 %v11927_v2 }
 0x5e3   : > { %8769 = vmatpush1.bf16.msra.mxu1 %v11925_v34 }
 0x5e4   : > { %v15257_v7 = vpop.f32.mrb[40].mxu0  ;;  %8770 = vmatprep.subr.bf16.mxu1 %v11930_v62 }
 0x5e5   : > { %v15262_v41 = vpop.f32.mrb[41].mxu0 }
 0x5e6   : > { %v15264_v22 = vpop.f32.mrb[42].mxu0 }
 0x5e7   : > { %8771 = vmatpush1.bf16.msra.mxu1 %v11928_v23  ;;  %v15266_v28 = vpop.f32.mrb[43].mxu0  ;;  %v11967_v23 = vld [vmem:[%s15707_s9 + $0x2e8] ss:$36 sps:$4 sm:$0xff]  }
 0x5e8   : > { %8772 = vmatprep.subr.bf16.mxu1 %v11933_v6  ;;  %v11972_v6 = vld [vmem:[%s15707_s9 + $0x334] ss:$36 sps:$4 sm:$0xff]  }
 0x5eb   : > { %8773 = vmatpush1.bf16.msra.mxu1 %v11931_v58  ;;  %v11970_v58 = vld [vmem:[%s15707_s9 + $0x330] ss:$36 sps:$4 sm:$0xff]  }
 0x5ec   : > { %v15277_v47 = vpop.f32.mrb[44].mxu0  ;;  %8774 = vmatprep.subr.bf16.mxu1 %v11936_v26 }
 0x5ed   : > { %v15282_v31 = vpop.f32.mrb[45].mxu0 }
 0x5ee   : > { %v15284_v8 = vpop.f32.mrb[46].mxu0 }
 0x5ef   : > { %8775 = vmatpush1.bf16.msra.mxu1 %v11934_v55  ;;  %v15286_v0 = vpop.f32.mrb[47].mxu0 }
 0x5f0   : > { %8825 = vmatprep.subr.bf16.mxu1 %v11939_v3 }
 0x5f2   : > { %8785 = vmatmul.mubr.bf16.vlgmr.msra.gmra.mrb[104].mxu1 %v13869_v40 }
 0x5f3   : > { %10353 = vmatprep.mubr.msk.bf16.mxu1 %vm1467_vm0, %v13879_v54  ;;  %8826 = vmatpush1.bf16.msra.mxu1 %v11937_v35 }
 0x5f4   : > { %8827 = vmatprep.subr.bf16.mxu1 %v11942_v4 }
 0x5f7   : > { %8828 = vmatpush1.bf16.msra.mxu1 %v11940_v32 }
 0x5f8   : > { %8829 = vmatprep.subr.bf16.mxu1 %v11945_v12 }
 0x5fa   : > { %8795 = vmatmul.mubr.bf16.gmra.mrb[108].mxu1 %v13877_v51 }
 0x5fb   : > { %10354 = vmatprep.mubr.msk.bf16.mxu1 %vm1467_vm0, %v13939_v10  ;;  %8830 = vmatpush1.bf16.msra.mxu1 %v11943_v25 }
 0x5fc   : > { %8831 = vmatprep.subr.bf16.mxu1 %v11948_v59  ;;  %v11974_v59 = vld [vmem:[%s12225_s18 + $0x44] sm:$0xf] }
 0x5ff   : > { %8832 = vmatpush1.bf16.msra.mxu1 %v11946_v15 }
 0x600   : > { %8833 = vmatprep.subr.bf16.mxu1 %v11951_v45 }
 0x602   : > { %8805 = vmatmul.mubr.bf16.gmra.mrb[112].mxu1 %v13883_v63 }
 0x603   : > { %10355 = vmatprep.mubr.msk.bf16.mxu1 %vm1467_vm0, %v13968_v44  ;;  %8834 = vmatpush1.bf16.msra.mxu1 %v11949_v29 }
 0x604   : > { %v8011_v11 = vpop.f32.mrb[48].mxu0  ;;  %8835 = vmatprep.subr.bf16.mxu1 %v11954_v38 }
 0x605   : > { %v8013_v46 = vpop.f32.mrb[49].mxu0 }
 0x606   : > { %v8014_v36 = vpop.f32.mrb[50].mxu0 }
 0x607   : > { %8836 = vmatpush1.bf16.msra.mxu1 %v11952_v49  ;;  %v8016_v39 = vpop.f32.mrb[51].mxu0 }
 0x608   : > { %8837 = vmatprep.subr.bf16.mxu1 %v11957_v48 }
 0x60a   : > { %8815 = vmatmul.mubr.bf16.gmra.mrb[116].mxu1 %v13963_v20 }
 0x60b   : > { %8838 = vmatpush1.bf16.msra.mxu1 %v11955_v61  ;;  %10356 = vmatprep.mubr.msk.bf16.mxu1 %vm1467_vm0, %v13871_v21  ;;  %v11966_v21 = vld [vmem:[%s15707_s9 + $0x2a4] ss:$36 sps:$4 sm:$0xff]  }
 0x60c   : > { %v8019_v18 = vpop.f32.mrb[52].mxu0  ;;  %8839 = vmatprep.subr.bf16.mxu1 %v11960_v14 }
 0x60d   : > { %v8021_v30 = vpop.f32.mrb[53].mxu0 }
 0x60e   : > { %v8022_v53 = vpop.f32.mrb[54].mxu0 }
 0x60f   : > { %8840 = vmatpush1.bf16.msra.mxu1 %v11958_v13  ;;  %v8024_v1 = vpop.f32.mrb[55].mxu0 }
 0x610   : > { %8841 = vmatprep.subr.bf16.mxu1 %v11963_v33  ;;  %v11976_v33 = vld [vmem:[%s12225_s18 + $0x8c] sm:$0xf] }
 0x611   : > { %v9119_v30 = vunpack.c.l.bf16 %v11976_v33  ;;  %v11981_v33 = vld [vmem:[%s12225_s18] sm:$0xff] }
 0x613   : > { %8842 = vmatpush1.bf16.msra.mxu1 %v11961_v57 }
 0x614   : > { %v15357_v27 = vpop.f32.mrb[56].mxu0  ;;  %8843 = vmatprep.subr.bf16.mxu1 %v11966_v21 }
 0x615   : > { %v8029_v2 = vpop.f32.mrb[57].mxu0 }
 0x616   : > { %v15362_v34 = vpop.f32.mrb[58].mxu0 }
 0x617   : > { %8844 = vmatpush1.bf16.msra.mxu1 %v11964_v9  ;;  %v8032_v62 = vpop.f32.mrb[59].mxu0 }
 0x618   : > { %8845 = vmatprep.subr.bf16.mxu1 %v11969_v50 }
 0x61b   : > { %8846 = vmatpush1.bf16.msra.mxu1 %v11967_v23  ;;  %v11977_v23 = vld [vmem:[%s12225_s18 + $0xb0] sm:$0xf] }
 0x61c   : > { %v15373_v26 = vpop.f32.mrb[60].mxu0  ;;  %8847 = vmatprep.subr.bf16.mxu1 %v11972_v6  ;;  %v9128_v6 = vunpack.c.l.bf16 %v11977_v23 }
 0x61d   : > { %v8037_v55 = vpop.f32.mrb[61].mxu0 }
 0x61e   : > { %v15375_v3 = vpop.f32.mrb[62].mxu0 }
 0x61f   : > { %8848 = vmatpush1.bf16.msra.mxu1 %v11970_v58  ;;  %v8040_v35 = vpop.f32.mrb[63].mxu0 }
 0x622   : > { %8858 = vmatmul.mubr.bf16.vlgmr.msra.gmra.mrb[120].mxu1 %v13869_v40  ;;  %v15390_v40 = vld [vmem:[%s15709_s11 + $0x8] ss:$0 sm:$0xff] }
 0x623   : > { %10357 = vmatprep.mubr.msk.bf16.mxu1 %vm1467_vm0, %v13879_v54  ;;  %v11973_v54 = vld [vmem:[%s12225_s18 + $0x20] sm:$0xf] }
 0x624   : > { %v9092_v12 = vunpack.c.l.bf16 %v11973_v54 }
 0x62a   : > { %8868 = vmatmul.mubr.bf16.gmra.mrb[124].mxu1 %v13877_v51 }
 0x62b   : > { %10358 = vmatprep.mubr.msk.bf16.mxu1 %vm1467_vm0, %v13939_v10 }
 0x632   : > { %8878 = vmatmul.mubr.bf16.gmra.mrb[128].mxu1 %v13883_v63 }
 0x633   : > { %10359 = vmatprep.mubr.msk.bf16.mxu1 %vm1467_vm0, %v13968_v44  ;;  %v9101_v44 = vunpack.c.l.bf16 %v11974_v59 }
 0x635   : > { %v8932_v4 = vpop.f32.mrb[64].mxu0 }
 0x636   : > { %v8933_v32 = vadd.f32 %v8932_v4, %v8011_v11  ;;  %v8934_v25 = vpop.f32.mrb[65].mxu0  ;;  %v11978_v4 = vld [vmem:[%s12225_s18 + $0xd4] sm:$0xf] }
 0x637   : > { %v8935_v51 = vpop.f32.mrb[66].mxu0 }
 0x638   : > { %v9020_v63 = vadd.f32 %v15390_v40, %v8933_v32  ;;  %v8936_v10 = vadd.f32 %v8935_v51, %v8014_v36  ;;  %v8937_v15 = vpop.f32.mrb[67].mxu0  ;;  %v11975_v36 = vld [vmem:[%s12225_s18 + $0x68] sm:$0xf]  ;;  %v9137_v32 = vunpack.c.l.bf16 %v11978_v4 }
 0x639   : > { %v9110_v39 = vunpack.c.l.bf16 %v11975_v36 }
 0x63a   : > { %v9164_v45 = vadd.f32 %v9092_v12, %v9020_v63  ;;  %v9029_v29 = vadd.f32 %v15390_v40, %v8936_v10  ;;  %8888 = vmatmul.mubr.bf16.gmra.mrb[132].mxu1 %v13963_v20 }
 0x63c   : > { %v9236_v38 = vmax.f32 %v9164_v45, 0.0  ;;  %v9173_v49 = vadd.f32 %v9101_v44, %v9029_v29  ;;  %v11979_v44 = vld [vmem:[%s12225_s18 + $0xf8] sm:$0xf] }
 0x63d   : > { %v8940_v11 = vpop.f32.mrb[68].mxu0 }
 0x63e   : > { %9308 = vst.msk [vmem:[%s15399_s14 + $0x40] sm:$0xff] %vm1467_vm0, %v9236_v38  ;;  %v9245_v48 = vmax.f32 %v9173_v49, 0.0  ;;  %v8941_v46 = vadd.f32 %v8940_v11, %v8019_v18  ;;  %v8942_v61 = vpop.f32.mrb[69].mxu0  ;;  %v11980_v49 = vld [vmem:[%s12225_s18 + $0x11c] sm:$0xf] }
 0x63f   : > { %v8943_v14 = vpop.f32.mrb[70].mxu0  ;;  %v9155_v11 = vunpack.c.l.bf16 %v11980_v49 }
 0x640   : > { %9317 = vst.msk [vmem:[%s15399_s14 + $0x88] sm:$0xff] %vm1467_vm0, %v9245_v48  ;;  %v9038_v20 = vadd.f32 %v15390_v40, %v8941_v46  ;;  %v8944_v13 = vadd.f32 %v8943_v14, %v8022_v53  ;;  %v8945_v1 = vpop.f32.mrb[71].mxu0  ;;  %v15436_v14 = vld [vmem:[%s15709_s11] sm:$0xff] }
 0x642   : > { %v9182_v57 = vadd.f32 %v9110_v39, %v9038_v20  ;;  %v9047_v21 = vadd.f32 %v15390_v40, %v8944_v13 }
 0x644   : > { %v9254_v18 = vmax.f32 %v9182_v57, 0.0  ;;  %v9191_v9 = vadd.f32 %v9119_v30, %v9047_v21  ;;  %v9084_v30 = vunpack.c.l.bf16 %v11981_v33  ;;  %v9085_v21 = vunpack.c.h.bf16 %v11981_v33 }
 0x645   : > { %v8948_v50 = vpop.f32.mrb[72].mxu0 }
 0x646   : > { %9326 = vst.msk [vmem:[%s15399_s14 + $0xd0] sm:$0xff] %vm1467_vm0, %v9254_v18  ;;  %v9263_v2 = vmax.f32 %v9191_v9, 0.0  ;;  %v8949_v62 = vadd.f32 %v8948_v50, %v15357_v27  ;;  %v8950_v53 = vpop.f32.mrb[73].mxu0 }
 0x647   : > { %v8951_v58 = vpop.f32.mrb[74].mxu0 }
 0x648   : > { %9335 = vst.msk [vmem:[%s15399_s14 + $0x118] sm:$0xff] %vm1467_vm0, %v9263_v2  ;;  %v9056_v55 = vadd.f32 %v15390_v40, %v8949_v62  ;;  %v8952_v35 = vadd.f32 %v8951_v58, %v15362_v34  ;;  %v8953_v54 = vpop.f32.mrb[75].mxu0  ;;  %v9146_v34 = vunpack.c.l.bf16 %v11979_v44 }
 0x64a   : > { %v9200_v12 = vadd.f32 %v9128_v6, %v9056_v55  ;;  %v9065_v27 = vadd.f32 %v15390_v40, %v8952_v35 }
 0x64c   : > { %v9272_v25 = vmax.f32 %v9200_v12, 0.0  ;;  %v9209_v51 = vadd.f32 %v9137_v32, %v9065_v27  ;;  %v11983_v12 = vld [vmem:[%s12225_s18 + $0x48] sm:$0xff] }
 0x64d   : > { %v8956_v63 = vpop.f32.mrb[76].mxu0  ;;  %v9102_v27 = vunpack.c.l.bf16 %v11983_v12 }
 0x64e   : > { %9344 = vst.msk [vmem:[%s15399_s14 + $0x160] sm:$0xff] %vm1467_vm0, %v9272_v25  ;;  %v9281_v10 = vmax.f32 %v9209_v51, 0.0  ;;  %v8957_v59 = vadd.f32 %v8956_v63, %v15373_v26  ;;  %v8958_v15 = vpop.f32.mrb[77].mxu0 }
 0x64f   : > { %v8959_v45 = vpop.f32.mrb[78].mxu0  ;;  %v11984_v15 = vld [vmem:[%s12225_s18 + $0x6c] sm:$0xff] }
 0x650   : > { %9353 = vst.msk [vmem:[%s15399_s14 + $0x1a8] sm:$0xff] %vm1467_vm0, %v9281_v10  ;;  %v9074_v29 = vadd.f32 %v15390_v40, %v8957_v59  ;;  %v8960_v38 = vadd.f32 %v8959_v45, %v15375_v3  ;;  %v8961_v48 = vpop.f32.mrb[79].mxu0  ;;  %v15440_v3 = vrot.slane %v15436_v14, %v13851_v24  ;;  %v11982_v24 = vld [vmem:[%s12225_s18 + $0x24] sm:$0xff]  ;;  %v9103_v10 = vunpack.c.h.bf16 %v11983_v12 }
 0x651   : > { %v9093_v2 = vunpack.c.l.bf16 %v11982_v24  ;;  %v9094_v23 = vunpack.c.h.bf16 %v11982_v24  ;;  %v9111_v45 = vunpack.c.l.bf16 %v11984_v15  ;;  %v9112_v49 = vunpack.c.h.bf16 %v11984_v15  ;;  %v11986_v24 = vld [vmem:[%s12225_s18 + $0xb4] sm:$0xff] }
 0x652   : > { %v9218_v46 = vadd.f32 %v9146_v34, %v9074_v29  ;;  %v9083_v36 = vadd.f32 %v15390_v40, %v8960_v38  ;;  %v15444_v40 = vrot.slane %v15436_v14, %v13857_v19 }
 0x654   : > { %v9290_v39 = vmax.f32 %v9218_v46, 0.0  ;;  %v9227_v26 = vadd.f32 %v9155_v11, %v9083_v36 }
 0x656   : > { %9362 = vst.msk [vmem:[%s15399_s14 + $0x1f0] sm:$0xff] %vm1467_vm0, %v9290_v39  ;;  %v9299_v61 = vmax.f32 %v9227_v26, 0.0 }
 0x658   : > { %9371 = vst.msk [vmem:[%s15399_s14 + $0x238] sm:$0xff] %vm1467_vm0, %v9299_v61 }
 0x665   : > { %v8640_v20 = vpop.f32.mrb[136].mxu1 }
 0x666   : > { %v8641_v13 = vadd.f32 %v8640_v20, %v15214_v16  ;;  %v8642_v1 = vpop.f32.mrb[137].mxu1 }
 0x667   : > { %v8643_v57 = vadd.f32 %v8642_v1, %v15219_v37  ;;  %v8644_v18 = vpop.f32.mrb[138].mxu1 }
 0x668   : > { %v9012_v9 = vadd.f32 %v15440_v3, %v8641_v13  ;;  %v8645_v50 = vadd.f32 %v8644_v18, %v15221_v56  ;;  %v8646_v62 = vpop.f32.mrb[139].mxu1  ;;  %v11985_v13 = vld [vmem:[%s12225_s18 + $0x90] sm:$0xff] }
 0x669   : > { %v9013_v19 = vadd.f32 %v15444_v40, %v8643_v57  ;;  %v8647_v16 = vadd.f32 %v8646_v62, %v15223_v17  ;;  %v9120_v33 = vunpack.c.l.bf16 %v11985_v13 }
 0x66a   : > { %v9156_v6 = vadd.f32 %v9084_v30, %v9012_v9  ;;  %v9021_v37 = vadd.f32 %v15440_v3, %v8645_v50 }
 0x66b   : > { %v9157_v53 = vadd.f32 %v9085_v21, %v9013_v19  ;;  %v9022_v58 = vadd.f32 %v15444_v40, %v8647_v16  ;;  %v9121_v21 = vunpack.c.h.bf16 %v11985_v13  ;;  %v9130_v16 = vunpack.c.h.bf16 %v11986_v24 }
 0x66c   : > { %v9228_v55 = vmax.f32 %v9156_v6, 0.0  ;;  %v9165_v56 = vadd.f32 %v9093_v2, %v9021_v37  ;;  %v9129_v2 = vunpack.c.l.bf16 %v11986_v24 }
 0x66d   : > { %v9229_v35 = vmax.f32 %v9157_v53, 0.0  ;;  %v9166_v4 = vadd.f32 %v9094_v23, %v9022_v58  ;;  %v8650_v32 = vpop.f32.mrb[140].mxu1 }
 0x66e   : > { %9300 = vst [vmem:[%s15399_s14] sm:$0xff] %v9228_v55  ;;  %v9237_v54 = vmax.f32 %v9165_v56, 0.0  ;;  %v8651_v17 = vadd.f32 %v8650_v32, %v15237_v60  ;;  %v8652_v25 = vpop.f32.mrb[141].mxu1 }
 0x66f   : > { %9301 = vst [vmem:[%s15399_s14 + $0x8] sm:$0xff] %v9229_v35  ;;  %v9238_v51 = vmax.f32 %v9166_v4, 0.0  ;;  %v8653_v63 = vadd.f32 %v8652_v25, %v15242_v43  ;;  %v8654_v59 = vpop.f32.mrb[142].mxu1  ;;  %v11987_v4 = vld [vmem:[%s12225_s18 + $0xd8] sm:$0xff] }
 0x670   : > { %9309 = vst [vmem:[%s15399_s14 + $0x48] sm:$0xff] %v9237_v54  ;;  %v9030_v44 = vadd.f32 %v15440_v3, %v8651_v17  ;;  %v8655_v34 = vadd.f32 %v8654_v59, %v15244_v52  ;;  %v8656_v29 = vpop.f32.mrb[143].mxu1  ;;  %v9138_v32 = vunpack.c.l.bf16 %v11987_v4 }
 0x671   : > { %9310 = vst [vmem:[%s15399_s14 + $0x50] sm:$0xff] %v9238_v51  ;;  %v9031_v60 = vadd.f32 %v15444_v40, %v8653_v63  ;;  %v8657_v38 = vadd.f32 %v8656_v29, %v15246_v42 }
 0x672   : > { %v9174_v43 = vadd.f32 %v9102_v27, %v9030_v44  ;;  %v9039_v11 = vadd.f32 %v15440_v3, %v8655_v34  ;;  %v9139_v27 = vunpack.c.h.bf16 %v11987_v4 }
 0x673   : > { %v9175_v48 = vadd.f32 %v9103_v10, %v9031_v60  ;;  %v9040_v46 = vadd.f32 %v15444_v40, %v8657_v38  ;;  %v11988_v10 = vld [vmem:[%s12225_s18 + $0xfc] sm:$0xff] }
 0x674   : > { %v9246_v36 = vmax.f32 %v9174_v43, 0.0  ;;  %v9183_v52 = vadd.f32 %v9111_v45, %v9039_v11  ;;  %v9147_v59 = vunpack.c.l.bf16 %v11988_v10 }
 0x675   : > { %v9247_v39 = vmax.f32 %v9175_v48, 0.0  ;;  %v9184_v26 = vadd.f32 %v9112_v49, %v9040_v46  ;;  %v8660_v61 = vpop.f32.mrb[144].mxu1  ;;  %v8981_v46 = vsub.s32 3, %v13848_v5 }
 0x676   : > { %9318 = vst [vmem:[%s15399_s14 + $0x90] sm:$0xff] %v9246_v36  ;;  %v9255_v20 = vmax.f32 %v9183_v52, 0.0  ;;  %v8661_v42 = vadd.f32 %v8660_v61, %v15257_v7  ;;  %v8662_v30 = vpop.f32.mrb[145].mxu1  ;;  %v11989_v36 = vld [vmem:[%s12225_s18 + $0x8] sm:$0xff] }
 0x677   : > { %9319 = vst [vmem:[%s15399_s14 + $0x98] sm:$0xff] %v9247_v39  ;;  %v9256_v1 = vmax.f32 %v9184_v26, 0.0  ;;  %v8663_v57 = vadd.f32 %v8662_v30, %v15262_v41  ;;  %v8664_v18 = vpop.f32.mrb[146].mxu1  ;;  %v9086_v52 = vunpack.c.l.bf16 %v11989_v36  ;;  %v9087_v26 = vunpack.c.h.bf16 %v11989_v36 }
 0x678   : > { %9327 = vst [vmem:[%s15399_s14 + $0xd8] sm:$0xff] %v9255_v20  ;;  %v9048_v9 = vadd.f32 %v15440_v3, %v8661_v42  ;;  %v8665_v50 = vadd.f32 %v8664_v18, %v15264_v22  ;;  %v8666_v62 = vpop.f32.mrb[147].mxu1  ;;  %v11990_v42 = vld [vmem:[%s12225_s18 + $0x2c] sm:$0xff] }
 0x679   : > { %9328 = vst [vmem:[%s15399_s14 + $0xe0] sm:$0xff] %v9256_v1  ;;  %v9049_v7 = vadd.f32 %v15444_v40, %v8663_v57  ;;  %v8667_v19 = vadd.f32 %v8666_v62, %v15266_v28  ;;  %v9095_v13 = vunpack.c.l.bf16 %v11990_v42  ;;  %v9096_v1 = vunpack.c.h.bf16 %v11990_v42 }
 0x67a   : > { %v9192_v41 = vadd.f32 %v9120_v33, %v9048_v9  ;;  %v9057_v23 = vadd.f32 %v15440_v3, %v8665_v50 }
 0x67b   : > { %v9193_v6 = vadd.f32 %v9121_v21, %v9049_v7  ;;  %v9058_v37 = vadd.f32 %v15444_v40, %v8667_v19 }
 0x67c   : > { %v9264_v53 = vmax.f32 %v9192_v41, 0.0  ;;  %v9201_v22 = vadd.f32 %v9129_v2, %v9057_v23 }
 0x67d   : > { %v9265_v58 = vmax.f32 %v9193_v6, 0.0  ;;  %v9202_v55 = vadd.f32 %v9130_v16, %v9058_v37  ;;  %v8670_v56 = vpop.f32.mrb[148].mxu1  ;;  %v11991_v16 = vld [vmem:[%s12225_s18 + $0x50] sm:$0xff] }
 0x67e   : > { %9336 = vst [vmem:[%s15399_s14 + $0x120] sm:$0xff] %v9264_v53  ;;  %v9273_v35 = vmax.f32 %v9201_v22, 0.0  ;;  %v8671_v28 = vadd.f32 %v8670_v56, %v15277_v47  ;;  %v8672_v54 = vpop.f32.mrb[149].mxu1  ;;  %v9104_v41 = vunpack.c.l.bf16 %v11991_v16  ;;  %v9105_v37 = vunpack.c.h.bf16 %v11991_v16 }
 0x67f   : > { %9337 = vst [vmem:[%s15399_s14 + $0x128] sm:$0xff] %v9265_v58  ;;  %v9274_v17 = vmax.f32 %v9202_v55, 0.0  ;;  %v8673_v12 = vadd.f32 %v8672_v54, %v15282_v31  ;;  %v8674_v25 = vpop.f32.mrb[150].mxu1  ;;  %v9148_v31 = vunpack.c.h.bf16 %v11988_v10  ;;  %v11992_v58 = vld [vmem:[%s12225_s18 + $0x74] sm:$0xff] }
 0x680   : > { %9345 = vst [vmem:[%s15399_s14 + $0x168] sm:$0xff] %v9273_v35  ;;  %v9066_v51 = vadd.f32 %v15440_v3, %v8671_v28  ;;  %v8675_v63 = vadd.f32 %v8674_v25, %v15284_v8  ;;  %v8676_v44 = vpop.f32.mrb[151].mxu1  ;;  %v9113_v55 = vunpack.c.l.bf16 %v11992_v58  ;;  %v9114_v28 = vunpack.c.h.bf16 %v11992_v58 }
 0x681   : > { %9346 = vst [vmem:[%s15399_s14 + $0x170] sm:$0xff] %v9274_v17  ;;  %v9067_v47 = vadd.f32 %v15444_v40, %v8673_v12  ;;  %v8677_v34 = vadd.f32 %v8676_v44, %v15286_v0  ;;  %v8977_v0 = vsub.s32 2, %v13848_v5  ;;  %v8985_v58 = vsub.s32 4, %v13848_v5 }
 0x682   : > { %v9210_v15 = vadd.f32 %v9138_v32, %v9066_v51  ;;  %v9075_v45 = vadd.f32 %v15440_v3, %v8675_v63 }
 0x683   : > { %v9211_v29 = vadd.f32 %v9139_v27, %v9067_v47  ;;  %v9076_v8 = vadd.f32 %v15444_v40, %v8677_v34  ;;  %v15505_v3 = vrot.slane %v15436_v14, %v8977_v0  ;;  %v15508_v40 = vrot.slane %v15436_v14, %v8981_v46 }
 0x684   : > { %v9282_v60 = vmax.f32 %v9210_v15, 0.0  ;;  %v9219_v38 = vadd.f32 %v9147_v59, %v9075_v45  ;;  %v11993_v59 = vld [vmem:[%s12225_s18 + $0x98] sm:$0xff] }
 0x685   : > { %v9283_v49 = vmax.f32 %v9211_v29, 0.0  ;;  %v9220_v43 = vadd.f32 %v9148_v31, %v9076_v8  ;;  %v9122_v44 = vunpack.c.l.bf16 %v11993_v59  ;;  %v9123_v31 = vunpack.c.h.bf16 %v11993_v59  ;;  %v11994_v29 = vld [vmem:[%s12225_s18 + $0xbc] sm:$0xff] }
 0x686   : > { %9354 = vst [vmem:[%s15399_s14 + $0x1b0] sm:$0xff] %v9282_v60  ;;  %v9291_v11 = vmax.f32 %v9219_v38, 0.0  ;;  %v9131_v8 = vunpack.c.l.bf16 %v11994_v29 }
 0x687   : > { %9355 = vst [vmem:[%s15399_s14 + $0x1b8] sm:$0xff] %v9283_v49  ;;  %v9292_v48 = vmax.f32 %v9220_v43, 0.0  ;;  %v9132_v49 = vunpack.c.h.bf16 %v11994_v29 }
 0x688   : > { %9363 = vst [vmem:[%s15399_s14 + $0x1f8] sm:$0xff] %v9291_v11 }
 0x689   : > { %9364 = vst [vmem:[%s15399_s14 + $0x200] sm:$0xff] %v9292_v48 }
 0x695   : > { %v8713_v39 = vpop.f32.mrb[88].mxu1 }
 0x696   : > { %v9014_v61 = vadd.f32 %v15505_v3, %v8713_v39  ;;  %v8715_v20 = vpop.f32.mrb[89].mxu1 }
 0x697   : > { %v9015_v33 = vadd.f32 %v15508_v40, %v8715_v20  ;;  %v8717_v30 = vpop.f32.mrb[90].mxu1  ;;  %v11995_v20 = vld [vmem:[%s12225_s18 + $0xe0] sm:$0xff] }
 0x698   : > { %v9158_v57 = vadd.f32 %v9086_v52, %v9014_v61  ;;  %v9023_v21 = vadd.f32 %v15505_v3, %v8717_v30  ;;  %v8719_v18 = vpop.f32.mrb[91].mxu1  ;;  %v9140_v42 = vunpack.c.l.bf16 %v11995_v20  ;;  %v9141_v30 = vunpack.c.h.bf16 %v11995_v20 }
 0x699   : > { %v9159_v9 = vadd.f32 %v9087_v26, %v9015_v33  ;;  %v9024_v50 = vadd.f32 %v15508_v40, %v8719_v18 }
 0x69a   : > { %v9230_v24 = vmax.f32 %v9158_v57, 0.0  ;;  %v9167_v2 = vadd.f32 %v9095_v13, %v9023_v21  ;;  %v11996_v21 = vld [vmem:[%s12225_s18 + $0x104] sm:$0xff] }
 0x69b   : > { %v9231_v62 = vmax.f32 %v9159_v9, 0.0  ;;  %v9168_v7 = vadd.f32 %v9096_v1, %v9024_v50  ;;  %v9149_v18 = vunpack.c.l.bf16 %v11996_v21 }
 0x69c   : > { %9302 = vst [vmem:[%s15399_s14 + $0x10] sm:$0xff] %v9230_v24  ;;  %v9239_v19 = vmax.f32 %v9167_v2, 0.0  ;;  %v9150_v24 = vunpack.c.h.bf16 %v11996_v21 }
 0x69d   : > { %9303 = vst [vmem:[%s15399_s14 + $0x18] sm:$0xff] %v9231_v62  ;;  %v9240_v23 = vmax.f32 %v9168_v7, 0.0  ;;  %v8723_v6 = vpop.f32.mrb[92].mxu1 }
 0x69e   : > { %9311 = vst [vmem:[%s15399_s14 + $0x58] sm:$0xff] %v9239_v19  ;;  %v9032_v53 = vadd.f32 %v15505_v3, %v8723_v6  ;;  %v8725_v22 = vpop.f32.mrb[93].mxu1 }
 0x69f   : > { %9312 = vst [vmem:[%s15399_s14 + $0x60] sm:$0xff] %v9240_v23  ;;  %v9033_v56 = vadd.f32 %v15508_v40, %v8725_v22  ;;  %v8727_v35 = vpop.f32.mrb[94].mxu1 }
 0x6a0   : > { %v9176_v4 = vadd.f32 %v9104_v41, %v9032_v53  ;;  %v9041_v32 = vadd.f32 %v15505_v3, %v8727_v35  ;;  %v8729_v54 = vpop.f32.mrb[95].mxu1 }
 0x6a1   : > { %v9177_v17 = vadd.f32 %v9105_v37, %v9033_v56  ;;  %v9042_v12 = vadd.f32 %v15508_v40, %v8729_v54  ;;  %v11997_v56 = vld [vmem:[%s12225_s18 + $0x10] sm:$0xff] }
 0x6a2   : > { %v9248_v27 = vmax.f32 %v9176_v4, 0.0  ;;  %v9185_v25 = vadd.f32 %v9113_v55, %v9041_v32  ;;  %v15553_v55 = vrot.slane %v15436_v14, %v8985_v58  ;;  %v9088_v35 = vunpack.c.l.bf16 %v11997_v56 }
 0x6a3   : > { %v9249_v51 = vmax.f32 %v9177_v17, 0.0  ;;  %v9186_v63 = vadd.f32 %v9114_v28, %v9042_v12  ;;  %v9089_v4 = vunpack.c.h.bf16 %v11997_v56  ;;  %v11998_v17 = vld [vmem:[%s12225_s18 + $0x34] sm:$0xff] }
 0x6a4   : > { %9320 = vst [vmem:[%s15399_s14 + $0xa0] sm:$0xff] %v9248_v27  ;;  %v9257_v10 = vmax.f32 %v9185_v25, 0.0  ;;  %v9097_v12 = vunpack.c.l.bf16 %v11998_v17 }
 0x6a5   : > { %9321 = vst [vmem:[%s15399_s14 + $0xa8] sm:$0xff] %v9249_v51  ;;  %v9258_v47 = vmax.f32 %v9186_v63, 0.0  ;;  %v8733_v34 = vpop.f32.mrb[96].mxu1  ;;  %v9098_v51 = vunpack.c.h.bf16 %v11998_v17 }
 0x6a6   : > { %9329 = vst [vmem:[%s15399_s14 + $0xe8] sm:$0xff] %v9257_v10  ;;  %v9050_v15 = vadd.f32 %v15505_v3, %v8733_v34  ;;  %v8735_v45 = vpop.f32.mrb[97].mxu1 }
 0x6a7   : > { %9330 = vst [vmem:[%s15399_s14 + $0xf0] sm:$0xff] %v9258_v47  ;;  %v9051_v60 = vadd.f32 %v15508_v40, %v8735_v45  ;;  %v8737_v38 = vpop.f32.mrb[98].mxu1 }
 0x6a8   : > { %v9194_v43 = vadd.f32 %v9122_v44, %v9050_v15  ;;  %v9059_v11 = vadd.f32 %v15505_v3, %v8737_v38  ;;  %v8739_v48 = vpop.f32.mrb[99].mxu1 }
 0x6a9   : > { %v9195_v0 = vadd.f32 %v9123_v31, %v9051_v60  ;;  %v9060_v46 = vadd.f32 %v15508_v40, %v8739_v48 }
 0x6aa   : > { %v9266_v36 = vmax.f32 %v9194_v43, 0.0  ;;  %v9203_v52 = vadd.f32 %v9131_v8, %v9059_v11  ;;  %v11999_v8 = vld [vmem:[%s12225_s18 + $0x58] sm:$0xff] }
 0x6ab   : > { %v9267_v39 = vmax.f32 %v9195_v0, 0.0  ;;  %v9204_v26 = vadd.f32 %v9132_v49, %v9060_v46  ;;  %v9106_v60 = vunpack.c.l.bf16 %v11999_v8  ;;  %v9107_v43 = vunpack.c.h.bf16 %v11999_v8  ;;  %v12000_v0 = vld [vmem:[%s12225_s18 + $0x7c] sm:$0xff] }
 0x6ac   : > { %9338 = vst [vmem:[%s15399_s14 + $0x130] sm:$0xff] %v9266_v36  ;;  %v9275_v61 = vmax.f32 %v9203_v52, 0.0  ;;  %v9115_v46 = vunpack.c.l.bf16 %v12000_v0 }
 0x6ad   : > { %9339 = vst [vmem:[%s15399_s14 + $0x138] sm:$0xff] %v9267_v39  ;;  %v9276_v13 = vmax.f32 %v9204_v26, 0.0  ;;  %v8743_v33 = vpop.f32.mrb[100].mxu1  ;;  %v9116_v39 = vunpack.c.h.bf16 %v12000_v0  ;;  %v8993_v0 = vsub.s32 6, %v13848_v5 }
 0x6ae   : > { %9347 = vst [vmem:[%s15399_s14 + $0x178] sm:$0xff] %v9275_v61  ;;  %v9068_v1 = vadd.f32 %v15505_v3, %v8743_v33  ;;  %v8745_v57 = vpop.f32.mrb[101].mxu1 }
 0x6af   : > { %9348 = vst [vmem:[%s15399_s14 + $0x180] sm:$0xff] %v9276_v13  ;;  %v9069_v9 = vadd.f32 %v15508_v40, %v8745_v57  ;;  %v8747_v50 = vpop.f32.mrb[102].mxu1 }
 0x6b0   : > { %v9212_v2 = vadd.f32 %v9140_v42, %v9068_v1  ;;  %v9077_v62 = vadd.f32 %v15505_v3, %v8747_v50  ;;  %v8749_v7 = vpop.f32.mrb[103].mxu1  ;;  %v8989_v3 = vsub.s32 5, %v13848_v5 }
 0x6b1   : > { %v9213_v19 = vadd.f32 %v9141_v30, %v9069_v9  ;;  %v9078_v16 = vadd.f32 %v15508_v40, %v8749_v7 }
 0x6b2   : > { %v9284_v41 = vmax.f32 %v9212_v2, 0.0  ;;  %v9221_v23 = vadd.f32 %v9149_v18, %v9077_v62  ;;  %v15556_v40 = vrot.slane %v15436_v14, %v8989_v3  ;;  %v12001_v18 = vld [vmem:[%s12225_s18 + $0xa0] sm:$0xff] }
 0x6b3   : > { %v9285_v6 = vmax.f32 %v9213_v19, 0.0  ;;  %v9222_v37 = vadd.f32 %v9150_v24, %v9078_v16  ;;  %v9124_v9 = vunpack.c.l.bf16 %v12001_v18  ;;  %v9125_v2 = vunpack.c.h.bf16 %v12001_v18  ;;  %v12002_v19 = vld [vmem:[%s12225_s18 + $0xc4] sm:$0xff] }
 0x6b4   : > { %9356 = vst [vmem:[%s15399_s14 + $0x1c0] sm:$0xff] %v9284_v41  ;;  %v9293_v53 = vmax.f32 %v9221_v23, 0.0  ;;  %v9133_v16 = vunpack.c.l.bf16 %v12002_v19 }
 0x6b5   : > { %9357 = vst [vmem:[%s15399_s14 + $0x1c8] sm:$0xff] %v9285_v6  ;;  %v9294_v22 = vmax.f32 %v9222_v37, 0.0  ;;  %v9134_v6 = vunpack.c.h.bf16 %v12002_v19 }
 0x6b6   : > { %9365 = vst [vmem:[%s15399_s14 + $0x208] sm:$0xff] %v9293_v53 }
 0x6b7   : > { %9366 = vst [vmem:[%s15399_s14 + $0x210] sm:$0xff] %v9294_v22 }
 0x6c5   : > { %v8786_v28 = vpop.f32.mrb[104].mxu1 }
 0x6c6   : > { %v9016_v32 = vadd.f32 %v15553_v55, %v8786_v28  ;;  %v8788_v54 = vpop.f32.mrb[105].mxu1 }
 0x6c7   : > { %v9017_v27 = vadd.f32 %v15556_v40, %v8788_v54  ;;  %v8790_v25 = vpop.f32.mrb[106].mxu1  ;;  %v12003_v54 = vld [vmem:[%s12225_s18 + $0xe8] sm:$0xff] }
 0x6c8   : > { %v9160_v63 = vadd.f32 %v9088_v35, %v9016_v32  ;;  %v9025_v10 = vadd.f32 %v15553_v55, %v8790_v25  ;;  %v8792_v59 = vpop.f32.mrb[107].mxu1  ;;  %v9142_v17 = vunpack.c.l.bf16 %v12003_v54  ;;  %v9143_v25 = vunpack.c.h.bf16 %v12003_v54 }
 0x6c9   : > { %v9161_v44 = vadd.f32 %v9089_v4, %v9017_v27  ;;  %v9026_v47 = vadd.f32 %v15556_v40, %v8792_v59 }
 0x6ca   : > { %v9232_v34 = vmax.f32 %v9160_v63, 0.0  ;;  %v9169_v31 = vadd.f32 %v9097_v12, %v9025_v10  ;;  %v12004_v10 = vld [vmem:[%s12225_s18 + $0x10c] sm:$0xff] }
 0x6cb   : > { %v9233_v15 = vmax.f32 %v9161_v44, 0.0  ;;  %v9170_v45 = vadd.f32 %v9098_v51, %v9026_v47  ;;  %v9151_v59 = vunpack.c.l.bf16 %v12004_v10 }
 0x6cc   : > { %9304 = vst [vmem:[%s15399_s14 + $0x20] sm:$0xff] %v9232_v34  ;;  %v9241_v29 = vmax.f32 %v9169_v31, 0.0  ;;  %v9152_v34 = vunpack.c.h.bf16 %v12004_v10 }
 0x6cd   : > { %9305 = vst [vmem:[%s15399_s14 + $0x28] sm:$0xff] %v9233_v15  ;;  %v9242_v38 = vmax.f32 %v9170_v45, 0.0  ;;  %v8796_v49 = vpop.f32.mrb[108].mxu1 }
 0x6ce   : > { %9313 = vst [vmem:[%s15399_s14 + $0x68] sm:$0xff] %v9241_v29  ;;  %v9034_v11 = vadd.f32 %v15553_v55, %v8796_v49  ;;  %v8798_v48 = vpop.f32.mrb[109].mxu1 }
 0x6cf   : > { %9314 = vst [vmem:[%s15399_s14 + $0x70] sm:$0xff] %v9242_v38  ;;  %v9035_v36 = vadd.f32 %v15556_v40, %v8798_v48  ;;  %v8800_v52 = vpop.f32.mrb[110].mxu1 }
 0x6d0   : > { %v9178_v26 = vadd.f32 %v9106_v60, %v9034_v11  ;;  %v9043_v61 = vadd.f32 %v15553_v55, %v8800_v52  ;;  %v8802_v20 = vpop.f32.mrb[111].mxu1 }
 0x6d1   : > { %v9179_v42 = vadd.f32 %v9107_v43, %v9035_v36  ;;  %v9044_v13 = vadd.f32 %v15556_v40, %v8802_v20  ;;  %v12005_v36 = vld [vmem:[%s12225_s18 + $0x18] sm:$0xff] }
 0x6d2   : > { %v9250_v33 = vmax.f32 %v9178_v26, 0.0  ;;  %v9187_v30 = vadd.f32 %v9115_v46, %v9043_v61  ;;  %v15601_v46 = vrot.slane %v15436_v14, %v8993_v0  ;;  %v9090_v52 = vunpack.c.l.bf16 %v12005_v36 }
 0x6d3   : > { %v9251_v1 = vmax.f32 %v9179_v42, 0.0  ;;  %v9188_v57 = vadd.f32 %v9116_v39, %v9044_v13  ;;  %v9091_v26 = vunpack.c.h.bf16 %v12005_v36  ;;  %v12006_v42 = vld [vmem:[%s12225_s18 + $0x3c] sm:$0xff] }
 0x6d4   : > { %9322 = vst [vmem:[%s15399_s14 + $0xb0] sm:$0xff] %v9250_v33  ;;  %v9259_v21 = vmax.f32 %v9187_v30, 0.0  ;;  %v9099_v13 = vunpack.c.l.bf16 %v12006_v42  ;;  %v9100_v30 = vunpack.c.h.bf16 %v12006_v42 }
 0x6d5   : > { %9323 = vst [vmem:[%s15399_s14 + $0xb8] sm:$0xff] %v9251_v1  ;;  %v9260_v50 = vmax.f32 %v9188_v57, 0.0  ;;  %v8806_v24 = vpop.f32.mrb[112].mxu1 }
 0x6d6   : > { %9331 = vst [vmem:[%s15399_s14 + $0xf8] sm:$0xff] %v9259_v21  ;;  %v9052_v62 = vadd.f32 %v15553_v55, %v8806_v24  ;;  %v8808_v7 = vpop.f32.mrb[113].mxu1 }
 0x6d7   : > { %9332 = vst [vmem:[%s15399_s14 + $0x100] sm:$0xff] %v9260_v50  ;;  %v9053_v41 = vadd.f32 %v15556_v40, %v8808_v7  ;;  %v8810_v23 = vpop.f32.mrb[114].mxu1  ;;  %v12007_v7 = vld [vmem:[%s12225_s18 + $0x60] sm:$0xff] }
 0x6d8   : > { %v9196_v37 = vadd.f32 %v9124_v9, %v9052_v62  ;;  %v9061_v53 = vadd.f32 %v15553_v55, %v8810_v23  ;;  %v8812_v22 = vpop.f32.mrb[115].mxu1  ;;  %v9108_v19 = vunpack.c.l.bf16 %v12007_v7  ;;  %v9109_v23 = vunpack.c.h.bf16 %v12007_v7 }
 0x6d9   : > { %v9197_v58 = vadd.f32 %v9125_v2, %v9053_v41  ;;  %v9062_v3 = vadd.f32 %v15556_v40, %v8812_v22 }
 0x6da   : > { %v9268_v56 = vmax.f32 %v9196_v37, 0.0  ;;  %v9205_v35 = vadd.f32 %v9133_v16, %v9061_v53  ;;  %v12008_v53 = vld [vmem:[%s12225_s18 + $0x84] sm:$0xff] }
 0x6db   : > { %v9269_v28 = vmax.f32 %v9197_v58, 0.0  ;;  %v9206_v4 = vadd.f32 %v9134_v6, %v9062_v3  ;;  %v9117_v22 = vunpack.c.l.bf16 %v12008_v53 }
 0x6dc   : > { %9340 = vst [vmem:[%s15399_s14 + $0x140] sm:$0xff] %v9268_v56  ;;  %v9277_v32 = vmax.f32 %v9205_v35, 0.0  ;;  %v9118_v56 = vunpack.c.h.bf16 %v12008_v53 }
 0x6dd   : > { %9341 = vst [vmem:[%s15399_s14 + $0x148] sm:$0xff] %v9269_v28  ;;  %v9278_v12 = vmax.f32 %v9206_v4, 0.0  ;;  %v8816_v27 = vpop.f32.mrb[116].mxu1 }
 0x6de   : > { %9349 = vst [vmem:[%s15399_s14 + $0x188] sm:$0xff] %v9277_v32  ;;  %v9070_v51 = vadd.f32 %v15553_v55, %v8816_v27  ;;  %v8818_v63 = vpop.f32.mrb[117].mxu1 }
 0x6df   : > { %9350 = vst [vmem:[%s15399_s14 + $0x190] sm:$0xff] %v9278_v12  ;;  %v9071_v44 = vadd.f32 %v15556_v40, %v8818_v63  ;;  %v8820_v47 = vpop.f32.mrb[118].mxu1  ;;  %v12009_v63 = vld [vmem:[%s12225_s18 + $0xa8] sm:$0xff] }
 0x6e0   : > { %v9214_v31 = vadd.f32 %v9142_v17, %v9070_v51  ;;  %v9079_v15 = vadd.f32 %v15553_v55, %v8820_v47  ;;  %v8822_v45 = vpop.f32.mrb[119].mxu1  ;;  %v8997_v55 = vsub.s32 7, %v13848_v5  ;;  %v9126_v10 = vunpack.c.l.bf16 %v12009_v63 }
 0x6e1   : > { %v9215_v29 = vadd.f32 %v9143_v25, %v9071_v44  ;;  %v9080_v8 = vadd.f32 %v15556_v40, %v8822_v45  ;;  %v9127_v47 = vunpack.c.h.bf16 %v12009_v63 }
 0x6e2   : > { %v9286_v60 = vmax.f32 %v9214_v31, 0.0  ;;  %v9223_v38 = vadd.f32 %v9151_v59, %v9079_v15  ;;  %v15604_v40 = vrot.slane %v15436_v14, %v8997_v55  ;;  %v12010_v15 = vld [vmem:[%s12225_s18 + $0xcc] sm:$0xff] }
 0x6e3   : > { %v9287_v49 = vmax.f32 %v9215_v29, 0.0  ;;  %v9224_v43 = vadd.f32 %v9152_v34, %v9080_v8  ;;  %v9135_v45 = vunpack.c.l.bf16 %v12010_v15 }
 0x6e4   : > { %9358 = vst [vmem:[%s15399_s14 + $0x1d0] sm:$0xff] %v9286_v60  ;;  %v9295_v11 = vmax.f32 %v9223_v38, 0.0  ;;  %v9136_v60 = vunpack.c.h.bf16 %v12010_v15 }
 0x6e5   : > { %9359 = vst [vmem:[%s15399_s14 + $0x1d8] sm:$0xff] %v9287_v49  ;;  %v9296_v48 = vmax.f32 %v9224_v43, 0.0 }
 0x6e6   : > { %9367 = vst [vmem:[%s15399_s14 + $0x218] sm:$0xff] %v9295_v11 }
 0x6e7   : > { %9368 = vst [vmem:[%s15399_s14 + $0x220] sm:$0xff] %v9296_v48 }
 0x6f5   : > { %v8859_v39 = vpop.f32.mrb[120].mxu1 }
 0x6f6   : > { %v9018_v61 = vadd.f32 %v15601_v46, %v8859_v39  ;;  %v8861_v20 = vpop.f32.mrb[121].mxu1 }
 0x6f7   : > { %v9019_v33 = vadd.f32 %v15604_v40, %v8861_v20  ;;  %v8863_v5 = vpop.f32.mrb[122].mxu1 }
 0x6f8   : > { %v9162_v1 = vadd.f32 %v9090_v52, %v9018_v61  ;;  %v9027_v14 = vadd.f32 %v15601_v46, %v8863_v5  ;;  %v8865_v57 = vpop.f32.mrb[123].mxu1 }
 0x6f9   : > { %v9163_v21 = vadd.f32 %v9091_v26, %v9019_v33  ;;  %v9028_v18 = vadd.f32 %v15604_v40, %v8865_v57  ;;  %v12011_v26 = vld [vmem:[%s12225_s18 + $0xf0] sm:$0xff] }
 0x6fa   : > { %v9234_v9 = vmax.f32 %v9162_v1, 0.0  ;;  %v9171_v50 = vadd.f32 %v9099_v13, %v9027_v14  ;;  %v9144_v61 = vunpack.c.l.bf16 %v12011_v26  ;;  %v9145_v13 = vunpack.c.h.bf16 %v12011_v26 }
 0x6fb   : > { %v9235_v24 = vmax.f32 %v9163_v21, 0.0  ;;  %v9172_v2 = vadd.f32 %v9100_v30, %v9028_v18  ;;  %v12012_v30 = vld [vmem:[%s12225_s18 + $0x114] sm:$0xff]  ;;  %s9387_s18 = sshll.u32 %s15399_s14, 4  ;;  %s15651_s18 = int_to_ptr.vmem [resolvable:$true] %s9387_s18 }
 0x6fc   : > { %9306 = vst [vmem:[%s15399_s14 + $0x30] sm:$0xff] %v9234_v9  ;;  %v9243_v62 = vmax.f32 %v9171_v50, 0.0  ;;  %v9153_v1 = vunpack.c.l.bf16 %v12012_v30  ;;  %v9154_v21 = vunpack.c.h.bf16 %v12012_v30  ;;  %s12013_s19 = scalar_lea.vmem %s15651_s18, 9216  ;;  %p12020_p0 = scmp.lt.s32.totalorder %s15651_s18, %s12018_s23 }
 0x6fd   : > { %9307 = vst [vmem:[%s15399_s14 + $0x38] sm:$0xff] %v9235_v24  ;;  %v9244_v16 = vmax.f32 %v9172_v2, 0.0  ;;  %v8869_v41 = vpop.f32.mrb[124].mxu1  ;;  %p12014_p11 = scmp.ne.s32.totalorder %s15651_s18, %s12013_s19  ;;  %p12021_p1 = scmp.lt.s32.totalorder %s12019_s27, %s12013_s19 }
 0x6fe   : > { %9315 = vst [vmem:[%s15399_s14 + $0x78] sm:$0xff] %v9243_v62  ;;  %v9036_v6 = vadd.f32 %v15601_v46, %v8869_v41  ;;  %v8871_v37 = vpop.f32.mrb[125].mxu1 }
 0x6ff   : > { %9316 = vst [vmem:[%s15399_s14 + $0x80] sm:$0xff] %v9244_v16  ;;  %v9037_v58 = vadd.f32 %v15604_v40, %v8871_v37  ;;  %v8873_v3 = vpop.f32.mrb[126].mxu1  ;;  %p12015_p12 = pnand %p12014_p11, %p12184_p5  ;;  %p12022_p2 = por %p12021_p1, %p12020_p0 }
 0x700   : > { %v9180_v35 = vadd.f32 %v9108_v19, %v9036_v6  ;;  %v9045_v28 = vadd.f32 %v15601_v46, %v8873_v3  ;;  %v8875_v4 = vpop.f32.mrb[127].mxu1 }
 0x701   : > { %v9181_v32 = vadd.f32 %v9109_v23, %v9037_v58  ;;  %v9046_v54 = vadd.f32 %v15604_v40, %v8875_v4  ;;  %p12016_p13 = pneg %p12015_p12 }
 0x702   : > { %v9252_v17 = vmax.f32 %v9180_v35, 0.0  ;;  %v9189_v12 = vadd.f32 %v9117_v22, %v9045_v28 }
 0x703   : > { %v9253_v27 = vmax.f32 %v9181_v32, 0.0  ;;  %v9190_v25 = vadd.f32 %v9118_v56, %v9046_v54  ;;  %p12023_p3 = pnand %p12022_p2, %p12016_p13 }
 0x704   : > { %9324 = vst [vmem:[%s15399_s14 + $0xc0] sm:$0xff] %v9252_v17  ;;  %v9261_v51 = vmax.f32 %v9189_v12, 0.0 }
 0x705   : > { %9325 = vst [vmem:[%s15399_s14 + $0xc8] sm:$0xff] %v9253_v27  ;;  %v9262_v59 = vmax.f32 %v9190_v25, 0.0  ;;  %v8879_v44 = vpop.f32.mrb[128].mxu1 }
 0x706   : > { %9333 = vst [vmem:[%s15399_s14 + $0x108] sm:$0xff] %v9261_v51  ;;  %v9054_v34 = vadd.f32 %v15601_v46, %v8879_v44  ;;  %v8881_v31 = vpop.f32.mrb[129].mxu1 }
 0x707   : > { %9334 = vst [vmem:[%s15399_s14 + $0x110] sm:$0xff] %v9262_v59  ;;  %v9055_v29 = vadd.f32 %v15604_v40, %v8881_v31  ;;  %v8883_v8 = vpop.f32.mrb[130].mxu1 }
 0x708   : > { %v9198_v38 = vadd.f32 %v9126_v10, %v9054_v34  ;;  %v9063_v49 = vadd.f32 %v15601_v46, %v8883_v8  ;;  %v8885_v43 = vpop.f32.mrb[131].mxu1 }
 0x709   : > { %v9199_v11 = vadd.f32 %v9127_v47, %v9055_v29  ;;  %v9064_v48 = vadd.f32 %v15604_v40, %v8885_v43 }
 0x70a   : > { %v9270_v0 = vmax.f32 %v9198_v38, 0.0  ;;  %v9207_v55 = vadd.f32 %v9135_v45, %v9063_v49 }
 0x70b   : > { %v9271_v36 = vmax.f32 %v9199_v11, 0.0  ;;  %v9208_v52 = vadd.f32 %v9136_v60, %v9064_v48 }
 0x70c   : > { %9342 = vst [vmem:[%s15399_s14 + $0x150] sm:$0xff] %v9270_v0  ;;  %v9279_v39 = vmax.f32 %v9207_v55, 0.0 }
 0x70d   : > { %9343 = vst [vmem:[%s15399_s14 + $0x158] sm:$0xff] %v9271_v36  ;;  %v9280_v20 = vmax.f32 %v9208_v52, 0.0  ;;  %v8889_v42 = vpop.f32.mrb[132].mxu1 }
 0x70e   : > { %9351 = vst [vmem:[%s15399_s14 + $0x198] sm:$0xff] %v9279_v39  ;;  %v9072_v33 = vadd.f32 %v15601_v46, %v8889_v42  ;;  %v8891_v5 = vpop.f32.mrb[133].mxu1 }
 0x70f   : > { %9352 = vst [vmem:[%s15399_s14 + $0x1a0] sm:$0xff] %v9280_v20  ;;  %v9073_v14 = vadd.f32 %v15604_v40, %v8891_v5  ;;  %v8893_v57 = vpop.f32.mrb[134].mxu1 }
 0x710   : > { %v9216_v18 = vadd.f32 %v9144_v61, %v9072_v33  ;;  %v9081_v9 = vadd.f32 %v15601_v46, %v8893_v57  ;;  %v8895_v50 = vpop.f32.mrb[135].mxu1 }
 0x711   : > { %v9217_v24 = vadd.f32 %v9145_v13, %v9073_v14  ;;  %v9082_v2 = vadd.f32 %v15604_v40, %v8895_v50 }
 0x712   : > { %v9288_v62 = vmax.f32 %v9216_v18, 0.0  ;;  %v9225_v7 = vadd.f32 %v9153_v1, %v9081_v9 }
 0x713   : > { %v9289_v19 = vmax.f32 %v9217_v24, 0.0  ;;  %v9226_v16 = vadd.f32 %v9154_v21, %v9082_v2 }
 0x714   : > { %9360 = vst [vmem:[%s15399_s14 + $0x1e0] sm:$0xff] %v9288_v62  ;;  %v9297_v41 = vmax.f32 %v9225_v7, 0.0 }
 0x715   : > { %9361 = vst [vmem:[%s15399_s14 + $0x1e8] sm:$0xff] %v9289_v19  ;;  %v9298_v46 = vmax.f32 %v9226_v16, 0.0 }
 0x716   : > { %9369 = vst [vmem:[%s15399_s14 + $0x228] sm:$0xff] %v9297_v41 }
 0x717   : > { %9370 = vst [vmem:[%s15399_s14 + $0x230] sm:$0xff] %v9298_v46 }
 0x718   : > { %12026 = shalt.err (!%p12023_p3)
}
 0x719   : > { %s12027_s30 = scalar_lea.hbm %s15648_s16, 9216  ;;  %s12031_s26 = scalar_lea.hbm %s15710_s12, 18432 }
 0x71a   : > { %p12028_p4 = scmp.ne.s32.totalorder %s15648_s16, %s12027_s30  ;;  %p12032_p9 = scmp.lt.u32.totalorder %s15648_s16, %s15710_s12 }
 0x71b   : > { %p12033_p10 = scmp.lt.u32.totalorder %s12031_s26, %s12027_s30  ;;  %p12035_p12 = scmp.lt.u32.totalorder %s12027_s30, %s15648_s16 }
 0x71c   : > { %p12029_p7 = pnand %p12028_p4, %p12184_p5 }
 0x71d   : > { %p12034_p11 = por %p12033_p10, %p12032_p9 }
 0x71e   : > { %p12030_p8 = pneg %p12029_p7 }
 0x71f   : > { %p12036_p13 = por %p12035_p12, %p12034_p11 }
 0x721   : > { %p12037_p0 = pnand %p12036_p13, %p12030_p8 }
 0x723   : > { %12040 = shalt.err (!%p12037_p0)
}
 0x724   : > { %s12079_s15 = smov 1152   ;;  %s12080_s19 = smov 72  }
 0x725   : > { %10909 = dma.vmem_to_hbm [thread:$0]  (%p12184_p5), %s15651_s18, 9216, %s15648_s16, %s15657_s25, %s12079_s15, %s12079_s15, %s12080_s19  }
 0x726 PF: > { %p10915_p1 = scmp.ge.s32.totalorder %s12075_s24, 2  ;;  %s9402_s23 = sand.u32 1, %s12063_s21  }
 0x727   : > { %s9403_s27 = scalar_lea.sflag [#allocation5], %s9402_s23 }
 0x728   : > { %p10912_p2 = pnand %p10915_p1, %p12188_p6 }
 0x72a   : > { %12058 = dma.done.wait (!%p10912_p2), %s9403_s27, 9216  }
 0x72b   : > { %12060 = vsyncadd (!%p10912_p2), %s9403_s27, 4294958080  ;;  %s15736_s24 = sld [smem:[#allocation8_spill]]  ;;  %s15737_s30 = sld [smem:[#allocation7_spill]] }
 0x72c   : > { %s15738_s23 = sld [smem:[#allocation9_spill]]  ;;  %s15739_s21 = smov %s12067_s22 }
 0x731   : > { %p22_p3 = scmp.ge.s32.totalorder %s15736_s24, 4   ;;  %s15740_s22 = smov %s15737_s30 }
 0x733   :  { %24 = sbr.rel (!%p22_p3) target bundleno = 3 (0x3), region = 109 }
 0x73a   :  { %9408 = vsyncpa [#allocation5], 1 }
 0x73b   :  { %9410 = vsyncpa [#allocation5 + $0x1], 1 }

</bundles_post_ra>
